<compile_context>
chip_gen: v6e
topology: v6e:2x2x1
jax: 0.10.0
libtpu: 0.0.40
codegen_flags: <defaults>
</compile_context>

<pallas_src>
import jax
import jax.numpy as jnp
from jax import lax
from jax.experimental import pallas as pl
from jax.experimental.pallas import tpu as pltpu


def mc_att_l_pallas(params, h, row, col, coord):
    """Forward pass of MC_Att_L (eval mode, edge_attr=None) as one Pallas kernel."""
    N, F = h.shape
    E = row.shape[0]
    C, d = coord.shape[1], coord.shape[2]
    H = params["wq"].shape[1]
    CC, Cd = C * C, C * d
    assert F == H, "residual `h + agg` requires input_nf == hidden_nf"

    f32 = jnp.float32
    HI = lax.Precision.HIGHEST

    # ---- host-side packing (tiny weights, done once per call) ---------------
    wq = params["wq"].astype(f32)                              # (F, H)
    bq = params["bq"].astype(f32)                              # (H,)
    wk = params["wk"].astype(f32)                              # (CC+F, H)
    wv = params["wv"].astype(f32)
    wkv_t = jnp.concatenate([wk[CC:], wv[CC:]], axis=1)        # (F, 2H)   h part
    wkv_r = jnp.concatenate([wk[:CC], wv[:CC]], axis=1)        # (CC, 2H)  radial part
    bkv = jnp.concatenate([params["bk"], params["bv"]]).astype(f32)   # (2H,)

    # node input slab [h | coord | 1] and fused projection weight
    #   output cols: [q (H) | kv (2H) | coord pass-through (Cd)]
    node_in = jnp.concatenate(
        [h.astype(f32), coord.reshape(N, Cd).astype(f32), jnp.ones((N, 1), f32)],
        axis=1)                                                # (N, F+Cd+1)
    w_all = jnp.zeros((F + Cd + 1, 3 * H + Cd), f32)
    w_all = w_all.at[:F, :H].set(wq)
    w_all = w_all.at[:F, H:3 * H].set(wkv_t)
    w_all = w_all.at[F:F + Cd, 3 * H:].set(jnp.eye(Cd, dtype=f32))
    w_all = w_all.at[F + Cd, :H].set(bq)                       # biases folded in
    w_all = w_all.at[F + Cd, H:3 * H].set(bkv)

    # radial replication (merged p_i | p_j) and reduction matrices
    b_idx = jnp.arange(CC * d)
    ii, jj, tt = b_idx // (C * d), (b_idx // d) % C, b_idx % d
    src = jnp.arange(Cd)[:, None]
    p_i = (src == (ii * d + tt)[None, :]).astype(f32)          # (Cd, CC*d)
    p_j = (src == (jj * d + tt)[None, :]).astype(f32)
    pij = jnp.concatenate([p_i, p_j], axis=1)                  # (Cd, 2*CC*d)
    r_sum = ((b_idx[:, None] // d) == jnp.arange(CC)[None, :]).astype(f32)  # (CC*d, CC)

    # coord MLP packed [w1 | w2_exp ; b1 | 0]; channel->channel*d folded into w2
    w2_exp = jnp.repeat(params["w2"].astype(f32), d, axis=1)   # (H, Cd)
    mlp = jnp.zeros((H + 1, H + Cd), f32)
    mlp = mlp.at[:H, :H].set(params["w1"].astype(f32))
    mlp = mlp.at[H, :H].set(params["b1"].astype(f32))
    mlp = mlp.at[:H, H:].set(w2_exp)

    rc = jnp.concatenate([row, col]).astype(jnp.int32).reshape(2 * E, 1)

    def kernel(rc_ref, node_ref, wall_ref, wkvr_ref, pij_ref, rsum_ref, mlp_ref,
               out_ref, att_ref):
        # --- stacked one-hot (row ; col) gather matrix, built once -----------
        rc_idx = rc_ref[...]                                   # (2E, 1) int32
        iota = lax.broadcasted_iota(jnp.int32, (2 * E, N), 1)
        g_b = iota == rc_idx                                   # (2E, N) bool
        g = g_b.astype(f32)
        row_mask = g_b[:E, :]                                  # (E, N)

        node_in_v = node_ref[...]                              # (N, F+Cd+1)

        # --- fused projection (+bias, +coord pass-through) at node granularity
        node_feat = jnp.dot(node_in_v, wall_ref[...], precision=HI,
                            preferred_element_type=f32)        # (N, 3H+Cd)
        # --- single fused row/col gather on the MXU --------------------------
        gat = jnp.dot(g, node_feat, precision=HI,
                      preferred_element_type=f32)              # (2E, 3H+Cd)
        q = gat[:E, :H]
        coord_row = gat[:E, 3 * H:]
        kv_t = gat[E:, H:3 * H]
        coord_col = gat[E:, 3 * H:]
        coord_diff = coord_row - coord_col                     # (E, Cd)

        # --- coord2radial: radial[e, i*C+j] = <cd[e,i,:], cd[e,j,:]> ---------
        rep = jnp.dot(coord_diff, pij_ref[...], precision=HI,
                      preferred_element_type=f32)              # (E, 2*CC*d)
        prod = rep[:, :CC * d] * rep[:, CC * d:]
        radial = jnp.dot(prod, rsum_ref[...], precision=HI,
                         preferred_element_type=f32)           # (E, CC)
        # F.normalize(radial, dim=0): per-(i,j) L2 norm over edges, via rsqrt
        sumsq = jnp.sum(radial * radial, axis=0, keepdims=True)
        radial = radial * lax.rsqrt(jnp.maximum(sumsq, jnp.float32(1e-24)))

        # --- att_model --------------------------------------------------------
        kv = kv_t + jnp.dot(radial, wkvr_ref[...], precision=HI,
                            preferred_element_type=f32)        # (E, 2H)
        k = kv[:, :H]
        v = kv[:, H:]
        alpha = jnp.sum(q * k, axis=1, keepdims=True)          # (E, 1)

        # scatter_softmax(alpha, row): masked VPU/EUP path (no MXU ops).
        # Mask applied BEFORE the exp; nodes with no incident edges have
        # seg_sum == 0 and contribute exactly 0 (max() keeps inv finite).
        NEG = jnp.float32(-1e30)
        seg_max = jnp.max(jnp.where(row_mask, alpha, NEG), axis=0, keepdims=True)
        p = jnp.exp(jnp.where(row_mask, alpha - seg_max, NEG))  # (E, N)
        seg_sum = jnp.sum(p, axis=0, keepdims=True)             # (1, N)
        inv = 1.0 / jnp.maximum(seg_sum, jnp.float32(0.5))      # exact; >=1 if live
        att = jnp.sum(p * inv, axis=1, keepdims=True)           # (E, 1)
        att_ref[...] = att
        # TODO(synk): emit att lane-dense (not (E,1)) once E grows past ~128.

        # --- node_model + coord_model (dropout = identity in eval mode) ------
        mlp_v = mlp_ref[...]
        w1, b1, w2e = mlp_v[:H, :H], mlp_v[H:H + 1, :H], mlp_v[:H, H:]
        m = jnp.dot(v, w1, precision=HI, preferred_element_type=f32) + b1
        m = m * jax.nn.sigmoid(m)                               # SiLU
        coord_v = att * jnp.dot(m, w2e, precision=HI, preferred_element_type=f32)
        trans = coord_diff * coord_v                            # (E, Cd)

        msg = jnp.concatenate([att * v, trans], axis=1)         # (E, H+Cd)
        # fused scatter-add (node + coord messages) over `row`: one-hot^T matmul
        agg = lax.dot_general(g[:E, :], msg, (((0,), (0,)), ((), ())),
                              precision=HI, preferred_element_type=f32)
        out_ref[...] = node_in_v[:, :F + Cd] + agg              # [h_out | coord_out]

    vmem = pltpu.MemorySpace.VMEM
    out_node, att = pl.pallas_call(
        kernel,
        out_shape=(jax.ShapeDtypeStruct((N, F + Cd), f32),
                   jax.ShapeDtypeStruct((E, 1), f32)),
        in_specs=[pl.BlockSpec(memory_space=vmem)] * 7,
        out_specs=(pl.BlockSpec(memory_space=vmem),
                   pl.BlockSpec(memory_space=vmem)),
    )(rc, node_in, w_all, wkv_r, pij, r_sum, mlp)

    h_out = out_node[:, :H]
    coord_out = out_node[:, H:].reshape(N, C, d)
    return h_out, coord_out, att[:, 0]


def mc_att_l_reference(params, h, row, col, coord):
    """Pure-JAX reference of the PyTorch forward (eval mode), full-f32 matmuls."""
    HI = lax.Precision.HIGHEST
    N = h.shape[0]
    E = row.shape[0]
    C = coord.shape[1]
    coord_diff = coord[row] - coord[col]
    radial = jnp.einsum("eid,ejd->eij", coord_diff, coord_diff, precision=HI)
    norm = jnp.sqrt(jnp.sum(radial ** 2, axis=0, keepdims=True))
    radial = radial / jnp.maximum(norm, 1e-12)
    radial_flat = radial.reshape(E, C * C)
    source, target = h[row], h[col]
    q = jnp.dot(source, params["wq"], precision=HI) + params["bq"]
    feat = jnp.concatenate([radial_flat, target], axis=1)
    k = jnp.dot(feat, params["wk"], precision=HI) + params["bk"]
    v = jnp.dot(feat, params["wv"], precision=HI) + params["bv"]
    alpha = jnp.sum(q * k, axis=1)
    seg_max = jax.ops.segment_max(alpha, row, num_segments=N)
    exp_a = jnp.exp(alpha - seg_max[row])
    seg_sum = jax.ops.segment_sum(exp_a, row, num_segments=N)
    att = exp_a / seg_sum[row]
    h_out = h + jax.ops.segment_sum(att[:, None] * v, row, num_segments=N)
    m = jax.nn.silu(jnp.dot(v, params["w1"], precision=HI) + params["b1"])
    coord_v = jnp.dot(m, params["w2"], precision=HI) * att[:, None]
    trans = coord_diff * coord_v[:, :, None]
    coord_out = coord + jax.ops.segment_sum(trans, row, num_segments=N)
    return h_out, coord_out, att


if __name__ == "__main__":
    # small shapes: input_nf = hidden_nf = 32 (required by "h + agg"),
    # n_channel = 4, spatial dim d = 3, N = 32 nodes, E = 64 edges.
    N, E, F, H, C, d = 32, 64, 32, 32, 4, 3
    CC = C * C

    key = jax.random.PRNGKey(0)
    ks = jax.random.split(key, 12)
    scale = 0.1
    wkv = jax.random.normal(ks[0], (F + CC, 2 * H), jnp.float32) * scale
    bkv = jax.random.normal(ks[1], (2 * H,), jnp.float32) * scale
    params = {
        "wq": jax.random.normal(ks[2], (F, H), jnp.float32) * scale,
        "bq": jax.random.normal(ks[3], (H,), jnp.float32) * scale,
        "wk": wkv[:, 0::2], "bk": bkv[0::2],      # kv[..., 0::2]
        "wv": wkv[:, 1::2], "bv": bkv[1::2],      # kv[..., 1::2]
        "w1": jax.random.normal(ks[4], (H, H), jnp.float32) * scale,
        "b1": jax.random.normal(ks[5], (H,), jnp.float32) * scale,
        # xavier_uniform_(gain=0.001): tiny weights, no bias
        "w2": jax.random.normal(ks[6], (H, C), jnp.float32) * 0.001,
    }

    h = jax.random.normal(ks[7], (N, F), jnp.float32)
    coord = jax.random.normal(ks[8], (N, C, d), jnp.float32)
    row = jax.random.randint(ks[9], (E,), 0, N, dtype=jnp.int32)
    col = jax.random.randint(ks[10], (E,), 0, N, dtype=jnp.int32)

    h_out, coord_out, att = mc_att_l_pallas(params, h, row, col, coord)
    jax.block_until_ready((h_out, coord_out, att))

    h_ref, c_ref, a_ref = mc_att_l_reference(params, h, row, col, coord)
    assert jnp.allclose(h_out, h_ref, rtol=1e-3, atol=1e-3), "h mismatch"
    assert jnp.allclose(coord_out, c_ref, rtol=1e-3, atol=1e-3), "coord mismatch"
    assert jnp.allclose(att, a_ref, rtol=1e-3, atol=1e-3), "att mismatch"

    print("KERNEL_OK")
</pallas_src>

<mosaic_0001>
module attributes {stable_mosaic.version = 11 : i64} {
  func.func @kernel(%arg0: memref<128x1xi32, #tpu.memory_space<vmem>>, %arg1: memref<32x45xf32, #tpu.memory_space<vmem>>, %arg2: memref<45x108xf32, #tpu.memory_space<vmem>>, %arg3: memref<16x64xf32, #tpu.memory_space<vmem>>, %arg4: memref<12x96xf32, #tpu.memory_space<vmem>>, %arg5: memref<48x16xf32, #tpu.memory_space<vmem>>, %arg6: memref<33x44xf32, #tpu.memory_space<vmem>>, %arg7: memref<32x44xf32, #tpu.memory_space<vmem>>, %arg8: memref<64x1xf32, #tpu.memory_space<vmem>>) attributes {dimension_semantics = [], scalar_prefetch = 0 : i64, scratch_operands = 0 : i64, tpu.core_type = #tpu.core_type<tc>} {
    %c0 = arith.constant 0 : index
    %c0_0 = arith.constant 0 : index
    %0 = vector.load %arg0[%c0, %c0_0] : memref<128x1xi32, #tpu.memory_space<vmem>>, vector<128x1xi32>
    %1 = tpu.iota {dimensions = array<i32: 1>} : vector<128x32xi32>
    %2 = vector.broadcast %0 : vector<128x1xi32> to vector<128x32xi32>
    %3 = arith.cmpi eq, %1, %2 : vector<128x32xi32>
    %4 = arith.extui %3 : vector<128x32xi1> to vector<128x32xi32>
    %5 = arith.sitofp %4 : vector<128x32xi32> to vector<128x32xf32>
    %6 = vector.extract_strided_slice %3 {offsets = [0, 0], sizes = [64, 32], strides = [1, 1]} : vector<128x32xi1> to vector<64x32xi1>
    %c0_1 = arith.constant 0 : index
    %c0_2 = arith.constant 0 : index
    %7 = vector.load %arg1[%c0_1, %c0_2] : memref<32x45xf32, #tpu.memory_space<vmem>>, vector<32x45xf32>
    %c0_3 = arith.constant 0 : index
    %c0_4 = arith.constant 0 : index
    %8 = vector.load %arg2[%c0_3, %c0_4] : memref<45x108xf32, #tpu.memory_space<vmem>>, vector<45x108xf32>
    %cst = arith.constant dense<0.000000e+00> : vector<32x108xf32>
    %9 = tpu.matmul %7, %8, %cst {dimension_numbers = #tpu.dot_dimension_numbers<[1], [0], [0], [1], [0, 0, 1, 1], [], []>, precision = #tpu.contract_precision<fp32>} : vector<32x45xf32>, vector<45x108xf32>, vector<32x108xf32> -> vector<32x108xf32>
    %cst_5 = arith.constant dense<0.000000e+00> : vector<128x108xf32>
    %10 = tpu.matmul %5, %9, %cst_5 {dimension_numbers = #tpu.dot_dimension_numbers<[1], [0], [0], [1], [0, 0, 1, 1], [], []>, precision = #tpu.contract_precision<fp32>} : vector<128x32xf32>, vector<32x108xf32>, vector<128x108xf32> -> vector<128x108xf32>
    %11 = vector.extract_strided_slice %10 {offsets = [0, 0], sizes = [64, 32], strides = [1, 1]} : vector<128x108xf32> to vector<64x32xf32>
    %12 = vector.extract_strided_slice %10 {offsets = [0, 96], sizes = [64, 12], strides = [1, 1]} : vector<128x108xf32> to vector<64x12xf32>
    %13 = vector.extract_strided_slice %10 {offsets = [64, 32], sizes = [64, 64], strides = [1, 1]} : vector<128x108xf32> to vector<64x64xf32>
    %14 = vector.extract_strided_slice %10 {offsets = [64, 96], sizes = [64, 12], strides = [1, 1]} : vector<128x108xf32> to vector<64x12xf32>
    %15 = arith.subf %12, %14 : vector<64x12xf32>
    %c0_6 = arith.constant 0 : index
    %c0_7 = arith.constant 0 : index
    %16 = vector.load %arg4[%c0_6, %c0_7] : memref<12x96xf32, #tpu.memory_space<vmem>>, vector<12x96xf32>
    %cst_8 = arith.constant dense<0.000000e+00> : vector<64x96xf32>
    %17 = tpu.matmul %15, %16, %cst_8 {dimension_numbers = #tpu.dot_dimension_numbers<[1], [0], [0], [1], [0, 0, 1, 1], [], []>, precision = #tpu.contract_precision<fp32>} : vector<64x12xf32>, vector<12x96xf32>, vector<64x96xf32> -> vector<64x96xf32>
    %18 = vector.extract_strided_slice %17 {offsets = [0, 0], sizes = [64, 48], strides = [1, 1]} : vector<64x96xf32> to vector<64x48xf32>
    %19 = vector.extract_strided_slice %17 {offsets = [0, 48], sizes = [64, 48], strides = [1, 1]} : vector<64x96xf32> to vector<64x48xf32>
    %20 = arith.mulf %18, %19 : vector<64x48xf32>
    %c0_9 = arith.constant 0 : index
    %c0_10 = arith.constant 0 : index
    %21 = vector.load %arg5[%c0_9, %c0_10] : memref<48x16xf32, #tpu.memory_space<vmem>>, vector<48x16xf32>
    %cst_11 = arith.constant dense<0.000000e+00> : vector<64x16xf32>
    %22 = tpu.matmul %20, %21, %cst_11 {dimension_numbers = #tpu.dot_dimension_numbers<[1], [0], [0], [1], [0, 0, 1, 1], [], []>, precision = #tpu.contract_precision<fp32>} : vector<64x48xf32>, vector<48x16xf32>, vector<64x16xf32> -> vector<64x16xf32>
    %23 = arith.mulf %22, %22 : vector<64x16xf32>
    %cst_12 = arith.constant dense<0.000000e+00> : vector<16xf32>
    %24 = vector.multi_reduction <add>, %23, %cst_12 [0] : vector<64x16xf32> to vector<16xf32>
    %25 = vector.shape_cast %24 : vector<16xf32> to vector<1x16xf32>
    %cst_13 = arith.constant 1.000000e-24 : f32
    %26 = vector.broadcast %cst_13 : f32 to vector<1x16xf32>
    %27 = arith.maximumf %25, %26 : vector<1x16xf32>
    %28 = math.rsqrt %27 : vector<1x16xf32>
    %29 = vector.broadcast %28 : vector<1x16xf32> to vector<64x16xf32>
    %30 = arith.mulf %22, %29 : vector<64x16xf32>
    %c0_14 = arith.constant 0 : index
    %c0_15 = arith.constant 0 : index
    %31 = vector.load %arg3[%c0_14, %c0_15] : memref<16x64xf32, #tpu.memory_space<vmem>>, vector<16x64xf32>
    %cst_16 = arith.constant dense<0.000000e+00> : vector<64x64xf32>
    %32 = tpu.matmul %30, %31, %cst_16 {dimension_numbers = #tpu.dot_dimension_numbers<[1], [0], [0], [1], [0, 0, 1, 1], [], []>, precision = #tpu.contract_precision<fp32>} : vector<64x16xf32>, vector<16x64xf32>, vector<64x64xf32> -> vector<64x64xf32>
    %33 = arith.addf %13, %32 : vector<64x64xf32>
    %34 = vector.extract_strided_slice %33 {offsets = [0, 0], sizes = [64, 32], strides = [1, 1]} : vector<64x64xf32> to vector<64x32xf32>
    %35 = vector.extract_strided_slice %33 {offsets = [0, 32], sizes = [64, 32], strides = [1, 1]} : vector<64x64xf32> to vector<64x32xf32>
    %36 = arith.mulf %11, %34 : vector<64x32xf32>
    %cst_17 = arith.constant dense<0.000000e+00> : vector<64xf32>
    %37 = vector.multi_reduction <add>, %36, %cst_17 [1] : vector<64x32xf32> to vector<64xf32>
    %38 = vector.shape_cast %37 : vector<64xf32> to vector<64x1xf32>
    %cst_18 = arith.constant -1.000000e+30 : f32
    %39 = vector.shape_cast %38 : vector<64x1xf32> to vector<64x1xf32>
    %40 = vector.broadcast %39 : vector<64x1xf32> to vector<64x32xf32>
    %41 = vector.broadcast %cst_18 : f32 to vector<64x32xf32>
    %42 = arith.select %6, %40, %41 : vector<64x32xi1>, vector<64x32xf32>
    %cst_19 = arith.constant dense<0xFF800000> : vector<32xf32>
    %43 = vector.multi_reduction <maximumf>, %42, %cst_19 [0] : vector<64x32xf32> to vector<32xf32>
    %44 = vector.shape_cast %43 : vector<32xf32> to vector<1x32xf32>
    %45 = vector.broadcast %38 : vector<64x1xf32> to vector<64x32xf32>
    %46 = vector.broadcast %44 : vector<1x32xf32> to vector<64x32xf32>
    %47 = arith.subf %45, %46 : vector<64x32xf32>
    %cst_20 = arith.constant -1.000000e+30 : f32
    %48 = vector.broadcast %cst_20 : f32 to vector<64x32xf32>
    %49 = arith.select %6, %47, %48 : vector<64x32xi1>, vector<64x32xf32>
    %50 = math.exp %49 : vector<64x32xf32>
    %cst_21 = arith.constant dense<0.000000e+00> : vector<32xf32>
    %51 = vector.multi_reduction <add>, %50, %cst_21 [0] : vector<64x32xf32> to vector<32xf32>
    %52 = vector.shape_cast %51 : vector<32xf32> to vector<1x32xf32>
    %cst_22 = arith.constant 5.000000e-01 : f32
    %53 = vector.broadcast %cst_22 : f32 to vector<1x32xf32>
    %54 = arith.maximumf %52, %53 : vector<1x32xf32>
    %cst_23 = arith.constant 1.000000e+00 : f32
    %55 = vector.broadcast %cst_23 : f32 to vector<1x32xf32>
    %56 = arith.divf %55, %54 : vector<1x32xf32>
    %57 = vector.broadcast %56 : vector<1x32xf32> to vector<64x32xf32>
    %58 = arith.mulf %50, %57 : vector<64x32xf32>
    %cst_24 = arith.constant dense<0.000000e+00> : vector<64xf32>
    %59 = vector.multi_reduction <add>, %58, %cst_24 [1] : vector<64x32xf32> to vector<64xf32>
    %60 = vector.shape_cast %59 : vector<64xf32> to vector<64x1xf32>
    %c0_25 = arith.constant 0 : index
    %c0_26 = arith.constant 0 : index
    %61 = vector.load %arg8[%c0_25, %c0_26] : memref<64x1xf32, #tpu.memory_space<vmem>>, vector<64x1xf32>
    tpu.vector_store %arg8[%c0_25, %c0_26], %60 {strides = array<i32>} : memref<64x1xf32, #tpu.memory_space<vmem>>, vector<64x1xf32>,
    %c0_27 = arith.constant 0 : index
    %c0_28 = arith.constant 0 : index
    %62 = vector.load %arg6[%c0_27, %c0_28] : memref<33x44xf32, #tpu.memory_space<vmem>>, vector<33x44xf32>
    %63 = vector.extract_strided_slice %62 {offsets = [0, 0], sizes = [32, 32], strides = [1, 1]} : vector<33x44xf32> to vector<32x32xf32>
    %64 = vector.extract_strided_slice %62 {offsets = [32, 0], sizes = [1, 32], strides = [1, 1]} : vector<33x44xf32> to vector<1x32xf32>
    %65 = vector.extract_strided_slice %62 {offsets = [0, 32], sizes = [32, 12], strides = [1, 1]} : vector<33x44xf32> to vector<32x12xf32>
    %cst_29 = arith.constant dense<0.000000e+00> : vector<64x32xf32>
    %66 = tpu.matmul %35, %63, %cst_29 {dimension_numbers = #tpu.dot_dimension_numbers<[1], [0], [0], [1], [0, 0, 1, 1], [], []>, precision = #tpu.contract_precision<fp32>} : vector<64x32xf32>, vector<32x32xf32>, vector<64x32xf32> -> vector<64x32xf32>
    %67 = vector.broadcast %64 : vector<1x32xf32> to vector<64x32xf32>
    %68 = arith.addf %66, %67 : vector<64x32xf32>
    %69 = arith.negf %68 : vector<64x32xf32>
    %70 = math.exp %69 : vector<64x32xf32>
    %cst_30 = arith.constant 1.000000e+00 : f32
    %71 = vector.broadcast %cst_30 : f32 to vector<64x32xf32>
    %72 = arith.addf %71, %70 : vector<64x32xf32>
    %73 = arith.divf %71, %72 : vector<64x32xf32>
    %74 = arith.mulf %68, %73 : vector<64x32xf32>
    %cst_31 = arith.constant dense<0.000000e+00> : vector<64x12xf32>
    %75 = tpu.matmul %74, %65, %cst_31 {dimension_numbers = #tpu.dot_dimension_numbers<[1], [0], [0], [1], [0, 0, 1, 1], [], []>, precision = #tpu.contract_precision<fp32>} : vector<64x32xf32>, vector<32x12xf32>, vector<64x12xf32> -> vector<64x12xf32>
    %76 = vector.broadcast %60 : vector<64x1xf32> to vector<64x12xf32>
    %77 = arith.mulf %76, %75 : vector<64x12xf32>
    %78 = arith.mulf %15, %77 : vector<64x12xf32>
    %79 = vector.broadcast %60 : vector<64x1xf32> to vector<64x32xf32>
    %80 = arith.mulf %79, %35 : vector<64x32xf32>
    %81 = tpu.concatenate %80, %78 in 1 : vector<64x32xf32>, vector<64x12xf32> -> vector<64x44xf32>
    %82 = vector.extract_strided_slice %5 {offsets = [0, 0], sizes = [64, 32], strides = [1, 1]} : vector<128x32xf32> to vector<64x32xf32>
    %cst_32 = arith.constant dense<0.000000e+00> : vector<32x44xf32>
    %83 = tpu.matmul %82, %81, %cst_32 {dimension_numbers = #tpu.dot_dimension_numbers<[0], [0], [1], [1], [0, 1, 1, 1], [], []>, precision = #tpu.contract_precision<fp32>} : vector<64x32xf32>, vector<64x44xf32>, vector<32x44xf32> -> vector<32x44xf32>
    %84 = vector.extract_strided_slice %7 {offsets = [0, 0], sizes = [32, 44], strides = [1, 1]} : vector<32x45xf32> to vector<32x44xf32>
    %85 = arith.addf %84, %83 : vector<32x44xf32>
    %c0_33 = arith.constant 0 : index
    %c0_34 = arith.constant 0 : index
    %86 = vector.load %arg7[%c0_33, %c0_34] : memref<32x44xf32, #tpu.memory_space<vmem>>, vector<32x44xf32>
    tpu.vector_store %arg7[%c0_33, %c0_34], %85 {strides = array<i32>} : memref<32x44xf32, #tpu.memory_space<vmem>>, vector<32x44xf32>,
    return
  }
}

</mosaic_0001>

<bundles_post_ra>
// kernel: tpu_custom_call.1
= control target key start
LH: loop header
LB: loop body
LE: loop exit
PB: predicated region body
PF: predicated region fallthrough
CT: control target
= control target key end

     0   :  { %vm166_vm0 = vcmask 1044480   ;;  %vm153_vm1 = vcmask 367616   ;;  %s11800_s0 = inlined_call_operand.vmem [shape: s32[128,1], index: 0, kind: input, shape index: {}]   ;;  %s11801_s1 = inlined_call_operand.vmem [shape: f32[32,45], index: 1, kind: input, shape index: {}]   ;;  %s11802_s2 = inlined_call_operand.vmem [shape: f32[45,108], index: 2, kind: input, shape index: {}]   ;;  %s11803_s3 = inlined_call_operand.vmem [shape: f32[16,64], index: 3, kind: input, shape index: {}]   ;;  %s11804_s4 = inlined_call_operand.vmem [shape: f32[12,96], index: 4, kind: input, shape index: {}]   ;;  %s11805_s5 = inlined_call_operand.vmem [shape: f32[48,16], index: 5, kind: input, shape index: {}]   ;;  %s11806_s6 = inlined_call_operand.vmem [shape: f32[33,44], index: 6, kind: input, shape index: {}]   ;;  %s11807_s7 = inlined_call_operand.hbm [shape: f32[32,44], index: 7, kind: output, shape index: {0}]   ;;  %s11808_s8 = inlined_call_operand.vmem [shape: f32[64,1], index: 8, kind: output, shape index: {1}]  }
   0x1   :  { %v152_v0 = vld [vmem:[%s11802_s2 + $0x28] sm:$0x1f]  ;;  %v151_v1 = vld [vmem:[%s11802_s2 + $0x20] sm:$0xff]  ;;  %v150_v2 = vld [vmem:[%s11802_s2 + $0x18] sm:$0xff] }
   0x2   :  { %v168_v3 = vsel %vm166_vm0, %v152_v0, 0  ;;  %v9153_v4 = vand.u32 4294901760, %v151_v1  ;;  %v9155_v5 = vand.u32 4294901760, %v150_v2  ;;  %v149_v6 = vld [vmem:[%s11802_s2 + $0x10] sm:$0xff]  ;;  %v148_v7 = vld [vmem:[%s11802_s2 + $0x8] sm:$0xff]  ;;  %v147_v8 = vld [vmem:[%s11802_s2] sm:$0xff] }
   0x3   :  { %v9166_v9 = vand.u32 4294901760, %v168_v3  ;;  %v9168_v10 = vand.u32 4294901760, %v149_v6  ;;  %v9170_v11 = vand.u32 4294901760, %v148_v7  ;;  %v9172_v12 = vand.u32 4294901760, %v147_v8  ;;  %v143_v13 = vld [vmem:[%s11801_s1] sm:$0xff]  ;;  %v144_v14 = vld [vmem:[%s11801_s1 + $0x8] sm:$0xff] }
   0x4   :  { %v9181_v15 = vsub.f32 %v151_v1, %v9153_v4  ;;  %v155_v16 = vsel %vm153_vm1, %v143_v13, 0  ;;  %v9185_v17 = vsub.f32 %v150_v2, %v9155_v5  ;;  %v158_v18 = vsel %vm153_vm1, %v144_v14, 0  ;;  %v145_v36 = vld [vmem:[%s11801_s1 + $0x10] sm:$0xff]  ;;  %v146_v37 = vld [vmem:[%s11801_s1 + $0x18] sm:$0xff] }
   0x5   :  { %7993 = vmatprep.subr.mxu0 %v9166_v9  ;;  %v303_v19 = vsub.f32 %v168_v3, %v9166_v9  ;;  %v9190_v20 = vand.u32 4294901760, %v155_v16  ;;  %v9192_v21 = vand.u32 4294901760, %v158_v18  ;;  %v9195_v22 = vsub.f32 %v149_v6, %v9168_v10 }
   0x6   :  { %7994 = vmatpush3.msra.mxu0 %v9166_v9  ;;  %v9199_v23 = vand.u32 4294901760, %v9181_v15  ;;  %v9202_v24 = vand.u32 4294901760, %v9185_v17  ;;  %v9205_v25 = vsub.f32 %v148_v7, %v9170_v11  ;;  %v9224_v31 = vsub.f32 %v147_v8, %v9172_v12 }
   0x7   :  { %7995 = vmatprep.subr.mxu0 %v9153_v4  ;;  %v9208_v26 = vand.u32 4294901760, %v303_v19  ;;  %v9211_v27 = vsub.f32 %v155_v16, %v9190_v20  ;;  %v9214_v28 = vsub.f32 %v158_v18, %v9192_v21  ;;  %8023 = vmatprep.mubr.f32.mxu1 %v9190_v20  ;;  %v9221_v30 = vand.u32 4294901760, %v9195_v22 }
   0x8   :  { %7996 = vmatpush3.msra.mxu0 %v9153_v4  ;;  %v312_v29 = vsub.f32 %v9181_v15, %v9199_v23  ;;  %v319_v34 = vsub.f32 %v9185_v17, %v9202_v24  ;;  %v9240_v38 = vand.u32 4294901760, %v9205_v25 }
   0x9   :  { %7997 = vmatprep.subr.mxu0 %v9155_v5  ;;  %v305_v32 = vsub.f32 %v303_v19, %v9208_v26  ;;  %v243_v33 = vand.u32 4294901760, %v9211_v27  ;;  %v253_v35 = vand.u32 4294901760, %v9214_v28 }
   0xa   :  { %7998 = vmatpush3.msra.mxu0 %v9155_v5 }
   0xb   :  { %14 = vsyncpa [#allocation3], 0  ;;  %7999 = vmatprep.subr.mxu0 %v9168_v10  ;;  %v306_v39 = vand.u32 4294901760, %v305_v32  ;;  %v313_v40 = vand.u32 4294901760, %v312_v29  ;;  %v244_v41 = vsub.f32 %v9211_v27, %v243_v33  ;;  %v254_v42 = vsub.f32 %v9214_v28, %v253_v35  ;;  %v29_v1 = vld [vmem:[%s11800_s0] sm:$0xff]  ;;  %v31_v3 = vld [vmem:[%s11800_s0 + $0x10] sm:$0xff] }
   0xc   :  { %8000 = vmatpush3.msra.mxu0 %v9168_v10  ;;  %v326_v43 = vsub.f32 %v9195_v22, %v9221_v30  ;;  %v9253_v44 = vand.u32 4294901760, %v9224_v31  ;;  %v161_v45 = vsel %vm153_vm1, %v145_v36, 0  ;;  %v164_v46 = vsel %vm153_vm1, %v146_v37, 0  ;;  %v33_v6 = vld [vmem:[%s11800_s0 + $0x20] sm:$0xff]  ;;  %v34_v7 = vld [vmem:[%s11800_s0 + $0x28] sm:$0xff]  ;;  %v35_v8 = vld [vmem:[%s11800_s0 + $0x30] sm:$0xff] }
   0xd   :  { %8001 = vmatprep.subr.mxu0 %v9170_v11  ;;  %8011 = vmatprep.subr.mxu1 %v306_v39  ;;  %v245_v47 = vand.u32 4294901760, %v244_v41  ;;  %v320_v48 = vand.u32 4294901760, %v319_v34  ;;  %v9258_v49 = vand.u32 4294901760, %v161_v45  ;;  %v9260_v50 = vand.u32 4294901760, %v164_v46  ;;  %v40_v13 = vld [vmem:[%s11800_s0 + $0x58] sm:$0xff]  ;;  %v41_v14 = vld [vmem:[%s11800_s0 + $0x60] sm:$0xff] }
   0xe   :  { %8002 = vmatpush3.msra.mxu0 %v9170_v11  ;;  %8012 = vmatpush3.msra.mxu1 %v306_v39  ;;  %v255_v51 = vand.u32 4294901760, %v254_v42  ;;  %v333_v52 = vsub.f32 %v9205_v25, %v9240_v38  ;;  %v327_v55 = vand.u32 4294901760, %v326_v43  ;;  %v340_v56 = vsub.f32 %v9224_v31, %v9253_v44  ;;  %v43_v16 = vld [vmem:[%s11800_s0 + $0x70] sm:$0xff]  ;;  %s9094_s13 = smov 64   ;;  %s9096_s9 = smov [#allocation2]  }
   0xf   :  { %8003 = vmatprep.subr.mxu0 %v9172_v12  ;;  %8013 = vmatprep.subr.mxu1 %v313_v40  ;;  %v9267_v53 = vsub.f32 %v161_v45, %v9258_v49  ;;  %v9270_v54 = vsub.f32 %v164_v46, %v9260_v50  ;;  %v9090_v2 = vmov 0   ;;  %v45_v18 = vlaneseq  ;;  %s7305_s10 = sshll.u32 %s9096_s9, 4  ;;  %s7306_s10 = int_to_ptr.vmem [resolvable:$true] %s7305_s10 }
  0x10   :  { %8004 = vmatpush3.msra.mxu0 %v9172_v12  ;;  %8014 = vmatpush3.msra.mxu1 %v313_v40  ;;  %v334_v59 = vand.u32 4294901760, %v333_v52  ;;  %v341_v62 = vand.u32 4294901760, %v340_v56  ;;  %vm810_vm2 = vcmask 261120   ;;  %p9073_p1 = scmp.lt.s32.totalorder %s7306_s10, %s7306_s10 }
  0x11   :  { %8005 = vmatprep.mubr.f32.mxu0 %v245_v47  ;;  %8015 = vmatprep.subr.mxu1 %v320_v48  ;;  %v263_v57 = vand.u32 4294901760, %v9267_v53  ;;  %v273_v58 = vand.u32 4294901760, %v9270_v54 }
  0x12   :  { %8029 = vmatprep.subr.mxu0 %v303_v19  ;;  %8006 = vmatmul.mubr.f32.vlgmr.msra.gmra.mxu0 %v255_v51 }
  0x13   :  { %8016 = vmatpush3.msra.mxu1 %v320_v48  ;;  %8030 = vmatpush3.msra.mxu0 %v303_v19  ;;  %v264_v60 = vsub.f32 %v9267_v53, %v263_v57  ;;  %v274_v61 = vsub.f32 %v9270_v54, %v273_v58  ;;  %v9400_v19 = vand.u32 127, %v45_v18 }
  0x14   :  { %8017 = vmatprep.subr.mxu1 %v327_v55  ;;  %8031 = vmatprep.subr.mxu0 %v9181_v15 }
  0x15   :  { %8018 = vmatpush3.msra.mxu1 %v327_v55  ;;  %8032 = vmatpush3.msra.mxu0 %v9181_v15  ;;  %v265_v63 = vand.u32 4294901760, %v264_v60  ;;  %v275_v0 = vand.u32 4294901760, %v274_v61  ;;  %v42_v15 = vld [vmem:[%s11800_s0 + $0x68] sm:$0xff]  ;;  %11894 = vst [vmem:[#allocation5_spill] sm:$0xff] %v9400_v19 }
  0x16   :  { %8019 = vmatprep.subr.mxu1 %v334_v59  ;;  %8033 = vmatprep.subr.mxu0 %v9185_v17 }
  0x17   :  { %8020 = vmatpush3.msra.mxu1 %v334_v59  ;;  %8034 = vmatpush3.msra.mxu0 %v9185_v17  ;;  %v44_v17 = vld [vmem:[%s11800_s0 + $0x78] sm:$0xff] }
  0x18   :  { %8021 = vmatprep.subr.mxu1 %v341_v62  ;;  %8035 = vmatprep.subr.mxu0 %v9195_v22 }
  0x19   :  { %8008 = vmatprep.mubr.f32.mxu0 %v265_v63  ;;  %8022 = vmatpush3.msra.mxu1 %v341_v62 }
  0x1a   :  { %8036 = vmatpush3.msra.mxu0 %v9195_v22  ;;  %8024 = vmatmul.mubr.f32.vlgmr.msra.gmra.mxu1 %v9192_v21 }
  0x1b   :  { %8009 = vmatmul.mubr.f32.gmra.mxu0 %v275_v0  ;;  %8037 = vmatprep.subr.mxu0 %v9205_v25 }
  0x1c   :  { %8047 = vmatprep.subr.mxu1 %v9166_v9  ;;  %8038 = vmatpush3.msra.mxu0 %v9205_v25 }
  0x1d   :  { %8048 = vmatpush3.msra.mxu1 %v9166_v9  ;;  %8039 = vmatprep.subr.mxu0 %v9224_v31 }
  0x1e   :  { %8049 = vmatprep.subr.mxu1 %v9153_v4  ;;  %8040 = vmatpush3.msra.mxu0 %v9224_v31 }
  0x1f   :  { %8041 = vmatprep.mubr.f32.mxu0 %v9211_v27  ;;  %8050 = vmatpush3.msra.mxu1 %v9153_v4 }
  0x20   :  { %8026 = vmatprep.mubr.f32.mxu1 %v9258_v49  ;;  %8042 = vmatmul.mubr.f32.vlgmr.msra.gmra.mxu0 %v9214_v28 }
  0x21   :  { %8051 = vmatprep.subr.mxu1 %v9155_v5  ;;  %8065 = vmatprep.subr.mxu0 %v9208_v26 }
  0x22   :  { %8027 = vmatmul.mubr.f32.gmra.mxu1 %v9260_v50  ;;  %8066 = vmatpush3.msra.mxu0 %v9208_v26 }
  0x23   :  { %8052 = vmatpush3.msra.mxu1 %v9155_v5  ;;  %8067 = vmatprep.subr.mxu0 %v9199_v23 }
  0x24   :  { %8053 = vmatprep.subr.mxu1 %v9168_v10  ;;  %8044 = vmatprep.mubr.f32.mxu0 %v9267_v53 }
  0x25   :  { %8054 = vmatpush3.msra.mxu1 %v9168_v10  ;;  %8068 = vmatpush3.msra.mxu0 %v9199_v23 }
  0x26   :  { %8045 = vmatmul.mubr.f32.gmra.mxu0 %v9270_v54  ;;  %8055 = vmatprep.subr.mxu1 %v9170_v11 }
  0x27   :  { %8069 = vmatprep.subr.mxu0 %v9202_v24  ;;  %8056 = vmatpush3.msra.mxu1 %v9170_v11 }
  0x28   :  { %8070 = vmatpush3.msra.mxu0 %v9202_v24  ;;  %8057 = vmatprep.subr.mxu1 %v9172_v12 }
  0x29   :  { %8071 = vmatprep.subr.mxu0 %v9221_v30  ;;  %8058 = vmatpush3.msra.mxu1 %v9172_v12 }
  0x2a   :  { %8059 = vmatprep.mubr.f32.mxu1 %v243_v33  ;;  %8072 = vmatpush3.msra.mxu0 %v9221_v30 }
  0x2b   :  { %8060 = vmatmul.mubr.f32.vlgmr.msra.gmra.mxu1 %v253_v35  ;;  %8073 = vmatprep.subr.mxu0 %v9240_v38 }
  0x2c   :  { %8083 = vmatprep.subr.mxu1 %v9166_v9  ;;  %8074 = vmatpush3.msra.mxu0 %v9240_v38 }
  0x2d   :  { %8084 = vmatpush3.msra.mxu1 %v9166_v9  ;;  %8075 = vmatprep.subr.mxu0 %v9253_v44  ;;  %v36_v9 = vld [vmem:[%s11800_s0 + $0x38] sm:$0xff] }
  0x2e   :  { %8085 = vmatprep.subr.mxu1 %v9153_v4  ;;  %8062 = vmatprep.mubr.f32.mxu1 %v263_v57 }
  0x2f   :  { %8076 = vmatpush3.msra.mxu0 %v9253_v44  ;;  %8077 = vmatprep.mubr.f32.mxu0 %v9190_v20 }
  0x30   :  { %8086 = vmatpush3.msra.mxu1 %v9153_v4  ;;  %8078 = vmatmul.mubr.f32.vlgmr.msra.gmra.mxu0 %v9192_v21  ;;  %v30_v4 = vld [vmem:[%s11800_s0 + $0x8] sm:$0xff] }
  0x31   :  { %8063 = vmatmul.mubr.f32.gmra.mxu1 %v273_v58  ;;  %8087 = vmatprep.subr.mxu1 %v9155_v5 }
  0x32   :  { %8088 = vmatpush3.msra.mxu1 %v9155_v5  ;;  %8080 = vmatprep.mubr.f32.mxu0 %v9258_v49  ;;  %v32_v5 = vld [vmem:[%s11800_s0 + $0x18] sm:$0xff] }
  0x33   :  { %8089 = vmatprep.subr.mxu1 %v9168_v10  ;;  %8095 = vmatprep.mubr.f32.mxu1 %v9190_v20 }
  0x34   :  { %8090 = vmatpush3.msra.mxu1 %v9168_v10  ;;  %8081 = vmatmul.mubr.f32.gmra.mxu0 %v9260_v50  ;;  %v37_v10 = vld [vmem:[%s11800_s0 + $0x40] sm:$0xff] }
  0x35   :  { %8091 = vmatprep.subr.mxu1 %v9170_v11  ;;  %9010 = vset.pattern.permute.xlu0 %v9090_v2 }
  0x36   :  { %8092 = vmatpush3.msra.mxu1 %v9170_v11  ;;  %48 = vperm.xlu0 %9010, %v29_v1   ;;  %v38_v11 = vld [vmem:[%s11800_s0 + $0x48] sm:$0xff] }
  0x37   :  { %8093 = vmatprep.subr.mxu1 %v9172_v12  ;;  %9011 = vset.pattern.permute.xlu1 %v9090_v2 }
  0x38   :  { %8094 = vmatpush3.msra.mxu1 %v9172_v12  ;;  %54 = vperm.xlu1 %9011, %v31_v3   ;;  %v39_v12 = vld [vmem:[%s11800_s0 + $0x50] sm:$0xff] }
  0x39   :  { %8096 = vmatmul.mubr.f32.vlgmr.msra.gmra.mxu1 %v9192_v21  ;;  %v9091_v21 = vmov 0.0  }
  0x3a   :  { %8098 = vmatprep.mubr.f32.mxu1 %v9258_v49  ;;  %51 = vperm.xlu0 %9010, %v30_v4  }
  0x3c   :  { %57 = vperm.xlu1 %9011, %v32_v5  }
  0x3d   :  { %8099 = vmatmul.mubr.f32.gmra.mxu1 %v9260_v50 }
  0x3e   :  { %60 = vperm.xlu0 %9010, %v33_v6  }
  0x40   :  { %63 = vperm.xlu1 %9011, %v34_v7  }
  0x42   :  { %66 = vperm.xlu0 %9010, %v35_v8  }
  0x44   :  { %69 = vperm.xlu1 %9011, %v36_v9  }
  0x46   :  { %72 = vperm.xlu0 %9010, %v37_v10  }
  0x48   :  { %75 = vperm.xlu1 %9011, %v38_v11  }
  0x4a   :  { %78 = vperm.xlu0 %9010, %v39_v12  }
  0x4c   :  { %81 = vperm.xlu1 %9011, %v40_v13  }
  0x4e   :  { %84 = vperm.xlu0 %9010, %v41_v14  }
  0x50   :  { %87 = vperm.xlu1 %9011, %v42_v15  }
  0x52   :  { %90 = vperm.xlu0 %9010, %v43_v16  }
  0x54   :  { %93 = vperm.xlu1 %9011, %v44_v17  }
  0xb1   :  { %v9402_v20 = vpop.permute.xlu0 %48 }
  0xb2   :  { %11895 = vst [vmem:[#allocation6_spill] sm:$0xff] %v9402_v20  ;;  %vm95_vm3 = vcmp.eq.s32.totalorder %v9400_v19, %v9402_v20 }
  0xb3   :  { %v9410_v22 = vsel %vm95_vm3, 1.0, %v9091_v21  ;;  %v9412_v23 = vpop.permute.xlu1 %54 }
  0xb4   :  { %11896 = vst [vmem:[#allocation7_spill] sm:$0xff] %v9410_v22  ;;  %11897 = vst [vmem:[#allocation8_spill] sm:$0xff] %v9412_v23  ;;  %8141 = vmatprep.mubr.msk.f32.mxu1 %vm810_vm2, %v9410_v22  ;;  %v812_v24 = vsel %vm810_vm2, %v9410_v22, 0  ;;  %vm97_vm12 = vcmp.eq.s32.totalorder %v9400_v19, %v9412_v23 }
  0xb5   :  { %v9418_v25 = vpop.permute.xlu0 %51  ;;  %v9420_v26 = vsub.f32 %v812_v24, %v812_v24  ;;  %v9476_v3 = vsel %vm97_vm12, 1.0, %v9091_v21 }
  0xb6   :  { %11898 = vst [vmem:[#allocation9_spill] sm:$0xff] %v9418_v25  ;;  %vm96_vm13 = vcmp.eq.s32.totalorder %v9400_v19, %v9418_v25  ;;  %11904 = vst [vmem:[#allocation15_spill] sm:$0xff] %v9476_v3  ;;  %v818_v17 = vsel %vm810_vm2, %v9476_v3, 0 }
  0xb7   :  { %v9422_v27 = vpop.permute.xlu1 %57  ;;  %v930_v28 = vand.u32 4294901760, %v9420_v26  ;;  %v9482_v4 = vsel %vm96_vm13, 1.0, %v9091_v21 }
  0xb8   :  { %11899 = vst [vmem:[#allocation10_spill] sm:$0xff] %v9422_v27  ;;  %11905 = vst [vmem:[#allocation16_spill] sm:$0xff] %v9482_v4  ;;  %vm98_vm14 = vcmp.eq.s32.totalorder %v9400_v19, %v9422_v27  ;;  %v815_v11 = vsel %vm810_vm2, %v9482_v4, 0 }
  0xb9   :  { %v9425_v29 = vpop.permute.xlu0 %60  ;;  %v931_v30 = vsub.f32 %v9420_v26, %v930_v28  ;;  %v9492_v14 = vsel %vm98_vm14, 1.0, %v9091_v21 }
  0xba   :  { %11900 = vst [vmem:[#allocation11_spill] sm:$0xff] %v9425_v29  ;;  %11906 = vst [vmem:[#allocation17_spill] sm:$0xff] %v9492_v14  ;;  %vm99_vm15 = vcmp.eq.s32.totalorder %v9400_v19, %v9425_v29 }
  0xbb   :  { %v9430_v31 = vpop.permute.xlu1 %63  ;;  %v932_v32 = vand.u32 4294901760, %v931_v30 }
  0xbc   :  { %11901 = vst [vmem:[#allocation12_spill] sm:$0xff] %v9430_v31  ;;  %vm100_vm0 = vcmp.eq.s32.totalorder %v9400_v19, %v9430_v31 }
  0xbd   :  { %v9432_v33 = vpop.permute.xlu0 %66  ;;  %8109 = vmatprep.mubr.f32.mxu0 %v932_v32  ;;  %v9498_v32 = vsub.f32 %v815_v11, %v815_v11 }
  0xbe   :  { %11902 = vst [vmem:[#allocation13_spill] sm:$0xff] %v9432_v33  ;;  %vm101_vm1 = vcmp.eq.s32.totalorder %v9400_v19, %v9432_v33 }
  0xbf   :  { %v9434_v34 = vpop.permute.xlu1 %69 }
  0xc0   :  { %11903 = vst [vmem:[#allocation14_spill] sm:$0xff] %v9434_v34 }
  0xc1   :  { %v73_v35 = vpop.permute.xlu0 %72 }
  0xc2   :  { %vm103_vm4 = vcmp.eq.s32.totalorder %v9400_v19, %v73_v35 }
  0xc3   :  { %v9438_v36 = vsel %vm103_vm4, 1.0, %v9091_v21  ;;  %v76_v37 = vpop.permute.xlu1 %75  ;;  %vm102_vm4 = vcmp.eq.s32.totalorder %v9400_v19, %v9434_v34 }
  0xc4   :  { %vm104_vm5 = vcmp.eq.s32.totalorder %v9400_v19, %v76_v37 }
  0xc5   :  { %v9442_v38 = vsel %vm104_vm5, 1.0, %v9091_v21  ;;  %v79_v39 = vpop.permute.xlu0 %78  ;;  %vm2040_vm5 = vcmask 1043456  }
  0xc6   :  { %vm105_vm6 = vcmp.eq.s32.totalorder %v9400_v19, %v79_v39 }
  0xc7   :  { %v9446_v40 = vsel %vm105_vm6, 1.0, %v9091_v21  ;;  %v82_v41 = vpop.permute.xlu1 %81  ;;  %vm2023_vm6 = vcmask 97280  }
  0xc8   :  { %vm106_vm7 = vcmp.eq.s32.totalorder %v9400_v19, %v82_v41 }
  0xc9   :  { %v9450_v42 = vsel %vm106_vm7, 1.0, %v9091_v21  ;;  %v85_v43 = vpop.permute.xlu0 %84  ;;  %vm2850_vm7 = vcmask 392192  }
  0xca   :  { %vm107_vm8 = vcmp.eq.s32.totalorder %v9400_v19, %v85_v43 }
  0xcb   :  { %v9454_v44 = vsel %vm107_vm8, 1.0, %v9091_v21  ;;  %v88_v45 = vpop.permute.xlu1 %87  ;;  %vm3695_vm8 = vcmask 130048  }
  0xcc   :  { %vm108_vm9 = vcmp.eq.s32.totalorder %v9400_v19, %v88_v45  ;;  %v821_v45 = vsel %vm810_vm2, %v9492_v14, 0 }
  0xcd   :  { %v9458_v46 = vsel %vm108_vm9, 1.0, %v9091_v21  ;;  %v91_v47 = vpop.permute.xlu0 %90  ;;  %vm6612_vm9 = vcmask 523264  }
  0xce   :  { %vm109_vm10 = vcmp.eq.s32.totalorder %v9400_v19, %v91_v47  ;;  %v9506_v47 = vsel %vm99_vm15, 1.0, %v9091_v21 }
  0xcf   :  { %v9462_v48 = vsel %vm109_vm10, 1.0, %v9091_v21  ;;  %v94_v49 = vpop.permute.xlu1 %93  ;;  %11907 = vst [vmem:[#allocation18_spill] sm:$0xff] %v9506_v47 }
  0xd0   :  { %vm110_vm11 = vcmp.eq.s32.totalorder %v9400_v19, %v94_v49 }
  0xd1   :  { %v9466_v50 = vsel %vm110_vm11, 1.0, %v9091_v21 }
  0xd2   :  { %v8007_v51 = vpop.f32.mrf.mxu0 }
  0xd4   :  { %v247_v52 = vpop.f32.mrf.mxu0 }
  0xda   :  { %v8025_v54 = vpop.f32.mrf.mxu1 }
  0xdb   :  { %v8010_v53 = vpop.f32.mrf.mxu0  ;;  %v385_v2 = vadd.f32 %v8025_v54, %v8007_v51 }
  0xdc   :  { %v378_v56 = vpop.f32.mrf.mxu1 }
  0xdd   :  { %v267_v55 = vpop.f32.mrf.mxu0  ;;  %v379_v7 = vadd.f32 %v378_v56, %v247_v52  ;;  %v9508_v52 = vsub.f32 %v818_v17, %v818_v17  ;;  %v11812_v56 = vand.u32 4294901760, %v9498_v32 }
  0xe0   :  { %v8043_v57 = vpop.f32.mrf.mxu0 }
  0xe1   :  { %v488_v8 = vadd.f32 %v8043_v57, %v385_v2 }
  0xe2   :  { %v8028_v58 = vpop.f32.mrf.mxu1  ;;  %v480_v59 = vpop.f32.mrf.mxu0 }
  0xe3   :  { %v397_v9 = vadd.f32 %v8028_v58, %v8010_v53  ;;  %v481_v10 = vadd.f32 %v480_v59, %v379_v7  ;;  %v824_v59 = vsel %vm810_vm2, %v9506_v47, 0 }
  0xe4   :  { %v390_v60 = vpop.f32.mrf.mxu1 }
  0xe5   :  { %v391_v12 = vadd.f32 %v390_v60, %v267_v55 }
  0xe6   :  { %v8046_v61 = vpop.f32.mrf.mxu0 }
  0xe7   :  { %v502_v18 = vadd.f32 %v8046_v61, %v397_v9  ;;  %v9540_v9 = vsub.f32 %v824_v59, %v824_v59 }
  0xe8   :  { %v494_v63 = vpop.f32.mrf.mxu0 }
  0xe9   :  { %v495_v37 = vadd.f32 %v494_v63, %v391_v12 }
  0xeb   :  { %v8061_v62 = vpop.f32.mrf.mxu1 }
  0xec   :  { %v589_v13 = vadd.f32 %v8061_v62, %v488_v8  ;;  %v9521_v62 = vsel %vm100_vm0, 1.0, %v9091_v21  ;;  %v941_v8 = vsub.f32 %v9498_v32, %v11812_v56  ;;  %v845_v56 = vsel %vm810_vm2, %v9450_v42, 0 }
  0xed   :  { %v580_v0 = vpop.f32.mrf.mxu1  ;;  %11908 = vst [vmem:[#allocation19_spill] sm:$0xff] %v9521_v62 }
  0xee   :  { %v581_v24 = vadd.f32 %v580_v0, %v481_v10  ;;  %v11811_v0 = vand.u32 4294901760, %v9508_v52  ;;  %v9546_v10 = vsel %vm101_vm1, 1.0, %v9091_v21 }
  0xef   :  { %11909 = vst [vmem:[#allocation20_spill] sm:$0xff] %v9546_v10 }
  0xf0   :  { %v8079_v1 = vpop.f32.mrf.mxu0 }
  0xf1   :  { %v8064_v5 = vpop.f32.mrf.mxu1  ;;  %v700_v30 = vadd.f32 %v8079_v1, %v589_v13  ;;  %v9526_v1 = vsub.f32 %v821_v45, %v821_v45  ;;  %v827_v13 = vsel %vm810_vm2, %v9521_v62, 0 }
  0xf2   :  { %v693_v6 = vpop.f32.mrf.mxu0  ;;  %v605_v39 = vadd.f32 %v8064_v5, %v502_v18 }
  0xf3   :  { %v596_v15 = vpop.f32.mrf.mxu1  ;;  %v694_v41 = vadd.f32 %v693_v6, %v581_v24 }
  0xf4   :  { %v8082_v16 = vpop.f32.mrf.mxu0  ;;  %v597_v53 = vadd.f32 %v596_v15, %v495_v37  ;;  %v9558_v15 = vsel %vm102_vm4, 1.0, %v9091_v21  ;;  %v830_v21 = vsel %vm810_vm2, %v9546_v10, 0 }
  0xf5   :  { %v712_v54 = vadd.f32 %v8082_v16, %v605_v39  ;;  %11910 = vst [vmem:[#allocation21_spill] sm:$0xff] %v9558_v15  ;;  %v11810_v16 = vand.u32 4294901760, %v9526_v1  ;;  %v11809_v39 = vand.u32 4294901760, %v9540_v9  ;;  %v9598_v59 = vsub.f32 %v830_v21, %v830_v21 }
  0xf6   :  { %v705_v49 = vpop.f32.mrf.mxu0 }
  0xf7   :  { %v706_v60 = vadd.f32 %v705_v49, %v597_v53  ;;  %v9585_v49 = vsub.f32 %v827_v13, %v827_v13  ;;  %v961_v53 = vsub.f32 %v9526_v1, %v11810_v16  ;;  %v971_v13 = vsub.f32 %v9540_v9, %v11809_v39 }
  0xf9   :  { %v8097_v35 = vpop.f32.mrf.mxu1  ;;  %v980_v21 = vand.u32 4294901760, %v9585_v49 }
  0xfa   :  { %v795_v43 = vadd.f32 %v8097_v35, %v700_v30  ;;  %v951_v30 = vsub.f32 %v9508_v52, %v11811_v0  ;;  %v942_v35 = vand.u32 4294901760, %v941_v8 }
  0xfb   :  { %v788_v51 = vpop.f32.mrf.mxu1 }
  0xfc   :  { %v789_v55 = vadd.f32 %v788_v51, %v694_v41  ;;  %v9513_v57 = vand.u32 4294901760, %v795_v43  ;;  %v833_v41 = vsel %vm810_vm2, %v9558_v15, 0  ;;  %v836_v51 = vsel %vm810_vm2, %v9438_v36, 0 }
  0xfd   :  { %v8100_v58 = vpop.f32.mrf.mxu1 }
  0xfe   :  { %v807_v61 = vadd.f32 %v8100_v58, %v712_v54  ;;  %v9530_v2 = vand.u32 4294901760, %v789_v55  ;;  %v9535_v7 = vsub.f32 %v795_v43, %v9513_v57 }
  0xff   :  { %v800_v63 = vpop.f32.mrf.mxu1 }
 0x100   :  { %v9532_v5 = vand.u32 4294901760, %v807_v61  ;;  %v801_v6 = vadd.f32 %v800_v63, %v706_v60  ;;  %v9563_v17 = vsub.f32 %v789_v55, %v9530_v2  ;;  %v9576_v37 = vand.u32 4294901760, %v9535_v7 }
 0x101   :  { %v952_v60 = vand.u32 4294901760, %v951_v30  ;;  %v9603_v63 = vsub.f32 %v833_v41, %v833_v41  ;;  %v962_v30 = vand.u32 4294901760, %v961_v53  ;;  %v842_v41 = vsel %vm810_vm2, %v9446_v40, 0 }
 0x102   :  { %v1114_v11 = vsub.f32 %v807_v61, %v9532_v5  ;;  %v9549_v12 = vand.u32 4294901760, %v801_v6  ;;  %8101 = vmatprep.subr.mxu0 %v9532_v5  ;;  %v9596_v58 = vand.u32 4294901760, %v9563_v17  ;;  %v1130_v61 = vsub.f32 %v9535_v7, %v9576_v37 }
 0x103   :  { %8102 = vmatpush3.msra.mxu0 %v9532_v5  ;;  %v1000_v39 = vand.u32 4294901760, %v9603_v63  ;;  %v972_v53 = vand.u32 4294901760, %v971_v13  ;;  %v9625_v0 = vsub.f32 %v842_v41, %v842_v41  ;;  %v9639_v13 = vsub.f32 %v845_v56, %v845_v56 }
 0x104   :  { %v1121_v18 = vsub.f32 %v801_v6, %v9549_v12  ;;  %8103 = vmatprep.subr.mxu0 %v9549_v12  ;;  %v9567_v24 = vand.u32 4294901760, %v1114_v11  ;;  %v9605_v6 = vsub.f32 %v836_v51, %v836_v51  ;;  %v990_v51 = vand.u32 4294901760, %v9598_v59 }
 0x105   :  { %8104 = vmatpush3.msra.mxu0 %v9549_v12  ;;  %v11814_v56 = vand.u32 4294901760, %v9625_v0 }
 0x106   :  { %8105 = vmatprep.subr.mxu0 %v9513_v57  ;;  %v1116_v43 = vsub.f32 %v1114_v11, %v9567_v24  ;;  %v9583_v45 = vand.u32 4294901760, %v1121_v18 }
 0x107   :  { %8106 = vmatpush3.msra.mxu0 %v9513_v57 }
 0x108   :  { %8107 = vmatprep.subr.mxu0 %v9530_v2  ;;  %v1117_v54 = vand.u32 4294901760, %v1116_v43  ;;  %v1123_v55 = vsub.f32 %v1121_v18, %v9583_v45  ;;  %v839_v43 = vsel %vm810_vm2, %v9442_v38, 0 }
 0x109   :  { %8108 = vmatpush3.msra.mxu0 %v9530_v2  ;;  %v9619_v16 = vsub.f32 %v839_v43, %v839_v43 }
 0x10a   :  { %8110 = vmatmul.mubr.f32.vlgmr.msra.gmra.mxu0 %v942_v35  ;;  %8133 = vmatprep.subr.mxu1 %v1117_v54  ;;  %v1124_v8 = vand.u32 4294901760, %v1123_v55  ;;  %v1137_v35 = vsub.f32 %v9563_v17, %v9596_v58  ;;  %v1131_v55 = vand.u32 4294901760, %v1130_v61  ;;  %v991_v61 = vsub.f32 %v9598_v59, %v990_v51 }
 0x10b   :  { %8165 = vmatprep.subr.mxu0 %v1114_v11  ;;  %8134 = vmatpush3.msra.mxu1 %v1117_v54  ;;  %v11813_v54 = vand.u32 4294901760, %v9605_v6  ;;  %v1020_v41 = vand.u32 4294901760, %v9619_v16 }
 0x10c   :  { %8166 = vmatpush3.msra.mxu0 %v1114_v11  ;;  %8135 = vmatprep.subr.mxu1 %v1124_v8  ;;  %v981_v11 = vsub.f32 %v9585_v49, %v980_v21 }
 0x10d   :  { %8167 = vmatprep.subr.mxu0 %v1121_v18  ;;  %8112 = vmatprep.mubr.f32.mxu0 %v952_v60  ;;  %v848_v60 = vsel %vm810_vm2, %v9454_v44, 0 }
 0x10e   :  { %8136 = vmatpush3.msra.mxu1 %v1124_v8  ;;  %8168 = vmatpush3.msra.mxu0 %v1121_v18  ;;  %v1138_v18 = vand.u32 4294901760, %v1137_v35  ;;  %v1001_v8 = vsub.f32 %v9603_v63, %v1000_v39  ;;  %v982_v43 = vand.u32 4294901760, %v981_v11  ;;  %v9646_v35 = vsub.f32 %v848_v60, %v848_v60 }
 0x10f   :  { %8113 = vmatmul.mubr.f32.gmra.mxu0 %v962_v30  ;;  %8137 = vmatprep.subr.mxu1 %v1131_v55  ;;  %v1011_v30 = vsub.f32 %v9605_v6, %v11813_v54 }
 0x110   :  { %8169 = vmatprep.subr.mxu0 %v9535_v7  ;;  %8115 = vmatprep.mubr.f32.mxu0 %v972_v53  ;;  %v992_v53 = vand.u32 4294901760, %v991_v61  ;;  %v1002_v11 = vand.u32 4294901760, %v1001_v8  ;;  %v857_v61 = vsel %vm810_vm2, %v9466_v50, 0  ;;  %v1031_v8 = vsub.f32 %v9625_v0, %v11814_v56 }
 0x111   :  { %8138 = vmatpush3.msra.mxu1 %v1131_v55  ;;  %8170 = vmatpush3.msra.mxu0 %v9535_v7  ;;  %v851_v7 = vsel %vm810_vm2, %v9458_v46, 0  ;;  %v854_v55 = vsel %vm810_vm2, %v9462_v48, 0 }
 0x112   :  { %8139 = vmatprep.subr.mxu1 %v1138_v18  ;;  %8171 = vmatprep.subr.mxu0 %v9563_v17  ;;  %v9658_v60 = vsub.f32 %v851_v7, %v851_v7  ;;  %v9666_v54 = vsub.f32 %v854_v55, %v854_v55  ;;  %v11815_v7 = vand.u32 4294901760, %v9646_v35 }
 0x113   :  { %8140 = vmatpush3.msra.mxu1 %v1138_v18  ;;  %8172 = vmatpush3.msra.mxu0 %v9563_v17  ;;  %v1012_v17 = vand.u32 4294901760, %v1011_v30  ;;  %v1021_v18 = vsub.f32 %v9619_v16, %v1020_v41  ;;  %v9677_v30 = vsub.f32 %v857_v61, %v857_v61 }
 0x114   :  { %8116 = vmatmul.mubr.f32.gmra.mxu0 %v982_v43  ;;  %8142 = vmatmul.mubr.msk.f32.vlgmr.msra.gmra.mxu1 %vm810_vm2, %v9482_v4  ;;  %v11816_v43 = vand.u32 4294901760, %v9639_v13  ;;  %v11817_v56 = vand.u32 4294901760, %v9658_v60  ;;  %v1070_v61 = vand.u32 4294901760, %v9666_v54 }
 0x115   :  { %8197 = vmatprep.subr.mxu1 %v9532_v5  ;;  %8229 = vmatprep.subr.mxu0 %v9567_v24  ;;  %v1022_v55 = vand.u32 4294901760, %v1021_v18 }
 0x116   :  { %8118 = vmatprep.mubr.f32.mxu0 %v992_v53  ;;  %8144 = vmatprep.mubr.msk.f32.mxu1 %vm810_vm2, %v9476_v3  ;;  %v1041_v53 = vsub.f32 %v9639_v13, %v11816_v43 }
 0x117   :  { %8198 = vmatpush3.msra.mxu1 %v9532_v5 }
 0x118   :  { %8199 = vmatprep.subr.mxu1 %v9549_v12  ;;  %8119 = vmatmul.mubr.f32.gmra.mxu0 %v1002_v11  ;;  %v1032_v11 = vand.u32 4294901760, %v1031_v8  ;;  %v1042_v18 = vand.u32 4294901760, %v1041_v53  ;;  %v1061_v8 = vsub.f32 %v9658_v60, %v11817_v56 }
 0x119   :  { %8200 = vmatpush3.msra.mxu1 %v9549_v12  ;;  %8121 = vmatprep.mubr.f32.mxu0 %v1012_v17  ;;  %v1051_v17 = vsub.f32 %v9646_v35, %v11815_v7  ;;  %v1080_v7 = vand.u32 4294901760, %v9677_v30 }
 0x11a   :  { %8145 = vmatmul.mubr.msk.f32.gmra.mxu1 %vm810_vm2, %v9492_v14  ;;  %8201 = vmatprep.subr.mxu1 %v9513_v57  ;;  %v1062_v53 = vand.u32 4294901760, %v1061_v8 }
 0x11b   :  { %8147 = vmatprep.mubr.msk.f32.mxu1 %vm810_vm2, %v9506_v47  ;;  %8202 = vmatpush3.msra.mxu1 %v9513_v57  ;;  %v1052_v43 = vand.u32 4294901760, %v1051_v17 }
 0x11c   :  { %8203 = vmatprep.subr.mxu1 %v9530_v2  ;;  %8122 = vmatmul.mubr.f32.gmra.mxu0 %v1022_v55  ;;  %v1071_v55 = vsub.f32 %v9666_v54, %v1070_v61 }
 0x11d   :  { %8204 = vmatpush3.msra.mxu1 %v9530_v2  ;;  %8124 = vmatprep.mubr.f32.mxu0 %v1032_v11  ;;  %v1081_v11 = vsub.f32 %v9677_v30, %v1080_v7 }
 0x11e   :  { %8148 = vmatmul.mubr.msk.f32.gmra.mxu1 %vm810_vm2, %v9521_v62  ;;  %8261 = vmatprep.subr.mxu1 %v9532_v5  ;;  %v1072_v56 = vand.u32 4294901760, %v1071_v55 }
 0x11f   :  { %8150 = vmatprep.mubr.msk.f32.mxu1 %vm810_vm2, %v9546_v10  ;;  %v1082_v17 = vand.u32 4294901760, %v1081_v11 }
 0x120   :  { %8125 = vmatmul.mubr.f32.gmra.mxu0 %v1042_v18 }
 0x121   :  { %8127 = vmatprep.mubr.f32.mxu0 %v1052_v43 }
 0x122   :  { %8151 = vmatmul.mubr.msk.f32.gmra.mxu1 %vm810_vm2, %v9558_v15 }
 0x123   :  { %8153 = vmatprep.mubr.msk.f32.mxu1 %vm810_vm2, %v9438_v36 }
 0x124   :  { %8128 = vmatmul.mubr.f32.gmra.mxu0 %v1062_v53 }
 0x125   :  { %8130 = vmatprep.mubr.f32.mxu0 %v1072_v56 }
 0x126   :  { %8154 = vmatmul.mubr.msk.f32.gmra.mxu1 %vm810_vm2, %v9442_v38 }
 0x127   :  { %8156 = vmatprep.mubr.msk.f32.mxu1 %vm810_vm2, %v9446_v40 }
 0x128   :  { %8131 = vmatmul.mubr.f32.gmra.mxu0 %v1082_v17 }
 0x129   :  { %8173 = vmatprep.mubr.f32.mxu0 %v9420_v26  ;;  %v11913_v26 = vand.u32 4294901760, %v9526_v1 }
 0x12a   :  { %8157 = vmatmul.mubr.msk.f32.gmra.mxu1 %vm810_vm2, %v9450_v42 }
 0x12b   :  { %8159 = vmatprep.mubr.msk.f32.mxu1 %vm810_vm2, %v9454_v44 }
 0x12c   :  { %8174 = vmatmul.mubr.f32.vlgmr.msra.gmra.mxu0 %v9498_v32 }
 0x12d   :  { %8230 = vmatpush3.msra.mxu0 %v9567_v24  ;;  %8176 = vmatprep.mubr.f32.mxu0 %v9508_v52  ;;  %v11911_v24 = vand.u32 4294901760, %v9498_v32  ;;  %v11915_v32 = vand.u32 4294901760, %v9605_v6 }
 0x12e   :  { %8160 = vmatmul.mubr.msk.f32.gmra.mxu1 %vm810_vm2, %v9458_v46  ;;  %8231 = vmatprep.subr.mxu0 %v9583_v45 }
 0x12f   :  { %8162 = vmatprep.mubr.msk.f32.mxu1 %vm810_vm2, %v9462_v48  ;;  %8232 = vmatpush3.msra.mxu0 %v9583_v45 }
 0x130   :  { %8233 = vmatprep.subr.mxu0 %v9576_v37  ;;  %8177 = vmatmul.mubr.f32.gmra.mxu0 %v9526_v1  ;;  %v11918_v1 = vand.u32 4294901760, %v9646_v35 }
 0x131   :  { %8234 = vmatpush3.msra.mxu0 %v9576_v37  ;;  %8179 = vmatprep.mubr.f32.mxu0 %v9540_v9  ;;  %v11912_v37 = vand.u32 4294901760, %v9508_v52  ;;  %v11916_v52 = vand.u32 4294901760, %v9625_v0 }
 0x132   :  { %8163 = vmatmul.mubr.msk.f32.gmra.mxu1 %vm810_vm2, %v9466_v50  ;;  %8235 = vmatprep.subr.mxu0 %v9596_v58 }
 0x133   :  { %8205 = vmatprep.mubr.f32.mxu1 %v930_v28  ;;  %8236 = vmatpush3.msra.mxu0 %v9596_v58  ;;  %v11914_v28 = vand.u32 4294901760, %v9540_v9 }
 0x134   :  { %8180 = vmatmul.mubr.f32.gmra.mxu0 %v9585_v49 }
 0x135   :  { %8182 = vmatprep.mubr.f32.mxu0 %v9598_v59 }
 0x136   :  { %8206 = vmatmul.mubr.f32.vlgmr.msra.gmra.mxu1 %v11911_v24 }
 0x137   :  { %8262 = vmatpush3.msra.mxu1 %v9532_v5  ;;  %8208 = vmatprep.mubr.f32.mxu1 %v11912_v37 }
 0x138   :  { %8263 = vmatprep.subr.mxu1 %v9549_v12  ;;  %8183 = vmatmul.mubr.f32.gmra.mxu0 %v9603_v63 }
 0x139   :  { %8264 = vmatpush3.msra.mxu1 %v9549_v12  ;;  %8185 = vmatprep.mubr.f32.mxu0 %v9605_v6 }
 0x13a   :  { %8265 = vmatprep.subr.mxu1 %v9513_v57  ;;  %8209 = vmatmul.mubr.f32.gmra.mxu1 %v11913_v26 }
 0x13b   :  { %8266 = vmatpush3.msra.mxu1 %v9513_v57  ;;  %8211 = vmatprep.mubr.f32.mxu1 %v11914_v28  ;;  %v11917_v57 = vand.u32 4294901760, %v9639_v13 }
 0x13c   :  { %8267 = vmatprep.subr.mxu1 %v9530_v2  ;;  %8186 = vmatmul.mubr.f32.gmra.mxu0 %v9619_v16 }
 0x13d   :  { %8268 = vmatpush3.msra.mxu1 %v9530_v2  ;;  %8188 = vmatprep.mubr.f32.mxu0 %v9625_v0  ;;  %v11919_v0 = vand.u32 4294901760, %v9658_v60 }
 0x13e   :  { %8212 = vmatmul.mubr.f32.gmra.mxu1 %v980_v21 }
 0x13f   :  { %8214 = vmatprep.mubr.f32.mxu1 %v990_v51 }
 0x140   :  { %8189 = vmatmul.mubr.f32.gmra.mxu0 %v9639_v13 }
 0x141   :  { %8191 = vmatprep.mubr.f32.mxu0 %v9646_v35 }
 0x142   :  { %8215 = vmatmul.mubr.f32.gmra.mxu1 %v1000_v39 }
 0x143   :  { %8217 = vmatprep.mubr.f32.mxu1 %v11915_v32 }
 0x144   :  { %8192 = vmatmul.mubr.f32.gmra.mxu0 %v9658_v60 }
 0x145   :  { %8194 = vmatprep.mubr.f32.mxu0 %v9666_v54 }
 0x146   :  { %8218 = vmatmul.mubr.f32.gmra.mxu1 %v1020_v41 }
 0x147   :  { %8220 = vmatprep.mubr.f32.mxu1 %v11916_v52 }
 0x148   :  { %8195 = vmatmul.mubr.f32.gmra.mxu0 %v9677_v30 }
 0x149   :  { %8237 = vmatprep.mubr.msk.f32.mxu0 %vm810_vm2, %v9410_v22 }
 0x14a   :  { %8221 = vmatmul.mubr.f32.gmra.mxu1 %v11917_v57 }
 0x14b   :  { %8223 = vmatprep.mubr.f32.mxu1 %v11918_v1 }
 0x14c   :  { %8238 = vmatmul.mubr.msk.f32.vlgmr.msra.gmra.mxu0 %vm810_vm2, %v9482_v4 }
 0x14d   :  { %8240 = vmatprep.mubr.msk.f32.mxu0 %vm810_vm2, %v9476_v3 }
 0x14e   :  { %8224 = vmatmul.mubr.f32.gmra.mxu1 %v11919_v0 }
 0x14f   :  { %8226 = vmatprep.mubr.f32.mxu1 %v1070_v61 }
 0x150   :  { %8241 = vmatmul.mubr.msk.f32.gmra.mxu0 %vm810_vm2, %v9492_v14 }
 0x151   :  { %8243 = vmatprep.mubr.msk.f32.mxu0 %vm810_vm2, %v9506_v47 }
 0x152   :  { %8227 = vmatmul.mubr.f32.gmra.mxu1 %v1080_v7 }
 0x153   :  { %8269 = vmatprep.mubr.msk.f32.mxu1 %vm810_vm2, %v9410_v22 }
 0x154   :  { %8244 = vmatmul.mubr.msk.f32.gmra.mxu0 %vm810_vm2, %v9521_v62 }
 0x155   :  { %8246 = vmatprep.mubr.msk.f32.mxu0 %vm810_vm2, %v9546_v10 }
 0x156   :  { %8270 = vmatmul.mubr.msk.f32.vlgmr.msra.gmra.mxu1 %vm810_vm2, %v9482_v4 }
 0x157   :  { %8272 = vmatprep.mubr.msk.f32.mxu1 %vm810_vm2, %v9476_v3 }
 0x158   :  { %8247 = vmatmul.mubr.msk.f32.gmra.mxu0 %vm810_vm2, %v9558_v15 }
 0x159   :  { %8249 = vmatprep.mubr.msk.f32.mxu0 %vm810_vm2, %v9438_v36 }
 0x15a   :  { %8273 = vmatmul.mubr.msk.f32.gmra.mxu1 %vm810_vm2, %v9492_v14 }
 0x15b   :  { %8275 = vmatprep.mubr.msk.f32.mxu1 %vm810_vm2, %v9506_v47 }
 0x15c   :  { %8250 = vmatmul.mubr.msk.f32.gmra.mxu0 %vm810_vm2, %v9442_v38 }
 0x15d   :  { %8252 = vmatprep.mubr.msk.f32.mxu0 %vm810_vm2, %v9446_v40 }
 0x15e   :  { %8276 = vmatmul.mubr.msk.f32.gmra.mxu1 %vm810_vm2, %v9521_v62 }
 0x15f   :  { %8278 = vmatprep.mubr.msk.f32.mxu1 %vm810_vm2, %v9546_v10 }
 0x160   :  { %8253 = vmatmul.mubr.msk.f32.gmra.mxu0 %vm810_vm2, %v9450_v42 }
 0x161   :  { %8255 = vmatprep.mubr.msk.f32.mxu0 %vm810_vm2, %v9454_v44 }
 0x162   :  { %8279 = vmatmul.mubr.msk.f32.gmra.mxu1 %vm810_vm2, %v9558_v15 }
 0x163   :  { %8281 = vmatprep.mubr.msk.f32.mxu1 %vm810_vm2, %v9438_v36  ;;  %v1998_v36 = vld [vmem:[%s11804_s4 + $0x8] sm:$0xf] }
 0x164   :  { %8256 = vmatmul.mubr.msk.f32.gmra.mxu0 %vm810_vm2, %v9458_v46 }
 0x165   :  { %8258 = vmatprep.mubr.msk.f32.mxu0 %vm810_vm2, %v9462_v48 }
 0x166   :  { %8282 = vmatmul.mubr.msk.f32.gmra.mxu1 %vm810_vm2, %v9442_v38  ;;  %v2042_v38 = vsel %vm2040_vm5, %v1998_v36, 0 }
 0x167   :  { %8284 = vmatprep.mubr.msk.f32.mxu1 %vm810_vm2, %v9446_v40  ;;  %v9860_v40 = vld [vmem:[%s11804_s4] sm:$0xff]  ;;  %s9092_s4 = smov 32  }
 0x168   :  { %8259 = vmatmul.mubr.msk.f32.gmra.mxu0 %vm810_vm2, %v9466_v50 }
 0x16a   :  { %8285 = vmatmul.mubr.msk.f32.gmra.mxu1 %vm810_vm2, %v9450_v42  ;;  %v9862_v42 = vand.u32 4294901760, %v2042_v38 }
 0x16b   :  { %8287 = vmatprep.mubr.msk.f32.mxu1 %vm810_vm2, %v9454_v44 }
 0x16c   :  { %8293 = vmatprep.subr.mxu0 %v9862_v42  ;;  %v9866_v44 = vsub.f32 %v2042_v38, %v9862_v42 }
 0x16d   :  { %8294 = vmatpush3.msra.mxu0 %v9862_v42 }
 0x16e   :  { %8288 = vmatmul.mubr.msk.f32.gmra.mxu1 %vm810_vm2, %v9458_v46  ;;  %11920 = vst [vmem:[#allocation22_spill] sm:$0xff] %v9866_v44  ;;  %v9869_v46 = vand.u32 4294901760, %v9860_v40 }
 0x16f   :  { %8290 = vmatprep.mubr.msk.f32.mxu1 %vm810_vm2, %v9462_v48  ;;  %v9873_v48 = vand.u32 4294901760, %v9866_v44 }
 0x170   :  { %11921 = vst [vmem:[#allocation23_spill] sm:$0xff] %v9869_v46  ;;  %8295 = vmatprep.subr.mxu0 %v9869_v46 }
 0x171   :  { %11922 = vst [vmem:[#allocation24_spill] sm:$0xff] %v9873_v48  ;;  %8296 = vmatpush3.msra.mxu0 %v9869_v46 }
 0x172   :  { %8291 = vmatmul.mubr.msk.f32.gmra.mxu1 %vm810_vm2, %v9466_v50  ;;  %v2223_v50 = vsub.f32 %v9866_v44, %v9873_v48  ;;  %8325 = vmatprep.subr.mxu0 %v9866_v44 }
 0x174   :  { %v2224_v2 = vand.u32 4294901760, %v2223_v50 }
 0x176   :  { %8309 = vmatprep.subr.mxu1 %v2224_v2 }
 0x177   :  { %8310 = vmatpush3.msra.mxu1 %v2224_v2 }
 0x1ca   :  { %v8111_v5 = vpop.f32.mrf.mxu0 }
 0x1cc   :  { %v9880_v9 = vpop.f32.mrf.mxu0 }
 0x1cf   :  { %v8114_v12 = vpop.f32.mrf.mxu0 }
 0x1d1   :  { %v9882_v16 = vpop.f32.mrf.mxu0 }
 0x1d4   :  { %v8117_v39 = vpop.f32.mrf.mxu0  ;;  %v8143_v45 = vpop.f32.mrf.mxu1 }
 0x1d5   :  { %v9884_v49 = vadd.f32 %v8143_v45, %v8111_v5 }
 0x1d6   :  { %v9886_v58 = vpop.f32.mrf.mxu0  ;;  %v9888_v59 = vpop.f32.mrf.mxu1 }
 0x1d8   :  { %v8120_v63 = vpop.f32.mrf.mxu0 }
 0x1da   :  { %v8146_v6 = vpop.f32.mrf.mxu1  ;;  %v9890_v21 = vpop.f32.mrf.mxu0 }
 0x1db   :  { %v9892_v51 = vadd.f32 %v8146_v6, %v8114_v12 }
 0x1dc   :  { %v9894_v54 = vpop.f32.mrf.mxu1  ;;  %v9896_v13 = vpop.f32.mrf.mxu0 }
 0x1de   :  { %v8149_v41 = vpop.f32.mrf.mxu1  ;;  %v9898_v35 = vpop.f32.mrf.mxu0 }
 0x1df   :  { %v9900_v56 = vadd.f32 %v8149_v41, %v8117_v39 }
 0x1e0   :  { %v9902_v60 = vpop.f32.mrf.mxu1  ;;  %v9904_v43 = vpop.f32.mrf.mxu0 }
 0x1e2   :  { %v8152_v7 = vpop.f32.mrf.mxu1  ;;  %v9906_v30 = vpop.f32.mrf.mxu0 }
 0x1e3   :  { %v9908_v61 = vadd.f32 %v8152_v7, %v8120_v63 }
 0x1e4   :  { %v9910_v18 = vpop.f32.mrf.mxu1  ;;  %v9912_v8 = vpop.f32.mrf.mxu0 }
 0x1e6   :  { %v9914_v55 = vpop.f32.mrf.mxu1  ;;  %v9916_v53 = vpop.f32.mrf.mxu0 }
 0x1e8   :  { %v9918_v11 = vpop.f32.mrf.mxu1  ;;  %v9920_v17 = vpop.f32.mrf.mxu0 }
 0x1ea   :  { %v9922_v24 = vpop.f32.mrf.mxu1  ;;  %v9924_v37 = vpop.f32.mrf.mxu0 }
 0x1ec   :  { %v1235_v26 = vpop.f32.mrf.mxu1  ;;  %v8175_v28 = vpop.f32.mrf.mxu0 }
 0x1ee   :  { %v9926_v32 = vpop.f32.mrf.mxu1  ;;  %v9928_v52 = vpop.f32.mrf.mxu0 }
 0x1f0   :  { %v9930_v57 = vpop.f32.mrf.mxu1  ;;  %v9932_v1 = vpop.f32.mrf.mxu0 }
 0x1f2   :  { %v9934_v0 = vpop.f32.mrf.mxu1  ;;  %v9936_v36 = vpop.f32.mrf.mxu0 }
 0x1f4   :  { %v9938_v38 = vpop.f32.mrf.mxu1  ;;  %v9940_v50 = vpop.f32.mrf.mxu0 }
 0x1f6   :  { %v9942_v2 = vpop.f32.mrf.mxu1  ;;  %v9944_v5 = vpop.f32.mrf.mxu0 }
 0x1f8   :  { %v9946_v12 = vpop.f32.mrf.mxu1  ;;  %v9948_v39 = vpop.f32.mrf.mxu0 }
 0x1fa   :  { %v9950_v45 = vpop.f32.mrf.mxu1  ;;  %v9952_v63 = vpop.f32.mrf.mxu0 }
 0x1fc   :  { %v9954_v6 = vpop.f32.mrf.mxu1  ;;  %v8187_v41 = vpop.f32.mrf.mxu0 }
 0x1fe   :  { %v9956_v7 = vpop.f32.mrf.mxu1  ;;  %v1401_v15 = vpop.f32.mrf.mxu0 }
 0x1ff   :  { %11923 = vst [vmem:[#allocation25_spill] sm:$0xff] %v9956_v7 }
 0x200   :  { %v9958_v10 = vpop.f32.mrf.mxu1  ;;  %v9960_v62 = vpop.f32.mrf.mxu0 }
 0x201   :  { %11924 = vst [vmem:[#allocation26_spill] sm:$0xff] %v9958_v10 }
 0x202   :  { %v9962_v47 = vpop.f32.mrf.mxu1  ;;  %v9964_v14 = vpop.f32.mrf.mxu0 }
 0x203   :  { %11925 = vst [vmem:[#allocation27_spill] sm:$0xff] %v9962_v47 }
 0x204   :  { %v9966_v3 = vpop.f32.mrf.mxu1  ;;  %v9968_v4 = vpop.f32.mrf.mxu0 }
 0x205   :  { %11926 = vst [vmem:[#allocation28_spill] sm:$0xff] %v9966_v3 }
 0x206   :  { %v8219_v22 = vpop.f32.mrf.mxu1  ;;  %v9970_v34 = vpop.f32.mrf.mxu0 }
 0x207   :  { %11927 = vst [vmem:[#allocation29_spill] sm:$0xff] %v9970_v34 }
 0x208   :  { %v1591_v23 = vpop.f32.mrf.mxu1  ;;  %v9972_v27 = vpop.f32.mrf.mxu0 }
 0x209   :  { %11928 = vst [vmem:[#allocation30_spill] sm:$0xff] %v9972_v27 }
 0x20a   :  { %v9974_v20 = vpop.f32.mrf.mxu1  ;;  %v9976_v31 = vpop.f32.mrf.mxu0 }
 0x20b   :  { %11929 = vst [vmem:[#allocation31_spill] sm:$0xff] %v9976_v31 }
 0x20c   :  { %v9978_v33 = vpop.f32.mrf.mxu1  ;;  %v8239_v29 = vpop.f32.mrf.mxu0 }
 0x20d   :  { %11930 = vst [vmem:[#allocation32_spill] sm:$0xff] %v9978_v33 }
 0x20e   :  { %v9980_v25 = vpop.f32.mrf.mxu1  ;;  %v9982_v19 = vpop.f32.mrf.mxu0 }
 0x20f   :  { %11931 = vst [vmem:[#allocation33_spill] sm:$0xff] %v9980_v25 }
 0x210   :  { %v9984_v48 = vpop.f32.mrf.mxu1  ;;  %v9986_v44 = vpop.f32.mrf.mxu0 }
 0x211   :  { %11932 = vst [vmem:[#allocation34_spill] sm:$0xff] %v9984_v48 }
 0x212   :  { %v9988_v3 = vpop.f32.mrf.mxu1  ;;  %v9990_v47 = vpop.f32.mrf.mxu0 }
 0x213   :  { %11933 = vst [vmem:[#allocation35_spill] sm:$0xff] %v9988_v3  ;;  %11934 = vst [vmem:[#allocation36_spill] sm:$0xff] %v9990_v47  ;;  %v10008_v3 = vsub.f32 %v9860_v40, %v9869_v46  ;;  %v1212_v40 = vadd.f32 %v9910_v18, %v9890_v21  ;;  %v1230_v46 = vadd.f32 %v9914_v55, %v9896_v13 }
 0x214   :  { %v9992_v27 = vpop.f32.mrf.mxu1  ;;  %v9994_v10 = vpop.f32.mrf.mxu0  ;;  %v1254_v21 = vadd.f32 %v9926_v32, %v9912_v8  ;;  %v1260_v8 = vadd.f32 %v9938_v38, %v9924_v37  ;;  %v1395_v37 = vadd.f32 %v9948_v39, %v9908_v61 }
 0x215   :  { %11935 = vst [vmem:[#allocation37_spill] sm:$0xff] %v9992_v27  ;;  %11936 = vst [vmem:[#allocation38_spill] sm:$0xff] %v9994_v10  ;;  %v10013_v10 = vand.u32 4294901760, %v10008_v3  ;;  %v1409_v18 = vadd.f32 %v8187_v41, %v1230_v46 }
 0x216   :  { %v8271_v31 = vpop.f32.mrf.mxu1  ;;  %v9996_v34 = vpop.f32.mrf.mxu0 }
 0x217   :  { %11937 = vst [vmem:[#allocation39_spill] sm:$0xff] %v9996_v34  ;;  %v1176_v34 = vadd.f32 %v9888_v59, %v9880_v9  ;;  %v1224_v9 = vadd.f32 %v9918_v11, %v9898_v35  ;;  %v1236_v59 = vadd.f32 %v1235_v26, %v9906_v30  ;;  %v1248_v35 = vadd.f32 %v9930_v57, %v9916_v53 }
 0x218   :  { %v9998_v7 = vpop.f32.mrf.mxu1  ;;  %v10000_v25 = vpop.f32.mrf.mxu0  ;;  %v1367_v30 = vadd.f32 %v9932_v1, %v9892_v51  ;;  %v1600_v46 = vadd.f32 %v8219_v22, %v1409_v18  ;;  %v1381_v53 = vadd.f32 %v9940_v50, %v9900_v56  ;;  %v11958_v18 = vld [vmem:[#allocation30_spill] sm:$0xff] }
 0x219   :  { %11938 = vst [vmem:[#allocation40_spill] sm:$0xff] %v9998_v7  ;;  %11939 = vst [vmem:[#allocation41_spill] sm:$0xff] %v10000_v25  ;;  %v1188_v25 = vadd.f32 %v9894_v54, %v9882_v16  ;;  %v1242_v16 = vadd.f32 %v9922_v24, %v9904_v43  ;;  %v1353_v54 = vadd.f32 %v8175_v28, %v9884_v49 }
 0x21a   :  { %v10002_v33 = vpop.f32.mrf.mxu1  ;;  %v10004_v48 = vpop.f32.mrf.mxu0  ;;  %v1346_v13 = vadd.f32 %v9928_v52, %v1176_v34  ;;  %v1266_v43 = vadd.f32 %v9934_v0, %v9920_v17  ;;  %v1552_v56 = vadd.f32 %v9950_v45, %v1367_v30  ;;  %v1416_v52 = vadd.f32 %v9964_v14, %v1236_v59  ;;  %v11950_v45 = vld [vmem:[#allocation29_spill] sm:$0xff]  ;;  %v11952_v41 = vld [vmem:[#allocation36_spill] sm:$0xff] }
 0x21b   :  { %11940 = vst [vmem:[#allocation42_spill] sm:$0xff] %v10002_v33  ;;  %11941 = vst [vmem:[#allocation43_spill] sm:$0xff] %v10004_v48  ;;  %v1200_v48 = vadd.f32 %v9902_v60, %v9886_v58  ;;  %v1360_v49 = vadd.f32 %v9936_v36, %v1188_v25  ;;  %v1536_v34 = vadd.f32 %v9942_v2, %v1353_v54 }
 0x21c   :  { %v10010_v47 = vpop.f32.mrf.mxu1  ;;  %v8251_v27 = vpop.f32.mrf.mxu0  ;;  %v1528_v51 = vadd.f32 %v9946_v12, %v1346_v13  ;;  %v1423_v25 = vadd.f32 %v9960_v62, %v1242_v16  ;;  %v1749_v50 = vadd.f32 %v9986_v44, %v1552_v56  ;;  %v11967_v56 = vld [vmem:[#allocation35_spill] sm:$0xff] }
 0x21d   :  { %11942 = vst [vmem:[#allocation44_spill] sm:$0xff] %v10010_v47  ;;  %v2230_v47 = vsub.f32 %v10008_v3, %v10013_v10  ;;  %v1374_v17 = vadd.f32 %v9944_v5, %v1200_v48  ;;  %v1785_v22 = vadd.f32 %v8251_v27, %v1600_v46  ;;  %v1388_v48 = vadd.f32 %v9952_v63, %v1212_v40  ;;  %v11951_v63 = vld [vmem:[#allocation33_spill] sm:$0xff] }
 0x21e   :  { %v10019_v7 = vpop.f32.mrf.mxu1  ;;  %v1778_v33 = vpop.f32.mrf.mxu0  ;;  %v1616_v62 = vadd.f32 %v9974_v20, %v1423_v25  ;;  %v1731_v1 = vadd.f32 %v9982_v19, %v1528_v51  ;;  %v1437_v27 = vadd.f32 %v9968_v4, %v1254_v21  ;;  %v1430_v4 = vadd.f32 %v11950_v45, %v1248_v35  ;;  %v11957_v21 = vld [vmem:[#allocation26_spill] sm:$0xff] }
 0x21f   :  { %v2231_v55 = vand.u32 4294901760, %v2230_v47  ;;  %v1402_v47 = vadd.f32 %v1401_v15, %v1224_v9  ;;  %v1737_v15 = vadd.f32 %v8239_v29, %v1536_v34  ;;  %v11944_v29 = vld [vmem:[#allocation32_spill] sm:$0xff]  ;;  %v1560_v13 = vadd.f32 %v11957_v21, %v1374_v17  ;;  %v11959_v35 = vld [vmem:[#allocation34_spill] sm:$0xff] }
 0x220   :  { %v10035_v58 = vpop.f32.mrf.mxu1  ;;  %v8254_v60 = vpop.f32.mrf.mxu0  ;;  %v1608_v38 = vadd.f32 %v11944_v29, %v1416_v52  ;;  %v11945_v5 = vld [vmem:[#allocation40_spill] sm:$0xff]  ;;  %v1624_v30 = vadd.f32 %v11959_v35, %v1430_v4  ;;  %v11973_v29 = vld [vmem:[#allocation37_spill] sm:$0xff] }
 0x221   :  { %8311 = vmatprep.subr.mxu1 %v2231_v55  ;;  %v1592_v32 = vadd.f32 %v1591_v23, %v1402_v47  ;;  %v10067_v0 = vadd.f32 %v8271_v31, %v1737_v15  ;;  %v1544_v23 = vadd.f32 %v9954_v6, %v1360_v49  ;;  %v10076_v20 = vadd.f32 %v11945_v5, %v1731_v1  ;;  %v11960_v49 = vld [vmem:[#allocation38_spill] sm:$0xff]  ;;  %v11966_v15 = vld [vmem:[#allocation31_spill] sm:$0xff] }
 0x222   :  { %v10047_v11 = vpop.f32.mrf.mxu1  ;;  %v1790_v24 = vpop.f32.mrf.mxu0  ;;  %8312 = vmatpush3.msra.mxu1 %v2231_v55  ;;  %v1797_v12 = vadd.f32 %v8254_v60, %v1616_v62  ;;  %v1632_v6 = vadd.f32 %v11951_v63, %v1437_v27  ;;  %v11953_v9 = vld [vmem:[#allocation42_spill] sm:$0xff]  ;;  %v1451_v55 = vadd.f32 %v11958_v18, %v1266_v43  ;;  %v11965_v43 = vld [vmem:[#allocation27_spill] sm:$0xff] }
 0x223   :  { %8341 = vmatprep.subr.mxu1 %v9862_v42  ;;  %11943 = vst [vmem:[#allocation45_spill] sm:$0xff] %v10067_v0  ;;  %v1779_v36 = vadd.f32 %v1778_v33, %v1592_v32  ;;  %11946 = vst [vmem:[#allocation32_spill] sm:$0xff] %v10076_v20  ;;  %v11949_v33 = vld [vmem:[#allocation25_spill] sm:$0xff]  ;;  %v1743_v44 = vadd.f32 %v11952_v41, %v1544_v23  ;;  %v10089_v16 = vadd.f32 %v11953_v9, %v1749_v50  ;;  %v11968_v62 = vld [vmem:[#allocation39_spill] sm:$0xff] }
 0x224   :  { %v10057_v26 = vpop.f32.mrf.mxu1  ;;  %v8257_v28 = vpop.f32.mrf.mxu0  ;;  %v1568_v39 = vadd.f32 %v11949_v33, %v1381_v53  ;;  %v1791_v59 = vadd.f32 %v1790_v24, %v1608_v38  ;;  %v11961_v46 = vld [vmem:[#allocation44_spill] sm:$0xff]  ;;  %v1584_v17 = vadd.f32 %v11965_v43, %v1395_v37  ;;  %v1648_v52 = vadd.f32 %v11967_v56, %v1451_v55  ;;  %v11974_v50 = vld [vmem:[#allocation41_spill] sm:$0xff] }
 0x225   :  { %11954 = vst [vmem:[#allocation25_spill] sm:$0xff] %v10089_v16  ;;  %v10104_v53 = vadd.f32 %v11961_v46, %v1743_v44  ;;  %v1809_v51 = vadd.f32 %v8257_v28, %v1632_v6  ;;  %v11972_v37 = vld [vmem:[#allocation28_spill] sm:$0xff] }
 0x226   :  { %v8283_v57 = vpop.f32.mrf.mxu1  ;;  %v1802_v2 = vpop.f32.mrf.mxu0  ;;  %v1761_v34 = vadd.f32 %v11960_v49, %v1568_v39 }
 0x227   :  { %v10069_v61 = vadd.f32 %v8283_v57, %v1785_v22  ;;  %11962 = vst [vmem:[#allocation36_spill] sm:$0xff] %v10104_v53  ;;  %v1444_v22 = vadd.f32 %v11966_v15, %v1260_v8  ;;  %v1755_v57 = vadd.f32 %v11968_v62, %v1560_v13  ;;  %v1576_v8 = vadd.f32 %v11972_v37, %v1388_v48  ;;  %v11978_v48 = vld [vmem:[#allocation43_spill] sm:$0xff] }
 0x228   :  { %v1943_v14 = vpop.f32.mrf.mxu1  ;;  %v8260_v47 = vpop.f32.mrf.mxu0  ;;  %v10119_v28 = vadd.f32 %v10019_v7, %v1761_v34 }
 0x229   :  { %v10080_v19 = vsub.f32 %v10067_v0, %v10069_v61  ;;  %v10082_v31 = vadd.f32 %v1943_v14, %v1779_v36  ;;  %v1803_v36 = vadd.f32 %v1802_v2, %v1624_v30  ;;  %v1640_v38 = vadd.f32 %v11973_v29, %v1444_v22 }
 0x22a   :  { %v8286_v40 = vpop.f32.mrf.mxu1  ;;  %11969 = vst [vmem:[#allocation30_spill] sm:$0xff] %v10119_v28  ;;  %v1773_v14 = vadd.f32 %v11974_v50, %v1584_v17  ;;  %v1814_v5 = vpop.f32.mrf.mxu0  ;;  %v10133_v7 = vadd.f32 %v10035_v58, %v1755_v57  ;;  %v1821_v2 = vadd.f32 %v8260_v47, %v1648_v52  ;;  %v1767_v45 = vadd.f32 %v11978_v48, %v1576_v8  ;;  %v11986_v57 = vld [vmem:[#allocation23_spill] sm:$0xff] }
 0x22b   :  { %11947 = vst [vmem:[#allocation40_spill] sm:$0xff] %v10080_v19  ;;  %11948 = vst [vmem:[#allocation46_spill] sm:$0xff] %v10082_v31  ;;  %v10093_v54 = vsub.f32 %v10076_v20, %v10082_v31  ;;  %v10095_v60 = vadd.f32 %v8286_v40, %v1797_v12  ;;  %2009 = vrot.lane.b32.xlu1 %v10080_v19, %s9092_s4  ;;  %v1815_v6 = vadd.f32 %v1814_v5, %v1640_v38 }
 0x22c   :  { %v1955_v24 = vpop.f32.mrf.mxu1  ;;  %11975 = vst [vmem:[#allocation44_spill] sm:$0xff] %v10133_v7  ;;  %v10145_v63 = vadd.f32 %v10047_v11, %v1773_v14  ;;  %v10156_v40 = vadd.f32 %v10057_v26, %v1767_v45 }
 0x22d   :  { %11955 = vst [vmem:[#allocation29_spill] sm:$0xff] %v10093_v54  ;;  %11956 = vst [vmem:[#allocation33_spill] sm:$0xff] %v10095_v60  ;;  %v10108_v25 = vsub.f32 %v10089_v16, %v10095_v60  ;;  %v10110_v32 = vadd.f32 %v1955_v24, %v1791_v59  ;;  %2007 = vrot.lane.b32.xlu0 %v10093_v54, %s9092_s4 }
 0x22e   :  { %v8289_v1 = vpop.f32.mrf.mxu1  ;;  %11979 = vst [vmem:[#allocation35_spill] sm:$0xff] %v10145_v63  ;;  %11982 = vst [vmem:[#allocation37_spill] sm:$0xff] %v10156_v40 }
 0x22f   :  { %11963 = vst [vmem:[#allocation42_spill] sm:$0xff] %v10108_v25  ;;  %11964 = vst [vmem:[#allocation26_spill] sm:$0xff] %v10110_v32  ;;  %v10123_v23 = vsub.f32 %v10104_v53, %v10110_v32  ;;  %v10125_v27 = vadd.f32 %v8289_v1, %v1809_v51  ;;  %2013 = vrot.lane.b32.xlu1 %v10108_v25, %s9092_s4 }
 0x230   :  { %v1967_v12 = vpop.f32.mrf.mxu1 }
 0x231   :  { %11970 = vst [vmem:[#allocation34_spill] sm:$0xff] %v10123_v23  ;;  %11971 = vst [vmem:[#allocation38_spill] sm:$0xff] %v10125_v27  ;;  %v10137_v33 = vsub.f32 %v10119_v28, %v10125_v27  ;;  %v10139_v39 = vadd.f32 %v1967_v12, %v1803_v36  ;;  %2011 = vrot.lane.b32.xlu0 %v10123_v23, %s9092_s4 }
 0x232   :  { %v8292_v4 = vpop.f32.mrf.mxu1 }
 0x233   :  { %11976 = vst [vmem:[#allocation27_spill] sm:$0xff] %v10137_v33  ;;  %11977 = vst [vmem:[#allocation31_spill] sm:$0xff] %v10139_v39  ;;  %v10149_v58 = vsub.f32 %v10133_v7, %v10139_v39  ;;  %v10151_v41 = vadd.f32 %v8292_v4, %v1821_v2  ;;  %2017 = vrot.lane.b32.xlu1 %v10137_v33, %s9092_s4 }
 0x234   :  { %v1979_v44 = vpop.f32.mrf.mxu1 }
 0x235   :  { %11980 = vst [vmem:[#allocation39_spill] sm:$0xff] %v10149_v58  ;;  %11981 = vst [vmem:[#allocation28_spill] sm:$0xff] %v10151_v41  ;;  %v10160_v9 = vsub.f32 %v10145_v63, %v10151_v41  ;;  %v10162_v11 = vadd.f32 %v1979_v44, %v1815_v6  ;;  %2015 = vrot.lane.b32.xlu0 %v10149_v58, %s9092_s4 }
 0x237   :  { %11983 = vst [vmem:[#allocation41_spill] sm:$0xff] %v10160_v9  ;;  %11984 = vst [vmem:[#allocation43_spill] sm:$0xff] %v10162_v11  ;;  %v10168_v59 = vsub.f32 %v10156_v40, %v10162_v11  ;;  %2021 = vrot.lane.b32.xlu1 %v10160_v9, %s9092_s4 }
 0x239   :  { %11985 = vst [vmem:[#allocation47_spill] sm:$0xff] %v10168_v59  ;;  %2019 = vrot.lane.b32.xlu0 %v10168_v59, %s9092_s4 }
 0x29d   :  { %v2010_v26 = vpop.permute.xlu1 %2009 }
 0x29e   :  { %v2026_v21 = vsel %vm2023_vm6, %v2010_v26, 0 }
 0x29f   :  { %v10175_v13 = vand.u32 4294901760, %v2026_v21  ;;  %v2008_v18 = vpop.permute.xlu0 %2007 }
 0x2a0   :  { %v2024_v55 = vsel %vm2023_vm6, %v2008_v18, 0 }
 0x2a1   :  { %v10179_v35 = vsub.f32 %v2026_v21, %v10175_v13  ;;  %v10181_v30 = vand.u32 4294901760, %v2024_v55  ;;  %v2014_v49 = vpop.permute.xlu1 %2013 }
 0x2a2   :  { %v2030_v34 = vsel %vm2023_vm6, %v2014_v49, 0 }
 0x2a3   :  { %v2123_v47 = vand.u32 4294901760, %v10179_v35  ;;  %v10186_v24 = vsub.f32 %v2024_v55, %v10181_v30  ;;  %v10188_v46 = vand.u32 4294901760, %v2030_v34  ;;  %8313 = vmatprep.mubr.f32.mxu1 %v10181_v30  ;;  %v2012_v51 = vpop.permute.xlu0 %2011 }
 0x2a4   :  { %v2028_v43 = vsel %vm2023_vm6, %v2012_v51, 0  ;;  %8314 = vmatmul.mubr.f32.vlgmr.msra.gmra.mxu1 %v10175_v13 }
 0x2a5   :  { %v2113_v17 = vand.u32 4294901760, %v10186_v24  ;;  %v10195_v15 = vsub.f32 %v2030_v34, %v10188_v46  ;;  %v10197_v22 = vand.u32 4294901760, %v2028_v43  ;;  %v2018_v56 = vpop.permute.xlu1 %2017  ;;  %8342 = vmatpush3.msra.mxu1 %v9862_v42  ;;  %v2124_v52 = vsub.f32 %v10179_v35, %v2123_v47 }
 0x2a6   :  { %v2034_v62 = vsel %vm2023_vm6, %v2018_v56, 0  ;;  %8343 = vmatprep.subr.mxu1 %v11986_v57  ;;  %v11987_v56 = vld [vmem:[#allocation22_spill] sm:$0xff] }
 0x2a7   :  { %v2143_v1 = vand.u32 4294901760, %v10195_v15  ;;  %v10207_v36 = vsub.f32 %v2028_v43, %v10197_v22  ;;  %v10209_v37 = vand.u32 4294901760, %v2034_v62  ;;  %8316 = vmatprep.mubr.f32.mxu1 %v10197_v22  ;;  %v2016_v8 = vpop.permute.xlu0 %2015  ;;  %8344 = vmatpush3.msra.mxu1 %v11986_v57  ;;  %v2114_v38 = vsub.f32 %v10186_v24, %v2113_v17 }
 0x2a8   :  { %v2032_v29 = vsel %vm2023_vm6, %v2016_v8, 0  ;;  %8317 = vmatmul.mubr.f32.gmra.mxu1 %v10188_v46  ;;  %8373 = vmatprep.subr.mxu1 %v9862_v42  ;;  %v2125_v2 = vand.u32 4294901760, %v2124_v52 }
 0x2a9   :  { %v2133_v50 = vand.u32 4294901760, %v10207_v36  ;;  %v10219_v14 = vsub.f32 %v2034_v62, %v10209_v37  ;;  %v10221_v5 = vand.u32 4294901760, %v2032_v29  ;;  %v2022_v12 = vpop.permute.xlu1 %2021  ;;  %v2115_v45 = vand.u32 4294901760, %v2114_v38 }
 0x2aa   :  { %v2038_v48 = vsel %vm2023_vm6, %v2022_v12, 0  ;;  %v2144_v4 = vsub.f32 %v10195_v15, %v2143_v1 }
 0x2ab   :  { %v2163_v6 = vand.u32 4294901760, %v10219_v14  ;;  %v2152_v44 = vsub.f32 %v2032_v29, %v10221_v5  ;;  %v10227_v26 = vand.u32 4294901760, %v2038_v48  ;;  %8319 = vmatprep.mubr.f32.mxu1 %v10221_v5  ;;  %v2020_v21 = vpop.permute.xlu0 %2019  ;;  %v2134_v18 = vsub.f32 %v10207_v36, %v2133_v50  ;;  %8297 = vmatprep.mubr.f32.mxu0 %v2115_v45 }
 0x2ac   :  { %v2036_v55 = vsel %vm2023_vm6, %v2020_v21, 0  ;;  %8320 = vmatmul.mubr.f32.gmra.mxu1 %v10209_v37  ;;  %8298 = vmatmul.mubr.f32.vlgmr.msra.gmra.mxu0 %v2125_v2  ;;  %v2145_v52 = vand.u32 4294901760, %v2144_v4  ;;  %v11988_v21 = vld [vmem:[#allocation24_spill] sm:$0xff] }
 0x2ad   :  { %v2153_v49 = vand.u32 4294901760, %v2152_v44  ;;  %v2182_v34 = vsub.f32 %v2038_v48, %v10227_v26  ;;  %v2171_v51 = vand.u32 4294901760, %v2036_v55  ;;  %v2135_v43 = vand.u32 4294901760, %v2134_v18  ;;  %8326 = vmatpush3.msra.mxu0 %v11987_v56 }
 0x2ae   :  { %v2164_v38 = vsub.f32 %v10219_v14, %v2163_v6  ;;  %8327 = vmatprep.subr.mxu0 %v10008_v3 }
 0x2af   :  { %v2183_v62 = vand.u32 4294901760, %v2182_v34  ;;  %v2172_v8 = vsub.f32 %v2036_v55, %v2171_v51  ;;  %8300 = vmatprep.mubr.f32.mxu0 %v2135_v43  ;;  %8322 = vmatprep.mubr.f32.mxu1 %v2171_v51  ;;  %v2154_v29 = vsub.f32 %v2152_v44, %v2153_v49 }
 0x2b0   :  { %8323 = vmatmul.mubr.f32.gmra.mxu1 %v10227_v26  ;;  %8301 = vmatmul.mubr.f32.gmra.mxu0 %v2145_v52  ;;  %v2165_v2 = vand.u32 4294901760, %v2164_v38  ;;  %v2847_v38 = vld [vmem:[%s11805_s5 + $0x18] sm:$0xff] }
 0x2b1   :  { %v2173_v12 = vand.u32 4294901760, %v2172_v8  ;;  %8345 = vmatprep.mubr.f32.mxu1 %v2113_v17  ;;  %v2155_v48 = vand.u32 4294901760, %v2154_v29  ;;  %8328 = vmatpush3.msra.mxu0 %v10008_v3  ;;  %v2184_v4 = vsub.f32 %v2182_v34, %v2183_v62  ;;  %v2849_v3 = vld [vmem:[%s11805_s5 + $0x28] sm:$0xff] }
 0x2b2   :  { %8357 = vmatprep.subr.mxu0 %v11988_v21 }
 0x2b3   :  { %8303 = vmatprep.mubr.f32.mxu0 %v2155_v48  ;;  %v2174_v45 = vsub.f32 %v2172_v8, %v2173_v12  ;;  %v2185_v55 = vand.u32 4294901760, %v2184_v4  ;;  %v10334_v48 = vand.u32 4294901760, %v2847_v38 }
 0x2b4   :  { %8346 = vmatmul.mubr.f32.vlgmr.msra.gmra.mxu1 %v2123_v47  ;;  %8304 = vmatmul.mubr.f32.gmra.mxu0 %v2165_v2 }
 0x2b5   :  { %8348 = vmatprep.mubr.f32.mxu1 %v2133_v50  ;;  %v2175_v18 = vand.u32 4294901760, %v2174_v45  ;;  %8374 = vmatpush3.msra.mxu1 %v9862_v42  ;;  %v10273_v42 = vand.u32 4294901760, %v2849_v3  ;;  %v2846_v45 = vld [vmem:[%s11805_s5 + $0x10] sm:$0xff] }
 0x2b6   :  { %8375 = vmatprep.subr.mxu1 %v11986_v57 }
 0x2b7   :  { %8306 = vmatprep.mubr.f32.mxu0 %v2175_v18  ;;  %8376 = vmatpush3.msra.mxu1 %v11986_v57  ;;  %v10344_v18 = vand.u32 4294901760, %v2846_v45 }
 0x2b8   :  { %8349 = vmatmul.mubr.f32.gmra.mxu1 %v2143_v1  ;;  %8307 = vmatmul.mubr.f32.gmra.mxu0 %v2185_v55 }
 0x2b9   :  { %8351 = vmatprep.mubr.f32.mxu1 %v2153_v49  ;;  %8329 = vmatprep.mubr.f32.mxu0 %v10186_v24 }
 0x2bc   :  { %8352 = vmatmul.mubr.f32.gmra.mxu1 %v2163_v6  ;;  %8330 = vmatmul.mubr.f32.vlgmr.msra.gmra.mxu0 %v10179_v35  ;;  %v10278_v35 = vsub.f32 %v2849_v3, %v10273_v42  ;;  %v2845_v3 = vld [vmem:[%s11805_s5 + $0x8] sm:$0xff] }
 0x2bd   :  { %8354 = vmatprep.mubr.f32.mxu1 %v2173_v12  ;;  %8332 = vmatprep.mubr.f32.mxu0 %v10207_v36 }
 0x2be   :  { %8358 = vmatpush3.msra.mxu0 %v11988_v21  ;;  %v10286_v47 = vand.u32 4294901760, %v10278_v35  ;;  %v10342_v21 = vsub.f32 %v2847_v38, %v10334_v48  ;;  %v2844_v38 = vld [vmem:[%s11805_s5] sm:$0xff] }
 0x2bf   :  { %8359 = vmatprep.subr.mxu0 %v10013_v10  ;;  %v10376_v59 = vand.u32 4294901760, %v2844_v38 }
 0x2c0   :  { %8355 = vmatmul.mubr.f32.gmra.mxu1 %v2183_v62  ;;  %8360 = vmatpush3.msra.mxu0 %v10013_v10  ;;  %v2848_v10 = vld [vmem:[%s11805_s5 + $0x20] sm:$0xff]  ;;  %s9093_s5 = smov 80  }
 0x2c1   :  { %8333 = vmatmul.mubr.f32.gmra.mxu0 %v10195_v15  ;;  %8377 = vmatprep.mubr.f32.mxu1 %v10181_v30  ;;  %v10388_v40 = vsub.f32 %v2844_v38, %v10376_v59 }
 0x2c2   :  { %8335 = vmatprep.mubr.f32.mxu0 %v2152_v44  ;;  %8389 = vmatprep.subr.mxu0 %v10273_v42 }
 0x2c3   :  { %v10395_v53 = vand.u32 4294901760, %v10388_v40 }
 0x2c4   :  { %8378 = vmatmul.mubr.f32.vlgmr.msra.gmra.mxu1 %v10175_v13 }
 0x2c5   :  { %8336 = vmatmul.mubr.f32.gmra.mxu0 %v10219_v14  ;;  %8380 = vmatprep.mubr.f32.mxu1 %v10197_v22  ;;  %v3085_v11 = vsub.f32 %v10388_v40, %v10395_v53 }
 0x2c6   :  { %8338 = vmatprep.mubr.f32.mxu0 %v2172_v8 }
 0x2c7   :  { %v3086_v32 = vand.u32 4294901760, %v3085_v11 }
 0x2c8   :  { %8381 = vmatmul.mubr.f32.gmra.mxu1 %v10188_v46 }
 0x2c9   :  { %8339 = vmatmul.mubr.f32.gmra.mxu0 %v2182_v34  ;;  %8383 = vmatprep.mubr.f32.mxu1 %v10221_v5 }
 0x2ca   :  { %8361 = vmatprep.mubr.f32.mxu0 %v10181_v30 }
 0x2cc   :  { %8384 = vmatmul.mubr.f32.gmra.mxu1 %v10209_v37 }
 0x2cd   :  { %8362 = vmatmul.mubr.f32.vlgmr.msra.gmra.mxu0 %v10175_v13  ;;  %8386 = vmatprep.mubr.f32.mxu1 %v2171_v51  ;;  %v10275_v13 = vand.u32 4294901760, %v2848_v10 }
 0x2ce   :  { %8364 = vmatprep.mubr.f32.mxu0 %v10197_v22  ;;  %8390 = vmatpush3.msra.mxu0 %v10273_v42 }
 0x2cf   :  { %v10281_v30 = vsub.f32 %v2848_v10, %v10275_v13  ;;  %8391 = vmatprep.subr.mxu0 %v10275_v13 }
 0x2d0   :  { %8387 = vmatmul.mubr.f32.gmra.mxu1 %v10227_v26  ;;  %8392 = vmatpush3.msra.mxu0 %v10275_v13 }
 0x2d1   :  { %8365 = vmatmul.mubr.f32.gmra.mxu0 %v10188_v46  ;;  %v10289_v24 = vand.u32 4294901760, %v10281_v30  ;;  %v3050_v46 = vsub.f32 %v10278_v35, %v10286_v47  ;;  %8393 = vmatprep.subr.mxu0 %v10334_v48 }
 0x2d2   :  { %8367 = vmatprep.mubr.f32.mxu0 %v10221_v5  ;;  %8394 = vmatpush3.msra.mxu0 %v10334_v48 }
 0x2d3   :  { %v3057_v17 = vsub.f32 %v10281_v30, %v10289_v24  ;;  %v3051_v15 = vand.u32 4294901760, %v3050_v46  ;;  %v10354_v46 = vand.u32 4294901760, %v10342_v21  ;;  %8395 = vmatprep.subr.mxu0 %v10344_v18 }
 0x2d4   :  { %8396 = vmatpush3.msra.mxu0 %v10344_v18 }
 0x2d5   :  { %8368 = vmatmul.mubr.f32.gmra.mxu0 %v10209_v37  ;;  %v3058_v22 = vand.u32 4294901760, %v3057_v17  ;;  %8413 = vmatprep.subr.mxu1 %v3051_v15  ;;  %v10357_v17 = vsub.f32 %v2846_v45, %v10344_v18  ;;  %v3064_v19 = vsub.f32 %v10342_v21, %v10354_v46 }
 0x2d6   :  { %8370 = vmatprep.mubr.f32.mxu0 %v2171_v51  ;;  %8414 = vmatpush3.msra.mxu1 %v3051_v15  ;;  %v10359_v15 = vand.u32 4294901760, %v2845_v3 }
 0x2d7   :  { %8415 = vmatprep.subr.mxu1 %v3058_v22  ;;  %v10371_v23 = vand.u32 4294901760, %v10357_v17  ;;  %v3065_v33 = vand.u32 4294901760, %v3064_v19 }
 0x2d8   :  { %8416 = vmatpush3.msra.mxu1 %v3058_v22  ;;  %v10374_v45 = vsub.f32 %v2845_v3, %v10359_v15  ;;  %8397 = vmatprep.subr.mxu0 %v10359_v15 }
 0x2d9   :  { %8371 = vmatmul.mubr.f32.gmra.mxu0 %v10227_v26  ;;  %v3071_v25 = vsub.f32 %v10357_v17, %v10371_v23  ;;  %8417 = vmatprep.subr.mxu1 %v3065_v33 }
 0x2da   :  { %8398 = vmatpush3.msra.mxu0 %v10359_v15  ;;  %v10385_v63 = vand.u32 4294901760, %v10374_v45  ;;  %8418 = vmatpush3.msra.mxu1 %v3065_v33 }
 0x2db   :  { %8399 = vmatprep.subr.mxu0 %v10376_v59  ;;  %v3072_v7 = vand.u32 4294901760, %v3071_v25 }
 0x2dc   :  { %8400 = vmatpush3.msra.mxu0 %v10376_v59  ;;  %v3078_v19 = vsub.f32 %v10374_v45, %v10385_v63 }
 0x2dd   :  { %8437 = vmatprep.subr.mxu0 %v10278_v35  ;;  %8419 = vmatprep.subr.mxu1 %v3072_v7 }
 0x2de   :  { %v3079_v0 = vand.u32 4294901760, %v3078_v19  ;;  %8420 = vmatpush3.msra.mxu1 %v3072_v7 }
 0x2e0   :  { %8421 = vmatprep.subr.mxu1 %v3079_v0 }
 0x2e1   :  { %8422 = vmatpush3.msra.mxu1 %v3079_v0 }
 0x2e2   :  { %8423 = vmatprep.subr.mxu1 %v3086_v32 }
 0x2e3   :  { %8424 = vmatpush3.msra.mxu1 %v3086_v32 }
 0x2e4   :  { %8461 = vmatprep.subr.mxu1 %v10273_v42 }
 0x364   :  { %v8315_v57 = vpop.f32.mrf.mxu1 }
 0x366   :  { %v10297_v1 = vpop.f32.mrf.mxu1 }
 0x368   :  { %v10299_v36 = vpop.f32.mrf.mxu1 }
 0x36a   :  { %v10301_v37 = vpop.f32.mrf.mxu1 }
 0x36c   :  { %v10303_v50 = vpop.f32.mrf.mxu1  ;;  %v8299_v14 = vpop.f32.mrf.mxu0 }
 0x36d   :  { %v2275_v16 = vadd.f32 %v8315_v57, %v8299_v14 }
 0x36e   :  { %v10305_v5 = vpop.f32.mrf.mxu1  ;;  %v2117_v6 = vpop.f32.mrf.mxu0 }
 0x36f   :  { %v2269_v41 = vadd.f32 %v10297_v1, %v2117_v6 }
 0x370   :  { %v10307_v44 = vpop.f32.mrf.mxu1  ;;  %v10309_v26 = vpop.f32.mrf.mxu0 }
 0x371   :  { %v2287_v60 = vadd.f32 %v10299_v36, %v10309_v26 }
 0x372   :  { %v10311_v49 = vpop.f32.mrf.mxu1  ;;  %v10313_v34 = vpop.f32.mrf.mxu0 }
 0x373   :  { %v2281_v14 = vadd.f32 %v10301_v37, %v10313_v34 }
 0x374   :  { %v10315_v51 = vpop.f32.mrf.mxu1  ;;  %v10317_v43 = vpop.f32.mrf.mxu0 }
 0x375   :  { %v2299_v11 = vadd.f32 %v10303_v50, %v10317_v43 }
 0x376   :  { %v10319_v56 = vpop.f32.mrf.mxu1  ;;  %v10321_v52 = vpop.f32.mrf.mxu0 }
 0x378   :  { %v10323_v62 = vpop.f32.mrf.mxu1  ;;  %v10325_v8 = vpop.f32.mrf.mxu0 }
 0x379   :  { %v2311_v26 = vadd.f32 %v10307_v44, %v10325_v8 }
 0x37a   :  { %v10327_v29 = vpop.f32.mrf.mxu1  ;;  %v10332_v12 = vpop.f32.mrf.mxu0 }
 0x37c   :  { %v10336_v2 = vpop.f32.mrf.mxu1  ;;  %v8331_v4 = vpop.f32.mrf.mxu0 }
 0x37d   :  { %v2394_v25 = vadd.f32 %v8331_v4, %v2275_v16 }
 0x37e   :  { %v10347_v55 = vpop.f32.mrf.mxu1  ;;  %v2386_v10 = vpop.f32.mrf.mxu0 }
 0x37f   :  { %v2387_v57 = vadd.f32 %v2386_v10, %v2269_v41  ;;  %v2519_v31 = vadd.f32 %v10315_v51, %v2394_v25  ;;  %v2293_v41 = vadd.f32 %v10305_v5, %v10321_v52 }
 0x380   :  { %v10362_v22 = vpop.f32.mrf.mxu1 }
 0x381   :  { %v8334_v54 = vpop.f32.mrf.mxu0  ;;  %v2511_v0 = vadd.f32 %v10319_v56, %v2387_v57 }
 0x382   :  { %v10379_v9 = vpop.f32.mrf.mxu1  ;;  %v2408_v19 = vadd.f32 %v8334_v54, %v2287_v60 }
 0x383   :  { %v2400_v58 = vpop.f32.mrf.mxu0 }
 0x384   :  { %v8379_v3 = vpop.f32.mrf.mxu1  ;;  %v2401_v1 = vadd.f32 %v2400_v58, %v2281_v14  ;;  %v2535_v32 = vadd.f32 %v10323_v62, %v2408_v19 }
 0x385   :  { %v8337_v28 = vpop.f32.mrf.mxu0 }
 0x386   :  { %v2758_v20 = vpop.f32.mrf.mxu1  ;;  %v2422_v37 = vadd.f32 %v8337_v28, %v2299_v11  ;;  %v2305_v28 = vadd.f32 %v10311_v49, %v10332_v12 }
 0x387   :  { %v2414_v38 = vpop.f32.mrf.mxu0 }
 0x388   :  { %v8382_v27 = vpop.f32.mrf.mxu1  ;;  %v2415_v4 = vadd.f32 %v2414_v38, %v2293_v41  ;;  %v2551_v44 = vadd.f32 %v10336_v2, %v2422_v37 }
 0x389   :  { %v8340_v39 = vpop.f32.mrf.mxu0 }
 0x38a   :  { %v2770_v16 = vpop.f32.mrf.mxu1  ;;  %v2436_v43 = vadd.f32 %v8340_v39, %v2311_v26 }
 0x38b   :  { %v2428_v33 = vpop.f32.mrf.mxu0 }
 0x38c   :  { %v8385_v34 = vpop.f32.mrf.mxu1 }
 0x38d   :  { %v8363_v7 = vpop.f32.mrf.mxu0 }
 0x38e   :  { %v2650_v36 = vadd.f32 %v8363_v7, %v2519_v31  ;;  %v2527_v31 = vadd.f32 %v10327_v29, %v2401_v1  ;;  %v2782_v62 = vpop.f32.mrf.mxu1  ;;  %v2543_v29 = vadd.f32 %v10347_v55, %v2415_v4 }
 0x38f   :  { %v2643_v6 = vpop.f32.mrf.mxu0 }
 0x390   :  { %v2765_v54 = vadd.f32 %v8379_v3, %v2650_v36  ;;  %v2644_v60 = vadd.f32 %v2643_v6, %v2511_v0  ;;  %v8388_v39 = vpop.f32.mrf.mxu1 }
 0x391   :  { %v8366_v51 = vpop.f32.mrf.mxu0 }
 0x392   :  { %v2759_v50 = vadd.f32 %v2758_v20, %v2644_v60  ;;  %v2662_v58 = vadd.f32 %v8366_v51, %v2535_v32  ;;  %2814 = vrot.lane.b32.xlu1 %v2765_v54, %s9093_s5  ;;  %v2429_v20 = vadd.f32 %v2428_v33, %v2305_v28  ;;  %v2794_v55 = vpop.f32.mrf.mxu1 }
 0x393   :  { %v2655_v5 = vpop.f32.mrf.mxu0 }
 0x394   :  { %v2777_v56 = vadd.f32 %v8382_v27, %v2662_v58  ;;  %v2656_v52 = vadd.f32 %v2655_v5, %v2527_v31  ;;  %2812 = vrot.lane.b32.xlu0 %v2759_v50, %s9093_s5  ;;  %v2567_v27 = vadd.f32 %v10362_v22, %v2436_v43  ;;  %v2559_v33 = vadd.f32 %v10379_v9, %v2429_v20 }
 0x395   :  { %v8369_v8 = vpop.f32.mrf.mxu0 }
 0x396   :  { %v2771_v10 = vadd.f32 %v2770_v16, %v2656_v52  ;;  %v2674_v3 = vadd.f32 %v8369_v8, %v2551_v44  ;;  %2818 = vrot.lane.b32.xlu1 %v2777_v56, %s9093_s5 }
 0x397   :  { %v2667_v38 = vpop.f32.mrf.mxu0 }
 0x398   :  { %v2789_v25 = vadd.f32 %v8385_v34, %v2674_v3  ;;  %v2668_v49 = vadd.f32 %v2667_v38, %v2543_v29  ;;  %2816 = vrot.lane.b32.xlu0 %v2771_v10, %s9093_s5 }
 0x399   :  { %v8372_v12 = vpop.f32.mrf.mxu0 }
 0x39a   :  { %v2783_v57 = vadd.f32 %v2782_v62, %v2668_v49  ;;  %v2686_v2 = vadd.f32 %v8372_v12, %v2567_v27  ;;  %2822 = vrot.lane.b32.xlu1 %v2789_v25, %s9093_s5 }
 0x39b   :  { %v2679_v14 = vpop.f32.mrf.mxu0 }
 0x39c   :  { %v2801_v19 = vadd.f32 %v8388_v39, %v2686_v2  ;;  %v2680_v16 = vadd.f32 %v2679_v14, %v2559_v33  ;;  %2820 = vrot.lane.b32.xlu0 %v2783_v57, %s9093_s5 }
 0x39e   :  { %v2795_v7 = vadd.f32 %v2794_v55, %v2680_v16  ;;  %2826 = vrot.lane.b32.xlu1 %v2801_v19, %s9093_s5 }
 0x3a0   :  { %2824 = vrot.lane.b32.xlu0 %v2795_v7, %s9093_s5 }
 0x404   :  { %v2815_v22 = vpop.permute.xlu1 %2814 }
 0x405   :  { %v2837_v11 = vmul.f32 %v2815_v22, %v2765_v54 }
 0x406   :  { %v2813_v1 = vpop.permute.xlu0 %2812 }
 0x407   :  { %v2855_v36 = vsel %vm2850_vm7, %v2837_v11, 0  ;;  %v2836_v0 = vmul.f32 %v2813_v1, %v2759_v50 }
 0x408   :  { %v10431_v41 = vand.u32 4294901760, %v2855_v36  ;;  %v2819_v9 = vpop.permute.xlu1 %2818 }
 0x409   :  { %v2852_v6 = vsel %vm2850_vm7, %v2836_v0, 0  ;;  %v2839_v37 = vmul.f32 %v2819_v9, %v2777_v56 }
 0x40a   :  { %v10435_v60 = vsub.f32 %v2855_v36, %v10431_v41  ;;  %v10437_v32 = vand.u32 4294901760, %v2852_v6  ;;  %v2817_v26 = vpop.permute.xlu0 %2816 }
 0x40b   :  { %v2861_v34 = vsel %vm2850_vm7, %v2839_v37, 0  ;;  %v2838_v51 = vmul.f32 %v2817_v26, %v2771_v10 }
 0x40c   :  { %v2958_v54 = vand.u32 4294901760, %v10435_v60  ;;  %v10442_v4 = vsub.f32 %v2852_v6, %v10437_v32  ;;  %v10444_v50 = vand.u32 4294901760, %v2861_v34  ;;  %v2823_v58 = vpop.permute.xlu1 %2822  ;;  %8425 = vmatprep.mubr.f32.mxu1 %v10437_v32 }
 0x40d   :  { %v2858_v31 = vsel %vm2850_vm7, %v2838_v51, 0  ;;  %v2841_v28 = vmul.f32 %v2823_v58, %v2789_v25  ;;  %8426 = vmatmul.mubr.f32.vlgmr.msra.gmra.mxu1 %v10431_v41 }
 0x40e   :  { %v10450_v5 = vsub.f32 %v2861_v34, %v10444_v50  ;;  %v10452_v43 = vand.u32 4294901760, %v2858_v31  ;;  %v2821_v56 = vpop.permute.xlu0 %2820  ;;  %8462 = vmatpush3.msra.mxu1 %v10273_v42  ;;  %v2948_v52 = vand.u32 4294901760, %v10442_v4  ;;  %v2959_v44 = vsub.f32 %v10435_v60, %v2958_v54 }
 0x40f   :  { %v2867_v62 = vsel %vm2850_vm7, %v2841_v28, 0  ;;  %v2840_v8 = vmul.f32 %v2821_v56, %v2783_v57  ;;  %8463 = vmatprep.subr.mxu1 %v10275_v13 }
 0x410   :  { %v10462_v20 = vsub.f32 %v2858_v31, %v10452_v43  ;;  %v10464_v10 = vand.u32 4294901760, %v2867_v62  ;;  %v2827_v3 = vpop.permute.xlu1 %2826  ;;  %8428 = vmatprep.mubr.f32.mxu1 %v10452_v43  ;;  %v2949_v29 = vsub.f32 %v10442_v4, %v2948_v52  ;;  %8464 = vmatpush3.msra.mxu1 %v10275_v13  ;;  %v2978_v49 = vand.u32 4294901760, %v10450_v5 }
 0x411   :  { %v2864_v38 = vsel %vm2850_vm7, %v2840_v8, 0  ;;  %v2843_v25 = vmul.f32 %v2827_v3, %v2801_v19  ;;  %8429 = vmatmul.mubr.f32.gmra.mxu1 %v10444_v50  ;;  %8465 = vmatprep.subr.mxu1 %v10334_v48  ;;  %v2960_v33 = vand.u32 4294901760, %v2959_v44 }
 0x412   :  { %v10474_v27 = vsub.f32 %v2867_v62, %v10464_v10  ;;  %v10476_v39 = vand.u32 4294901760, %v2864_v38  ;;  %v2825_v12 = vpop.permute.xlu0 %2824  ;;  %v2950_v57 = vand.u32 4294901760, %v2949_v29  ;;  %8466 = vmatpush3.msra.mxu1 %v10334_v48  ;;  %v2968_v2 = vand.u32 4294901760, %v10462_v20 }
 0x413   :  { %v2873_v14 = vsel %vm2850_vm7, %v2843_v25, 0  ;;  %v2842_v19 = vmul.f32 %v2825_v12, %v2795_v7  ;;  %8467 = vmatprep.subr.mxu1 %v10344_v18  ;;  %v2979_v16 = vsub.f32 %v10450_v5, %v2978_v49 }
 0x414   :  { %v10486_v55 = vsub.f32 %v2864_v38, %v10476_v39  ;;  %v10488_v22 = vand.u32 4294901760, %v2873_v14  ;;  %8401 = vmatprep.mubr.f32.mxu0 %v2950_v57  ;;  %8431 = vmatprep.mubr.f32.mxu1 %v10476_v39  ;;  %v2969_v11 = vsub.f32 %v10462_v20, %v2968_v2  ;;  %v2998_v1 = vand.u32 4294901760, %v10474_v27 }
 0x415   :  { %v2870_v7 = vsel %vm2850_vm7, %v2842_v19, 0  ;;  %8402 = vmatmul.mubr.f32.vlgmr.msra.gmra.mxu0 %v2960_v33  ;;  %8432 = vmatmul.mubr.f32.gmra.mxu1 %v10464_v10  ;;  %v2980_v37 = vand.u32 4294901760, %v2979_v16 }
 0x416   :  { %v10496_v36 = vsub.f32 %v2873_v14, %v10488_v22  ;;  %v10498_v0 = vand.u32 4294901760, %v2870_v7  ;;  %8438 = vmatpush3.msra.mxu0 %v10278_v35  ;;  %v2970_v9 = vand.u32 4294901760, %v2969_v11  ;;  %8468 = vmatpush3.msra.mxu1 %v10344_v18  ;;  %v2988_v6 = vand.u32 4294901760, %v10486_v55 }
 0x417   :  { %8439 = vmatprep.subr.mxu0 %v10281_v30  ;;  %8469 = vmatprep.subr.mxu1 %v10359_v15  ;;  %v2999_v35 = vsub.f32 %v10474_v27, %v2998_v1 }
 0x418   :  { %v10506_v26 = vsub.f32 %v2870_v7, %v10498_v0  ;;  %8404 = vmatprep.mubr.f32.mxu0 %v2970_v9  ;;  %8434 = vmatprep.mubr.f32.mxu1 %v10498_v0  ;;  %v2989_v34 = vsub.f32 %v10486_v55, %v2988_v6  ;;  %v3018_v51 = vand.u32 4294901760, %v10496_v36 }
 0x419   :  { %8405 = vmatmul.mubr.f32.gmra.mxu0 %v2980_v37  ;;  %8435 = vmatmul.mubr.f32.gmra.mxu1 %v10488_v22  ;;  %v3000_v28 = vand.u32 4294901760, %v2999_v35 }
 0x41a   :  { %8440 = vmatpush3.msra.mxu0 %v10281_v30  ;;  %8470 = vmatpush3.msra.mxu1 %v10359_v15  ;;  %v2990_v58 = vand.u32 4294901760, %v2989_v34  ;;  %v3008_v31 = vand.u32 4294901760, %v10506_v26  ;;  %v3019_v44 = vsub.f32 %v10496_v36, %v3018_v51 }
 0x41b   :  { %8473 = vmatprep.mubr.f32.mxu1 %v2948_v52  ;;  %8441 = vmatprep.subr.mxu0 %v10342_v21 }
 0x41c   :  { %8471 = vmatprep.subr.mxu1 %v10376_v59  ;;  %8407 = vmatprep.mubr.f32.mxu0 %v2990_v58  ;;  %v3009_v56 = vsub.f32 %v10506_v26, %v3008_v31  ;;  %v3020_v52 = vand.u32 4294901760, %v3019_v44 }
 0x41d   :  { %8442 = vmatpush3.msra.mxu0 %v10342_v21  ;;  %8472 = vmatpush3.msra.mxu1 %v10376_v59 }
 0x41e   :  { %8408 = vmatmul.mubr.f32.gmra.mxu0 %v3000_v28  ;;  %8443 = vmatprep.subr.mxu0 %v10357_v17  ;;  %v3010_v30 = vand.u32 4294901760, %v3009_v56 }
 0x41f   :  { %8474 = vmatmul.mubr.f32.vlgmr.msra.gmra.mxu1 %v2958_v54  ;;  %8444 = vmatpush3.msra.mxu0 %v10357_v17 }
 0x420   :  { %8476 = vmatprep.mubr.f32.mxu1 %v2968_v2  ;;  %8410 = vmatprep.mubr.f32.mxu0 %v3010_v30 }
 0x421   :  { %8445 = vmatprep.subr.mxu0 %v10374_v45  ;;  %8509 = vmatprep.subr.mxu1 %v10273_v42 }
 0x422   :  { %8411 = vmatmul.mubr.f32.gmra.mxu0 %v3020_v52  ;;  %8510 = vmatpush3.msra.mxu1 %v10273_v42 }
 0x423   :  { %8446 = vmatpush3.msra.mxu0 %v10374_v45  ;;  %8477 = vmatmul.mubr.f32.gmra.mxu1 %v2978_v49 }
 0x424   :  { %8449 = vmatprep.mubr.f32.mxu0 %v10442_v4  ;;  %8479 = vmatprep.mubr.f32.mxu1 %v2988_v6 }
 0x425   :  { %8447 = vmatprep.subr.mxu0 %v10388_v40  ;;  %8511 = vmatprep.subr.mxu1 %v10275_v13 }
 0x426   :  { %8448 = vmatpush3.msra.mxu0 %v10388_v40  ;;  %8512 = vmatpush3.msra.mxu1 %v10275_v13 }
 0x427   :  { %8450 = vmatmul.mubr.f32.vlgmr.msra.gmra.mxu0 %v10435_v60  ;;  %8480 = vmatmul.mubr.f32.gmra.mxu1 %v2998_v1 }
 0x428   :  { %8485 = vmatprep.subr.mxu0 %v10286_v47  ;;  %8513 = vmatprep.subr.mxu1 %v10334_v48 }
 0x429   :  { %8452 = vmatprep.mubr.f32.mxu0 %v10462_v20  ;;  %8482 = vmatprep.mubr.f32.mxu1 %v3008_v31 }
 0x42a   :  { %8486 = vmatpush3.msra.mxu0 %v10286_v47  ;;  %8514 = vmatpush3.msra.mxu1 %v10334_v48 }
 0x42b   :  { %8515 = vmatprep.subr.mxu1 %v10344_v18  ;;  %8487 = vmatprep.subr.mxu0 %v10289_v24 }
 0x42c   :  { %8516 = vmatpush3.msra.mxu1 %v10344_v18  ;;  %8453 = vmatmul.mubr.f32.gmra.mxu0 %v10450_v5 }
 0x42d   :  { %8483 = vmatmul.mubr.f32.gmra.mxu1 %v3018_v51  ;;  %8488 = vmatpush3.msra.mxu0 %v10289_v24 }
 0x42e   :  { %8517 = vmatprep.subr.mxu1 %v10359_v15  ;;  %8455 = vmatprep.mubr.f32.mxu0 %v10486_v55 }
 0x42f   :  { %8518 = vmatpush3.msra.mxu1 %v10359_v15  ;;  %8521 = vmatprep.mubr.f32.mxu1 %v10437_v32 }
 0x430   :  { %8489 = vmatprep.subr.mxu0 %v10354_v46  ;;  %8519 = vmatprep.subr.mxu1 %v10376_v59 }
 0x431   :  { %8490 = vmatpush3.msra.mxu0 %v10354_v46  ;;  %8520 = vmatpush3.msra.mxu1 %v10376_v59 }
 0x432   :  { %8456 = vmatmul.mubr.f32.gmra.mxu0 %v10474_v27  ;;  %8491 = vmatprep.subr.mxu0 %v10371_v23 }
 0x433   :  { %8522 = vmatmul.mubr.f32.vlgmr.msra.gmra.mxu1 %v10431_v41  ;;  %8458 = vmatprep.mubr.f32.mxu0 %v10506_v26 }
 0x434   :  { %8492 = vmatpush3.msra.mxu0 %v10371_v23  ;;  %8524 = vmatprep.mubr.f32.mxu1 %v10452_v43 }
 0x435   :  { %8493 = vmatprep.subr.mxu0 %v10385_v63 }
 0x436   :  { %8459 = vmatmul.mubr.f32.gmra.mxu0 %v10496_v36 }
 0x437   :  { %8494 = vmatpush3.msra.mxu0 %v10385_v63  ;;  %8525 = vmatmul.mubr.f32.gmra.mxu1 %v10444_v50  ;;  %v3727_v63 = vld [vmem:[%s11803_s3] sm:$0xff] }
 0x438   :  { %8497 = vmatprep.mubr.f32.mxu0 %v10437_v32  ;;  %8527 = vmatprep.mubr.f32.mxu1 %v10476_v39  ;;  %v10592_v59 = vand.u32 4294901760, %v3727_v63 }
 0x439   :  { %8495 = vmatprep.subr.mxu0 %v10395_v53 }
 0x43a   :  { %8496 = vmatpush3.msra.mxu0 %v10395_v53  ;;  %v3728_v53 = vld [vmem:[%s11803_s3 + $0x8] sm:$0xff]  ;;  %v10599_v13 = vsub.f32 %v3727_v63, %v10592_v59 }
 0x43b   :  { %8498 = vmatmul.mubr.f32.vlgmr.msra.gmra.mxu0 %v10431_v41  ;;  %8528 = vmatmul.mubr.f32.gmra.mxu1 %v10464_v10  ;;  %v10583_v23 = vand.u32 4294901760, %v3728_v53 }
 0x43c   :  { %8500 = vmatprep.mubr.f32.mxu0 %v10452_v43  ;;  %8530 = vmatprep.mubr.f32.mxu1 %v10498_v0  ;;  %v10606_v24 = vand.u32 4294901760, %v10599_v13 }
 0x43d   :  { %8533 = vmatprep.subr.mxu0 %v10583_v23  ;;  %v10590_v40 = vsub.f32 %v3728_v53, %v10583_v23 }
 0x43e   :  { %8534 = vmatpush3.msra.mxu0 %v10583_v23  ;;  %v3939_v21 = vsub.f32 %v10599_v13, %v10606_v24 }
 0x43f   :  { %8501 = vmatmul.mubr.f32.gmra.mxu0 %v10444_v50  ;;  %8531 = vmatmul.mubr.f32.gmra.mxu1 %v10488_v22  ;;  %v10596_v42 = vand.u32 4294901760, %v10590_v40 }
 0x440   :  { %8503 = vmatprep.mubr.f32.mxu0 %v10476_v39  ;;  %8535 = vmatprep.subr.mxu0 %v10592_v59  ;;  %v3940_v18 = vand.u32 4294901760, %v3939_v21 }
 0x441   :  { %8536 = vmatpush3.msra.mxu0 %v10592_v59  ;;  %v3932_v47 = vsub.f32 %v10590_v40, %v10596_v42 }
 0x442   :  { %8565 = vmatprep.subr.mxu0 %v10590_v40 }
 0x443   :  { %8504 = vmatmul.mubr.f32.gmra.mxu0 %v10464_v10  ;;  %v3933_v48 = vand.u32 4294901760, %v3932_v47 }
 0x444   :  { %8506 = vmatprep.mubr.f32.mxu0 %v10498_v0 }
 0x445   :  { %8549 = vmatprep.subr.mxu1 %v3933_v48 }
 0x446   :  { %8550 = vmatpush3.msra.mxu1 %v3933_v48 }
 0x447   :  { %8507 = vmatmul.mubr.f32.gmra.mxu0 %v10488_v22  ;;  %8551 = vmatprep.subr.mxu1 %v3940_v18 }
 0x448   :  { %8552 = vmatpush3.msra.mxu1 %v3940_v18 }
 0x449   :  { %8581 = vmatprep.subr.mxu1 %v10583_v23 }
 0x4cd   :  { %v8427_v46 = vpop.f32.mrf.mxu1 }
 0x4cf   :  { %v3123_v17 = vpop.f32.mrf.mxu1 }
 0x4d1   :  { %v8430_v15 = vpop.f32.mrf.mxu1 }
 0x4d3   :  { %v3135_v45 = vpop.f32.mrf.mxu1 }
 0x4d5   :  { %v8403_v41 = vpop.f32.mrf.mxu0  ;;  %v8433_v60 = vpop.f32.mrf.mxu1 }
 0x4d6   :  { %v3130_v55 = vadd.f32 %v8427_v46, %v8403_v41 }
 0x4d7   :  { %v2952_v32 = vpop.f32.mrf.mxu0  ;;  %v3147_v54 = vpop.f32.mrf.mxu1 }
 0x4d8   :  { %v3124_v1 = vadd.f32 %v3123_v17, %v2952_v32 }
 0x4d9   :  { %v8406_v4 = vpop.f32.mrf.mxu0  ;;  %v8436_v50 = vpop.f32.mrf.mxu1 }
 0x4da   :  { %v3142_v9 = vadd.f32 %v8430_v15, %v8406_v4 }
 0x4db   :  { %v2972_v5 = vpop.f32.mrf.mxu0  ;;  %v3159_v43 = vpop.f32.mrf.mxu1 }
 0x4dc   :  { %v3136_v26 = vadd.f32 %v3135_v45, %v2972_v5 }
 0x4de   :  { %v8409_v62 = vpop.f32.mrf.mxu0 }
 0x4df   :  { %v8475_v8 = vpop.f32.mrf.mxu1  ;;  %v3154_v51 = vadd.f32 %v8433_v60, %v8409_v62 }
 0x4e0   :  { %v2992_v20 = vpop.f32.mrf.mxu0 }
 0x4e1   :  { %v3377_v10 = vpop.f32.mrf.mxu1  ;;  %v3148_v30 = vadd.f32 %v3147_v54, %v2992_v20 }
 0x4e2   :  { %v8412_v3 = vpop.f32.mrf.mxu0 }
 0x4e3   :  { %v8478_v29 = vpop.f32.mrf.mxu1  ;;  %v3166_v21 = vadd.f32 %v8436_v50, %v8412_v3 }
 0x4e4   :  { %v3012_v38 = vpop.f32.mrf.mxu0 }
 0x4e5   :  { %v3393_v25 = vpop.f32.mrf.mxu1  ;;  %v3160_v60 = vadd.f32 %v3159_v43, %v3012_v38 }
 0x4e7   :  { %v8451_v49 = vpop.f32.mrf.mxu0  ;;  %v8481_v27 = vpop.f32.mrf.mxu1 }
 0x4e8   :  { %v3257_v7 = vadd.f32 %v8451_v49, %v3130_v55 }
 0x4e9   :  { %v3249_v39 = vpop.f32.mrf.mxu0  ;;  %v3409_v12 = vpop.f32.mrf.mxu1 }
 0x4ea   :  { %v3250_v6 = vadd.f32 %v3249_v39, %v3124_v1  ;;  %v3386_v35 = vadd.f32 %v8475_v8, %v3257_v7 }
 0x4ec   :  { %v8454_v57 = vpop.f32.mrf.mxu0  ;;  %v3378_v44 = vadd.f32 %v3377_v10, %v3250_v6 }
 0x4ed   :  { %v8484_v2 = vpop.f32.mrf.mxu1  ;;  %v3271_v34 = vadd.f32 %v8454_v57, %v3142_v9 }
 0x4ee   :  { %v3263_v33 = vpop.f32.mrf.mxu0 }
 0x4ef   :  { %v10612_v14 = vpop.f32.mrf.mxu1  ;;  %v3264_v28 = vadd.f32 %v3263_v33, %v3136_v26  ;;  %v3402_v48 = vadd.f32 %v8478_v29, %v3271_v34 }
 0x4f1   :  { %v3394_v41 = vadd.f32 %v3393_v25, %v3264_v28 }
 0x4f2   :  { %v8457_v19 = vpop.f32.mrf.mxu0 }
 0x4f3   :  { %v8523_v16 = vpop.f32.mrf.mxu1  ;;  %v3285_v52 = vadd.f32 %v8457_v19, %v3154_v51 }
 0x4f4   :  { %v3277_v22 = vpop.f32.mrf.mxu0 }
 0x4f5   :  { %v3641_v11 = vpop.f32.mrf.mxu1  ;;  %v3278_v18 = vadd.f32 %v3277_v22, %v3148_v30  ;;  %v3418_v5 = vadd.f32 %v8481_v27, %v3285_v52 }
 0x4f6   :  { %v8460_v36 = vpop.f32.mrf.mxu0 }
 0x4f7   :  { %v8526_v0 = vpop.f32.mrf.mxu1  ;;  %v3299_v32 = vadd.f32 %v8460_v36, %v3166_v21  ;;  %v3410_v3 = vadd.f32 %v3409_v12, %v3278_v18 }
 0x4f8   :  { %v3291_v37 = vpop.f32.mrf.mxu0 }
 0x4f9   :  { %v3653_v58 = vpop.f32.mrf.mxu1  ;;  %v3292_v29 = vadd.f32 %v3291_v37, %v3160_v60  ;;  %v3434_v27 = vadd.f32 %v8484_v2, %v3299_v32 }
 0x4fb   :  { %v8499_v31 = vpop.f32.mrf.mxu0  ;;  %v8529_v46 = vpop.f32.mrf.mxu1  ;;  %v3426_v36 = vadd.f32 %v10612_v14, %v3292_v29 }
 0x4fc   :  { %v3529_v56 = vadd.f32 %v8499_v31, %v3386_v35 }
 0x4fd   :  { %v3522_v53 = vpop.f32.mrf.mxu0  ;;  %v3665_v50 = vpop.f32.mrf.mxu1 }
 0x4fe   :  { %v10614_v63 = vadd.f32 %v8523_v16, %v3529_v56  ;;  %v3523_v47 = vadd.f32 %v3522_v53, %v3378_v44 }
 0x4ff   :  { %v8502_v17 = vpop.f32.mrf.mxu0  ;;  %v8532_v22 = vpop.f32.mrf.mxu1 }
 0x500   :  { %v10616_v15 = vadd.f32 %v3641_v11, %v3523_v47  ;;  %v3541_v45 = vadd.f32 %v8502_v17, %v3402_v48  ;;  %v3688_v54 = vmul.f32 %v10614_v63, %v10614_v63 }
 0x501   :  { %v3534_v4 = vpop.f32.mrf.mxu0  ;;  %v3677_v35 = vpop.f32.mrf.mxu1 }
 0x502   :  { %v3687_v62 = vmul.f32 %v10616_v15, %v10616_v15  ;;  %v3660_v8 = vadd.f32 %v8526_v0, %v3541_v45  ;;  %v3535_v20 = vadd.f32 %v3534_v4, %v3394_v41  ;;  %v3697_v57 = vsel %vm3695_vm8, %v3688_v54, 0.0 }
 0x503   :  { %v8505_v10 = vpop.f32.mrf.mxu0 }
 0x504   :  { %v3696_v49 = vsel %vm3695_vm8, %v3687_v62, 0.0  ;;  %v3654_v25 = vadd.f32 %v3653_v58, %v3535_v20  ;;  %v3553_v43 = vadd.f32 %v8505_v10, %v3418_v5  ;;  %v3690_v38 = vmul.f32 %v3660_v8, %v3660_v8 }
 0x505   :  { %v3546_v39 = vpop.f32.mrf.mxu0  ;;  %v3698_v55 = vadd.f32 %v3697_v57, %v3696_v49 }
 0x506   :  { %v3689_v33 = vmul.f32 %v3654_v25, %v3654_v25  ;;  %v3672_v19 = vadd.f32 %v8529_v46, %v3553_v43  ;;  %v3547_v16 = vadd.f32 %v3546_v39, %v3410_v3  ;;  %v3701_v0 = vsel %vm3695_vm8, %v3690_v38, 0.0 }
 0x507   :  { %v8508_v11 = vpop.f32.mrf.mxu0 }
 0x508   :  { %v3699_v1 = vsel %vm3695_vm8, %v3689_v33, 0.0  ;;  %v3666_v7 = vadd.f32 %v3665_v50, %v3547_v16  ;;  %v3565_v12 = vadd.f32 %v8508_v11, %v3434_v27  ;;  %v3692_v37 = vmul.f32 %v3672_v19, %v3672_v19 }
 0x509   :  { %v3700_v9 = vadd.f32 %v3699_v1, %v3698_v55  ;;  %v3558_v6 = vpop.f32.mrf.mxu0 }
 0x50a   :  { %v3691_v2 = vmul.f32 %v3666_v7, %v3666_v7  ;;  %v3684_v26 = vadd.f32 %v8532_v22, %v3565_v12  ;;  %v3559_v34 = vadd.f32 %v3558_v6, %v3426_v36  ;;  %v3705_v56 = vsel %vm3695_vm8, %v3692_v37, 0.0 }
 0x50b   :  { %v3702_v51 = vadd.f32 %v3701_v0, %v3700_v9 }
 0x50c   :  { %v3703_v58 = vsel %vm3695_vm8, %v3691_v2, 0.0  ;;  %v3678_v31 = vadd.f32 %v3677_v35, %v3559_v34  ;;  %v3694_v44 = vmul.f32 %v3684_v26, %v3684_v26 }
 0x50d   :  { %v3704_v28 = vadd.f32 %v3703_v58, %v3702_v51 }
 0x50e   :  { %v3693_v30 = vmul.f32 %v3678_v31, %v3678_v31  ;;  %v3709_v47 = vsel %vm3695_vm8, %v3694_v44, 0.0 }
 0x50f   :  { %v3706_v52 = vadd.f32 %v3705_v56, %v3704_v28 }
 0x510   :  { %v3707_v14 = vsel %vm3695_vm8, %v3693_v30, 0.0 }
 0x511   :  { %v3708_v53 = vadd.f32 %v3707_v14, %v3706_v52 }
 0x513   :  { %v3710_v48 = vadd.f32 %v3709_v47, %v3708_v53 }
 0x515   :  { %v3711_v21 = vrot.slane %v3710_v48, 4 }
 0x517   :  { %v3712_v18 = vadd.f32 %v3711_v21, %v3710_v48 }
 0x519   :  { %v3713_v46 = vrot.slane %v3712_v18, 2 }
 0x51b   :  { %v3714_v17 = vadd.f32 %v3713_v46, %v3712_v18 }
 0x51d   :  { %v3715_v45 = vrot.slane %v3714_v17, 1 }
 0x51f   :  { %v3716_v41 = vadd.f32 %v3715_v45, %v3714_v17 }
 0x521   :  { %v3717_v60 = vmax.f32 %v3716_v41, 1e-24 }
 0x523   :  { %9012 = vrsqrt.f32 %v3717_v60 }
 0x530   :  { %v9013_v32 = vpop.eup %9012 }
 0x531   :  { %v3725_v4 = vmul.f32 %v9013_v32, %v3678_v31  ;;  %v3719_v5 = vmul.f32 %v9013_v32, %v10616_v15  ;;  %v3720_v54 = vmul.f32 %v9013_v32, %v10614_v63  ;;  %v3721_v62 = vmul.f32 %v9013_v32, %v3654_v25 }
 0x532   :  { %v3722_v20 = vmul.f32 %v9013_v32, %v3660_v8  ;;  %v3723_v50 = vmul.f32 %v9013_v32, %v3666_v7  ;;  %v3724_v10 = vmul.f32 %v9013_v32, %v3672_v19  ;;  %v3726_v3 = vmul.f32 %v9013_v32, %v3684_v26 }
 0x533   :  { %v3748_v29 = vsel %vm3695_vm8, %v3725_v4, 0  ;;  %v3730_v49 = vsel %vm3695_vm8, %v3719_v5, 0  ;;  %v3733_v43 = vsel %vm3695_vm8, %v3720_v54, 0  ;;  %v3736_v38 = vsel %vm3695_vm8, %v3721_v62, 0 }
 0x534   :  { %v10637_v39 = vand.u32 4294901760, %v3730_v49  ;;  %v10639_v27 = vand.u32 4294901760, %v3733_v43  ;;  %v10641_v15 = vand.u32 4294901760, %v3736_v38  ;;  %v3739_v63 = vsel %vm3695_vm8, %v3722_v20, 0 }
 0x535   :  { %v3742_v8 = vsel %vm3695_vm8, %v3723_v50, 0  ;;  %v3745_v25 = vsel %vm3695_vm8, %v3724_v10, 0  ;;  %v10646_v57 = vand.u32 4294901760, %v3748_v29  ;;  %v10652_v19 = vand.u32 4294901760, %v3739_v63 }
 0x536   :  { %8553 = vmatprep.mubr.f32.mxu1 %v10637_v39  ;;  %v10650_v33 = vsub.f32 %v3733_v43, %v10639_v27  ;;  %v10654_v16 = vand.u32 4294901760, %v3742_v8  ;;  %v3821_v55 = vsub.f32 %v3730_v49, %v10637_v39  ;;  %v10658_v22 = vand.u32 4294901760, %v3745_v25 }
 0x537   :  { %8554 = vmatmul.mubr.f32.vlgmr.msra.gmra.mxu1 %v10639_v27  ;;  %v10661_v11 = vsub.f32 %v3736_v38, %v10641_v15  ;;  %v3751_v1 = vsel %vm3695_vm8, %v3726_v3, 0  ;;  %v10668_v12 = vsub.f32 %v3739_v63, %v10652_v19  ;;  %v3881_v34 = vsub.f32 %v3748_v29, %v10646_v57 }
 0x538   :  { %8556 = vmatprep.mubr.f32.mxu1 %v10641_v15  ;;  %v3832_v7 = vand.u32 4294901760, %v10650_v33  ;;  %8582 = vmatpush3.msra.mxu1 %v10583_v23  ;;  %v10671_v36 = vsub.f32 %v3742_v8, %v10654_v16  ;;  %v3822_v0 = vand.u32 4294901760, %v3821_v55  ;;  %v10677_v37 = vsub.f32 %v3745_v25, %v10658_v22 }
 0x539   :  { %v3842_v9 = vand.u32 4294901760, %v10661_v11  ;;  %8583 = vmatprep.subr.mxu1 %v10592_v59  ;;  %v3852_v2 = vand.u32 4294901760, %v10668_v12  ;;  %v10680_v26 = vand.u32 4294901760, %v3751_v1  ;;  %v3882_v53 = vand.u32 4294901760, %v3881_v34 }
 0x53a   :  { %v3833_v6 = vsub.f32 %v10650_v33, %v3832_v7  ;;  %8584 = vmatpush3.msra.mxu1 %v10592_v59  ;;  %v3823_v35 = vsub.f32 %v3821_v55, %v3822_v0  ;;  %v3862_v58 = vand.u32 4294901760, %v10671_v36  ;;  %v3872_v30 = vand.u32 4294901760, %v10677_v37 }
 0x53b   :  { %8557 = vmatmul.mubr.f32.gmra.mxu1 %v10652_v19  ;;  %v3843_v51 = vsub.f32 %v10661_v11, %v3842_v9  ;;  %8613 = vmatprep.subr.mxu1 %v10583_v23  ;;  %v3853_v56 = vsub.f32 %v10668_v12, %v3852_v2  ;;  %v3891_v44 = vsub.f32 %v3751_v1, %v10680_v26 }
 0x53c   :  { %8559 = vmatprep.mubr.f32.mxu1 %v10654_v16  ;;  %v3834_v31 = vand.u32 4294901760, %v3833_v6  ;;  %v3824_v28 = vand.u32 4294901760, %v3823_v35  ;;  %v3863_v14 = vsub.f32 %v10671_v36, %v3862_v58  ;;  %v3873_v48 = vsub.f32 %v10677_v37, %v3872_v30 }
 0x53d   :  { %v3844_v52 = vand.u32 4294901760, %v3843_v51  ;;  %v3854_v47 = vand.u32 4294901760, %v3853_v56  ;;  %v3892_v21 = vand.u32 4294901760, %v3891_v44  ;;  %v3883_v46 = vsub.f32 %v3881_v34, %v3882_v53 }
 0x53e   :  { %8537 = vmatprep.mubr.f32.mxu0 %v3824_v28  ;;  %v3864_v18 = vand.u32 4294901760, %v3863_v14  ;;  %v3874_v17 = vand.u32 4294901760, %v3873_v48 }
 0x53f   :  { %8560 = vmatmul.mubr.f32.gmra.mxu1 %v10658_v22  ;;  %8538 = vmatmul.mubr.f32.vlgmr.msra.gmra.mxu0 %v3834_v31  ;;  %v3893_v45 = vsub.f32 %v3891_v44, %v3892_v21 }
 0x540   :  { %8562 = vmatprep.mubr.f32.mxu1 %v10646_v57  ;;  %8540 = vmatprep.mubr.f32.mxu0 %v3844_v52 }
 0x541   :  { %8566 = vmatpush3.msra.mxu0 %v10590_v40  ;;  %v3884_v40 = vand.u32 4294901760, %v3883_v46  ;;  %v3894_v41 = vand.u32 4294901760, %v3893_v45 }
 0x542   :  { %8567 = vmatprep.subr.mxu0 %v10599_v13 }
 0x543   :  { %8563 = vmatmul.mubr.f32.gmra.mxu1 %v10680_v26  ;;  %8568 = vmatpush3.msra.mxu0 %v10599_v13 }
 0x544   :  { %8541 = vmatmul.mubr.f32.gmra.mxu0 %v3854_v47  ;;  %8585 = vmatprep.mubr.f32.mxu1 %v3822_v0 }
 0x545   :  { %8543 = vmatprep.mubr.f32.mxu0 %v3864_v18  ;;  %8597 = vmatprep.subr.mxu0 %v10596_v42 }
 0x547   :  { %8586 = vmatmul.mubr.f32.vlgmr.msra.gmra.mxu1 %v3832_v7 }
 0x548   :  { %8544 = vmatmul.mubr.f32.gmra.mxu0 %v3874_v17  ;;  %8588 = vmatprep.mubr.f32.mxu1 %v3842_v9 }
 0x549   :  { %8546 = vmatprep.mubr.f32.mxu0 %v3884_v40  ;;  %8614 = vmatpush3.msra.mxu1 %v10583_v23 }
 0x54a   :  { %8615 = vmatprep.subr.mxu1 %v10592_v59 }
 0x54b   :  { %8589 = vmatmul.mubr.f32.gmra.mxu1 %v3852_v2 }
 0x54c   :  { %8547 = vmatmul.mubr.f32.gmra.mxu0 %v3894_v41  ;;  %8591 = vmatprep.mubr.f32.mxu1 %v3862_v58 }
 0x54d   :  { %8569 = vmatprep.mubr.f32.mxu0 %v3821_v55  ;;  %8616 = vmatpush3.msra.mxu1 %v10592_v59 }
 0x54f   :  { %8592 = vmatmul.mubr.f32.gmra.mxu1 %v3872_v30 }
 0x550   :  { %8570 = vmatmul.mubr.f32.vlgmr.msra.gmra.mxu0 %v10650_v33  ;;  %8594 = vmatprep.mubr.f32.mxu1 %v3882_v53 }
 0x551   :  { %8572 = vmatprep.mubr.f32.mxu0 %v10661_v11  ;;  %8598 = vmatpush3.msra.mxu0 %v10596_v42 }
 0x552   :  { %8599 = vmatprep.subr.mxu0 %v10606_v24 }
 0x553   :  { %8595 = vmatmul.mubr.f32.gmra.mxu1 %v3892_v21  ;;  %8600 = vmatpush3.msra.mxu0 %v10606_v24 }
 0x554   :  { %8573 = vmatmul.mubr.f32.gmra.mxu0 %v10668_v12  ;;  %8617 = vmatprep.mubr.f32.mxu1 %v10637_v39 }
 0x555   :  { %8575 = vmatprep.mubr.f32.mxu0 %v10671_v36 }
 0x557   :  { %8618 = vmatmul.mubr.f32.vlgmr.msra.gmra.mxu1 %v10639_v27 }
 0x558   :  { %8576 = vmatmul.mubr.f32.gmra.mxu0 %v10677_v37  ;;  %8620 = vmatprep.mubr.f32.mxu1 %v10641_v15 }
 0x559   :  { %8578 = vmatprep.mubr.f32.mxu0 %v3881_v34 }
 0x55b   :  { %8621 = vmatmul.mubr.f32.gmra.mxu1 %v10652_v19 }
 0x55c   :  { %8579 = vmatmul.mubr.f32.gmra.mxu0 %v3891_v44  ;;  %8623 = vmatprep.mubr.f32.mxu1 %v10654_v16 }
 0x55d   :  { %8601 = vmatprep.mubr.f32.mxu0 %v10637_v39 }
 0x55f   :  { %8624 = vmatmul.mubr.f32.gmra.mxu1 %v10658_v22 }
 0x560   :  { %8602 = vmatmul.mubr.f32.vlgmr.msra.gmra.mxu0 %v10639_v27  ;;  %8626 = vmatprep.mubr.f32.mxu1 %v10646_v57 }
 0x561   :  { %8604 = vmatprep.mubr.f32.mxu0 %v10641_v15 }
 0x563   :  { %8627 = vmatmul.mubr.f32.gmra.mxu1 %v10680_v26 }
 0x564   :  { %8605 = vmatmul.mubr.f32.gmra.mxu0 %v10652_v19 }
 0x565   :  { %8607 = vmatprep.mubr.f32.mxu0 %v10654_v16 }
 0x568   :  { %8608 = vmatmul.mubr.f32.gmra.mxu0 %v10658_v22 }
 0x569   :  { %8610 = vmatprep.mubr.f32.mxu0 %v10646_v57 }
 0x56c   :  { %8611 = vmatmul.mubr.f32.gmra.mxu0 %v10680_v26 }
 0x5f7   :  { %v8555_v23 = vpop.f32.mrf.mxu1 }
 0x5f9   :  { %v3977_v59 = vpop.f32.mrf.mxu1 }
 0x5fb   :  { %v8558_v42 = vpop.f32.mrf.mxu1 }
 0x5fd   :  { %v3989_v13 = vpop.f32.mrf.mxu1 }
 0x5ff   :  { %v8561_v24 = vpop.f32.mrf.mxu1  ;;  %v8539_v60 = vpop.f32.mrf.mxu0 }
 0x600   :  { %v3984_v22 = vadd.f32 %v8555_v23, %v8539_v60 }
 0x601   :  { %v4001_v32 = vpop.f32.mrf.mxu1  ;;  %v3826_v4 = vpop.f32.mrf.mxu0 }
 0x602   :  { %v3978_v7 = vadd.f32 %v3977_v59, %v3826_v4 }
 0x603   :  { %v8564_v5 = vpop.f32.mrf.mxu1 }
 0x604   :  { %v8542_v54 = vpop.f32.mrf.mxu0 }
 0x605   :  { %v4013_v62 = vpop.f32.mrf.mxu1  ;;  %v3996_v9 = vadd.f32 %v8558_v42, %v8542_v54 }
 0x606   :  { %v3846_v20 = vpop.f32.mrf.mxu0 }
 0x607   :  { %v8587_v50 = vpop.f32.mrf.mxu1  ;;  %v3990_v2 = vadd.f32 %v3989_v13, %v3846_v20 }
 0x608   :  { %v8545_v10 = vpop.f32.mrf.mxu0 }
 0x609   :  { %v4219_v3 = vpop.f32.mrf.mxu1  ;;  %v4008_v58 = vadd.f32 %v8561_v24, %v8545_v10 }
 0x60a   :  { %v3866_v29 = vpop.f32.mrf.mxu0 }
 0x60b   :  { %v8590_v49 = vpop.f32.mrf.mxu1  ;;  %v4002_v44 = vadd.f32 %v4001_v32, %v3866_v29 }
 0x60c   :  { %v8548_v43 = vpop.f32.mrf.mxu0 }
 0x60d   :  { %v4235_v38 = vpop.f32.mrf.mxu1  ;;  %v4020_v48 = vadd.f32 %v8564_v5, %v8548_v43 }
 0x60e   :  { %v3886_v39 = vpop.f32.mrf.mxu0 }
 0x60f   :  { %v8593_v27 = vpop.f32.mrf.mxu1  ;;  %v4014_v41 = vadd.f32 %v4013_v62, %v3886_v39  ;;  %v10736_v62 = vld [vmem:[%s11806_s6 + $0x18] sm:$0xff]  ;;  %v10745_v39 = vld [vmem:[%s11806_s6 + $0x10] sm:$0xff] }
 0x610   :  { %v8571_v15 = vpop.f32.mrf.mxu0 }
 0x611   :  { %v4251_v63 = vpop.f32.mrf.mxu1  ;;  %v4103_v12 = vadd.f32 %v8571_v15, %v3984_v22  ;;  %v10767_v22 = vld [vmem:[%s11806_s6] sm:$0xff] }
 0x612   :  { %v4095_v8 = vpop.f32.mrf.mxu0 }
 0x613   :  { %v8596_v25 = vpop.f32.mrf.mxu1  ;;  %v4096_v6 = vadd.f32 %v4095_v8, %v3978_v7  ;;  %v4228_v34 = vadd.f32 %v8587_v50, %v4103_v12  ;;  %v10750_v8 = vand.u32 4294901760, %v10745_v39 }
 0x614   :  { %v8574_v57 = vpop.f32.mrf.mxu0 }
 0x615   :  { %v10728_v33 = vpop.f32.mrf.mxu1  ;;  %v4117_v26 = vadd.f32 %v8574_v57, %v3996_v9  ;;  %v4220_v56 = vadd.f32 %v4219_v3, %v4096_v6  ;;  %v10756_v57 = vld [vmem:[%s11806_s6 + $0x8] sm:$0xff]  ;;  %v10791_v9 = vsub.f32 %v10745_v39, %v10750_v8 }
 0x616   :  { %v4109_v19 = vpop.f32.mrf.mxu0 }
 0x617   :  { %v8619_v16 = vpop.f32.mrf.mxu1  ;;  %v4110_v31 = vadd.f32 %v4109_v19, %v3990_v2  ;;  %v4244_v47 = vadd.f32 %v8590_v49, %v4117_v26  ;;  %v10740_v49 = vand.u32 4294901760, %v10736_v62  ;;  %v10802_v2 = vand.u32 4294901760, %v10791_v9 }
 0x618   :  { %v8577_v55 = vpop.f32.mrf.mxu0 }
 0x619   :  { %v4467_v11 = vpop.f32.mrf.mxu1  ;;  %v4131_v52 = vadd.f32 %v8577_v55, %v4008_v58  ;;  %v4236_v40 = vadd.f32 %v4235_v38, %v4110_v31  ;;  %8629 = vmatprep.subr.mxu0 %v10740_v49  ;;  %v10761_v55 = vand.u32 4294901760, %v10756_v57  ;;  %v10779_v7 = vsub.f32 %v10736_v62, %v10740_v49 }
 0x61a   :  { %v4123_v1 = vpop.f32.mrf.mxu0  ;;  %8630 = vmatpush3.msra.mxu0 %v10740_v49  ;;  %v4968_v26 = vsub.f32 %v10791_v9, %v10802_v2 }
 0x61b   :  { %v8622_v0 = vpop.f32.mrf.mxu1  ;;  %v4124_v46 = vadd.f32 %v4123_v1, %v4002_v44  ;;  %v4260_v24 = vadd.f32 %v8593_v27, %v4131_v52  ;;  %8631 = vmatprep.subr.mxu0 %v10750_v8  ;;  %v10772_v1 = vand.u32 4294901760, %v10767_v22  ;;  %v10785_v12 = vand.u32 4294901760, %v10779_v7 }
 0x61c   :  { %v8580_v36 = vpop.f32.mrf.mxu0  ;;  %8632 = vmatpush3.msra.mxu0 %v10750_v8  ;;  %v10795_v6 = vsub.f32 %v10756_v57, %v10761_v55 }
 0x61d   :  { %v4479_v35 = vpop.f32.mrf.mxu1  ;;  %v4145_v59 = vadd.f32 %v8580_v36, %v4020_v48  ;;  %v4252_v20 = vadd.f32 %v4251_v63, %v4124_v46  ;;  %8633 = vmatprep.subr.mxu0 %v10761_v55  ;;  %v4961_v36 = vsub.f32 %v10779_v7, %v10785_v12  ;;  %v11992_v48 = vld [vmem:[#allocation33_spill] sm:$0xff]  ;;  %v11994_v46 = vld [vmem:[#allocation26_spill] sm:$0xff] }
 0x61e   :  { %v4137_v37 = vpop.f32.mrf.mxu0  ;;  %8634 = vmatpush3.msra.mxu0 %v10761_v55 }
 0x61f   :  { %v8625_v21 = vpop.f32.mrf.mxu1  ;;  %v4138_v4 = vadd.f32 %v4137_v37, %v4014_v41  ;;  %v4276_v29 = vadd.f32 %v8596_v25, %v4145_v59  ;;  %8635 = vmatprep.subr.mxu0 %v10772_v1  ;;  %v10799_v37 = vsub.f32 %v10767_v22, %v10772_v1 }
 0x620   :  { %v8603_v51 = vpop.f32.mrf.mxu0  ;;  %8636 = vmatpush3.msra.mxu0 %v10772_v1 }
 0x621   :  { %v4359_v28 = vadd.f32 %v8603_v51, %v4228_v34  ;;  %v4491_v60 = vpop.f32.mrf.mxu1  ;;  %v4268_v63 = vadd.f32 %v10728_v33, %v4138_v4  ;;  %8669 = vmatprep.subr.mxu0 %v10779_v7  ;;  %v10807_v34 = vand.u32 4294901760, %v10795_v6  ;;  %v10812_v58 = vand.u32 4294901760, %v10799_v37 }
 0x622   :  { %v4352_v30 = vpop.f32.mrf.mxu0 }
 0x623   :  { %v4474_v14 = vadd.f32 %v8619_v16, %v4359_v28  ;;  %v4353_v53 = vadd.f32 %v4352_v30, %v4220_v56  ;;  %v8628_v43 = vpop.f32.mrf.mxu1  ;;  %v4975_v51 = vsub.f32 %v10795_v6, %v10807_v34  ;;  %v4982_v28 = vsub.f32 %v10799_v37, %v10812_v58 }
 0x624   :  { %v8606_v18 = vpop.f32.mrf.mxu0 }
 0x625   :  { %v4468_v17 = vadd.f32 %v4467_v11, %v4353_v53  ;;  %v4371_v45 = vadd.f32 %v8606_v18, %v4244_v47  ;;  %4523 = vrot.lane.b32.xlu1 %v4474_v14, %s9092_s4  ;;  %v4503_v33 = vpop.f32.mrf.mxu1  ;;  %v4976_v31 = vand.u32 4294901760, %v4975_v51  ;;  %v4983_v56 = vand.u32 4294901760, %v4982_v28  ;;  %v11990_v14 = vld [vmem:[#allocation46_spill] sm:$0xff] }
 0x626   :  { %v4364_v23 = vpop.f32.mrf.mxu0 }
 0x627   :  { %v4486_v42 = vadd.f32 %v8622_v0, %v4371_v45  ;;  %v4365_v13 = vadd.f32 %v4364_v23, %v4236_v40  ;;  %4521 = vrot.lane.b32.xlu0 %v4468_v17, %s9092_s4  ;;  %v4962_v0 = vand.u32 4294901760, %v4961_v36  ;;  %v11996_v45 = vld [vmem:[#allocation38_spill] sm:$0xff]  ;;  %v11998_v23 = vld [vmem:[#allocation31_spill] sm:$0xff] }
 0x628   :  { %v8609_v32 = vpop.f32.mrf.mxu0 }
 0x629   :  { %v4480_v5 = vadd.f32 %v4479_v35, %v4365_v13  ;;  %v4383_v54 = vadd.f32 %v8609_v32, %v4260_v24  ;;  %4527 = vrot.lane.b32.xlu1 %v4486_v42, %s9092_s4  ;;  %8649 = vmatprep.subr.mxu1 %v4962_v0  ;;  %v4969_v35 = vand.u32 4294901760, %v4968_v26  ;;  %v12000_v13 = vld [vmem:[#allocation28_spill] sm:$0xff]  ;;  %v12002_v32 = vld [vmem:[#allocation43_spill] sm:$0xff] }
 0x62a   :  { %v4376_v50 = vpop.f32.mrf.mxu0  ;;  %8650 = vmatpush3.msra.mxu1 %v4962_v0 }
 0x62b   :  { %v4498_v10 = vadd.f32 %v8625_v21, %v4383_v54  ;;  %v4377_v3 = vadd.f32 %v4376_v50, %v4252_v20  ;;  %4525 = vrot.lane.b32.xlu0 %v4480_v5, %s9092_s4  ;;  %8651 = vmatprep.subr.mxu1 %v4969_v35 }
 0x62c   :  { %v8612_v38 = vpop.f32.mrf.mxu0  ;;  %8652 = vmatpush3.msra.mxu1 %v4969_v35 }
 0x62d   :  { %v4492_v27 = vadd.f32 %v4491_v60, %v4377_v3  ;;  %v4395_v15 = vadd.f32 %v8612_v38, %v4276_v29  ;;  %4531 = vrot.lane.b32.xlu1 %v4498_v10, %s9092_s4  ;;  %8653 = vmatprep.subr.mxu1 %v4976_v31 }
 0x62e   :  { %v4388_v25 = vpop.f32.mrf.mxu0  ;;  %8654 = vmatpush3.msra.mxu1 %v4976_v31 }
 0x62f   :  { %v4510_v19 = vadd.f32 %v8628_v43, %v4395_v15  ;;  %v4389_v16 = vadd.f32 %v4388_v25, %v4268_v63  ;;  %4529 = vrot.lane.b32.xlu0 %v4492_v27, %s9092_s4  ;;  %8655 = vmatprep.subr.mxu1 %v4983_v56 }
 0x630   :  { %8656 = vmatpush3.msra.mxu1 %v4983_v56 }
 0x631   :  { %v4504_v11 = vadd.f32 %v4503_v33, %v4389_v16  ;;  %4535 = vrot.lane.b32.xlu1 %v4510_v19, %s9092_s4  ;;  %8689 = vmatprep.subr.mxu1 %v10740_v49 }
 0x633   :  { %4533 = vrot.lane.b32.xlu0 %v4504_v11, %s9092_s4  ;;  %s9095_s4 = smov 96  }
 0x697   :  { %v4524_v44 = vpop.permute.xlu1 %4523 }
 0x698   :  { %v10818_v30 = vadd.f32 %v4524_v44, %v10069_v61 }
 0x699   :  { %v4522_v52 = vpop.permute.xlu0 %4521 }
 0x69a   :  { %11989 = vst [vmem:[#allocation23_spill] sm:$0xff] %v10818_v30  ;;  %v10821_v53 = vadd.f32 %v4522_v52, %v11990_v14  ;;  %4754 = vrot.lane.b32.xlu1 %v10818_v30, %s9094_s13 }
 0x69b   :  { %v4528_v47 = vpop.permute.xlu1 %4527 }
 0x69c   :  { %11991 = vst [vmem:[#allocation22_spill] sm:$0xff] %v10821_v53  ;;  %v10826_v21 = vadd.f32 %v4528_v47, %v11992_v48  ;;  %4752 = vrot.lane.b32.xlu0 %v10821_v53, %s9094_s13 }
 0x69d   :  { %v4526_v18 = vpop.permute.xlu0 %4525 }
 0x69e   :  { %11993 = vst [vmem:[#allocation24_spill] sm:$0xff] %v10826_v21  ;;  %v10831_v17 = vadd.f32 %v4526_v18, %v11994_v46  ;;  %4758 = vrot.lane.b32.xlu1 %v10826_v21, %s9094_s13 }
 0x69f   :  { %v4532_v61 = vpop.permute.xlu1 %4531 }
 0x6a0   :  { %11995 = vst [vmem:[#allocation46_spill] sm:$0xff] %v10831_v17  ;;  %v10836_v40 = vadd.f32 %v4532_v61, %v11996_v45  ;;  %4756 = vrot.lane.b32.xlu0 %v10831_v17, %s9094_s13 }
 0x6a1   :  { %v4530_v41 = vpop.permute.xlu0 %4529 }
 0x6a2   :  { %11997 = vst [vmem:[#allocation33_spill] sm:$0xff] %v10836_v40  ;;  %v10841_v59 = vadd.f32 %v4530_v41, %v11998_v23  ;;  %4762 = vrot.lane.b32.xlu1 %v10836_v40, %s9094_s13 }
 0x6a3   :  { %v4536_v42 = vpop.permute.xlu1 %4535 }
 0x6a4   :  { %11999 = vst [vmem:[#allocation26_spill] sm:$0xff] %v10841_v59  ;;  %v10846_v24 = vadd.f32 %v4536_v42, %v12000_v13  ;;  %4760 = vrot.lane.b32.xlu0 %v10841_v59, %s9094_s13 }
 0x6a5   :  { %v4534_v60 = vpop.permute.xlu0 %4533 }
 0x6a6   :  { %12001 = vst [vmem:[#allocation38_spill] sm:$0xff] %v10846_v24  ;;  %v10851_v4 = vadd.f32 %v4534_v60, %v12002_v32  ;;  %4766 = vrot.lane.b32.xlu1 %v10846_v24, %s9094_s13 }
 0x6a8   :  { %12003 = vst [vmem:[#allocation31_spill] sm:$0xff] %v10851_v4  ;;  %4764 = vrot.lane.b32.xlu0 %v10851_v4, %s9094_s13 }
 0x6aa   :  { %5634 = vrot.lane.b32.xlu1 %v10745_v39, %s9095_s4 }
 0x6ac   :  { %5636 = vrot.lane.b32.xlu0 %v10736_v62, %s9095_s4 }
 0x6ae   :  { %5630 = vrot.lane.b32.xlu1 %v10767_v22, %s9095_s4 }
 0x6b0   :  { %5632 = vrot.lane.b32.xlu0 %v10756_v57, %s9095_s4 }
 0x6b2   :  { %4563 = vrot.lane.b32.xlu1 %v10818_v30, %s9095_s4 }
 0x6b4   :  { %4561 = vrot.lane.b32.xlu0 %v10821_v53, %s9095_s4 }
 0x6b6   :  { %4567 = vrot.lane.b32.xlu1 %v10826_v21, %s9095_s4 }
 0x6b8   :  { %4565 = vrot.lane.b32.xlu0 %v10831_v17, %s9095_s4 }
 0x6ba   :  { %4571 = vrot.lane.b32.xlu1 %v10836_v40, %s9095_s4 }
 0x6bc   :  { %4569 = vrot.lane.b32.xlu0 %v10841_v59, %s9095_s4 }
 0x6be   :  { %4575 = vrot.lane.b32.xlu1 %v10846_v24, %s9095_s4 }
 0x6c0   :  { %4573 = vrot.lane.b32.xlu0 %v10851_v4, %s9095_s4 }
 0x70c   :  { %v4755_v5 = vpop.permute.xlu1 %4754 }
 0x70d   :  { %v4770_v54 = vsel %vm810_vm2, %v4755_v5, 0 }
 0x70e   :  { %v10882_v20 = vand.u32 4294901760, %v4770_v54  ;;  %v4753_v50 = vpop.permute.xlu0 %4752 }
 0x70f   :  { %v4768_v62 = vsel %vm810_vm2, %v4753_v50, 0 }
 0x710   :  { %v10886_v10 = vsub.f32 %v4770_v54, %v10882_v20  ;;  %v10888_v3 = vand.u32 4294901760, %v4768_v62  ;;  %v4759_v29 = vpop.permute.xlu1 %4758 }
 0x711   :  { %v4774_v43 = vsel %vm810_vm2, %v4759_v29, 0 }
 0x712   :  { %v4865_v38 = vand.u32 4294901760, %v10886_v10  ;;  %v10893_v39 = vsub.f32 %v4768_v62, %v10888_v3  ;;  %v10895_v27 = vand.u32 4294901760, %v4774_v43  ;;  %8657 = vmatprep.mubr.f32.mxu1 %v10888_v3  ;;  %v4757_v15 = vpop.permute.xlu0 %4756 }
 0x713   :  { %v4772_v63 = vsel %vm810_vm2, %v4757_v15, 0  ;;  %8658 = vmatmul.mubr.f32.vlgmr.msra.gmra.mxu1 %v10882_v20 }
 0x714   :  { %v4855_v25 = vand.u32 4294901760, %v10893_v39  ;;  %v10902_v57 = vsub.f32 %v4774_v43, %v10895_v27  ;;  %v10904_v19 = vand.u32 4294901760, %v4772_v63  ;;  %v4763_v16 = vpop.permute.xlu1 %4762  ;;  %8690 = vmatpush3.msra.mxu1 %v10740_v49  ;;  %v4866_v22 = vsub.f32 %v10886_v10, %v4865_v38 }
 0x715   :  { %v4778_v33 = vsel %vm810_vm2, %v4763_v16, 0  ;;  %8691 = vmatprep.subr.mxu1 %v10750_v8 }
 0x716   :  { %v4885_v11 = vand.u32 4294901760, %v10902_v57  ;;  %v10914_v36 = vsub.f32 %v4772_v63, %v10904_v19  ;;  %v10916_v0 = vand.u32 4294901760, %v4778_v33  ;;  %8660 = vmatprep.mubr.f32.mxu1 %v10904_v19  ;;  %v4761_v26 = vpop.permute.xlu0 %4760  ;;  %8692 = vmatpush3.msra.mxu1 %v10750_v8  ;;  %v4856_v51 = vsub.f32 %v10893_v39, %v4855_v25 }
 0x717   :  { %v4776_v35 = vsel %vm810_vm2, %v4761_v26, 0  ;;  %8661 = vmatmul.mubr.f32.gmra.mxu1 %v10895_v27  ;;  %8693 = vmatprep.subr.mxu1 %v10761_v55  ;;  %v4867_v48 = vand.u32 4294901760, %v4866_v22 }
 0x718   :  { %v4875_v31 = vand.u32 4294901760, %v10914_v36  ;;  %v10926_v28 = vsub.f32 %v4778_v33, %v10916_v0  ;;  %v10928_v56 = vand.u32 4294901760, %v4776_v35  ;;  %v4767_v44 = vpop.permute.xlu1 %4766  ;;  %8694 = vmatpush3.msra.mxu1 %v10761_v55  ;;  %v4886_v52 = vsub.f32 %v10902_v57, %v4885_v11 }
 0x719   :  { %v4782_v14 = vsel %vm810_vm2, %v4767_v44, 0  ;;  %v4857_v47 = vand.u32 4294901760, %v4856_v51  ;;  %8695 = vmatprep.subr.mxu1 %v10772_v1 }
 0x71a   :  { %v4905_v18 = vand.u32 4294901760, %v10926_v28  ;;  %v10938_v46 = vsub.f32 %v4776_v35, %v10928_v56  ;;  %v10940_v61 = vand.u32 4294901760, %v4782_v14  ;;  %8663 = vmatprep.mubr.f32.mxu1 %v10928_v56  ;;  %v4765_v45 = vpop.permute.xlu0 %4764  ;;  %8696 = vmatpush3.msra.mxu1 %v10772_v1  ;;  %v4876_v23 = vsub.f32 %v10914_v36, %v4875_v31 }
 0x71b   :  { %8637 = vmatprep.mubr.f32.mxu0 %v4857_v47  ;;  %v4780_v41 = vsel %vm810_vm2, %v4765_v45, 0  ;;  %8664 = vmatmul.mubr.f32.gmra.mxu1 %v10916_v0  ;;  %v4887_v5 = vand.u32 4294901760, %v4886_v52  ;;  %v12005_v47 = vld [vmem:[#allocation32_spill] sm:$0xff] }
 0x71c   :  { %v4895_v42 = vand.u32 4294901760, %v10938_v46  ;;  %v10949_v13 = vsub.f32 %v4782_v14, %v10940_v61  ;;  %v10951_v60 = vand.u32 4294901760, %v4780_v41  ;;  %8638 = vmatmul.mubr.f32.vlgmr.msra.gmra.mxu0 %v4867_v48  ;;  %v10953_v32 = vpop.permute.xlu1 %5634  ;;  %8729 = vmatprep.subr.mxu1 %v10740_v49  ;;  %v4877_v54 = vand.u32 4294901760, %v4876_v23 }
 0x71d   :  { %8670 = vmatpush3.msra.mxu0 %v10779_v7  ;;  %v4906_v50 = vsub.f32 %v10926_v28, %v4905_v18 }
 0x71e   :  { %v4925_v62 = vand.u32 4294901760, %v10949_v13  ;;  %v10962_v29 = vsub.f32 %v4780_v41, %v10951_v60  ;;  %8666 = vmatprep.mubr.f32.mxu1 %v10951_v60  ;;  %v5637_v43 = vpop.permute.xlu0 %5636  ;;  %8671 = vmatprep.subr.mxu0 %v10791_v9  ;;  %v4896_v15 = vsub.f32 %v10938_v46, %v4895_v42 }
 0x71f   :  { %8640 = vmatprep.mubr.f32.mxu0 %v4877_v54  ;;  %8667 = vmatmul.mubr.f32.gmra.mxu1 %v10940_v61  ;;  %v4907_v33 = vand.u32 4294901760, %v4906_v50 }
 0x720   :  { %v4915_v7 = vand.u32 4294901760, %v10962_v29  ;;  %8641 = vmatmul.mubr.f32.gmra.mxu0 %v4887_v5  ;;  %v10969_v63 = vpop.permute.xlu1 %5630  ;;  %8697 = vmatprep.mubr.f32.mxu1 %v4855_v25  ;;  %v4897_v16 = vand.u32 4294901760, %v4896_v15  ;;  %v4926_v22 = vsub.f32 %v10949_v13, %v4925_v62 }
 0x721   :  { %8672 = vmatpush3.msra.mxu0 %v10791_v9  ;;  %v12004_v9 = vld [vmem:[#allocation45_spill] sm:$0xff]  ;;  %v11030_v15 = vand.u32 4294901760, %v10969_v63 }
 0x722   :  { %8643 = vmatprep.mubr.f32.mxu0 %v4897_v16  ;;  %v10973_v26 = vpop.permute.xlu0 %5632  ;;  %8673 = vmatprep.subr.mxu0 %v10795_v6  ;;  %v4916_v35 = vsub.f32 %v10962_v29, %v4915_v7  ;;  %v4927_v52 = vand.u32 4294901760, %v4926_v22 }
 0x723   :  { %8698 = vmatmul.mubr.f32.vlgmr.msra.gmra.mxu1 %v4865_v38  ;;  %8674 = vmatpush3.msra.mxu0 %v10795_v6 }
 0x724   :  { %8644 = vmatmul.mubr.f32.gmra.mxu0 %v4907_v33  ;;  %v4564_v25 = vpop.permute.xlu1 %4563  ;;  %8700 = vmatprep.mubr.f32.mxu1 %v4875_v31  ;;  %v4917_v51 = vand.u32 4294901760, %v4916_v35  ;;  %v10989_v31 = vand.u32 4294901760, %v5637_v43 }
 0x725   :  { %v4586_v44 = vmul.f32 %v4564_v25, %v12004_v9  ;;  %8675 = vmatprep.subr.mxu0 %v10799_v37  ;;  %8730 = vmatpush3.msra.mxu1 %v10740_v49  ;;  %v12006_v49 = vld [vmem:[#allocation25_spill] sm:$0xff] }
 0x726   :  { %8646 = vmatprep.mubr.f32.mxu0 %v4917_v51  ;;  %v4562_v14 = vpop.permute.xlu0 %4561  ;;  %8676 = vmatpush3.msra.mxu0 %v10799_v37  ;;  %v11002_v23 = vsub.f32 %v5637_v43, %v10989_v31  ;;  %v11012_v43 = vand.u32 4294901760, %v10973_v26 }
 0x727   :  { %v4585_v48 = vmul.f32 %v4562_v14, %v12005_v47  ;;  %8701 = vmatmul.mubr.f32.gmra.mxu1 %v4885_v11  ;;  %v4596_v6 = vsel %vm810_vm2, %v4586_v44, 0.0  ;;  %8709 = vmatprep.subr.mxu0 %v10785_v12  ;;  %v10999_v11 = vand.u32 4294901760, %v10953_v32 }
 0x728   :  { %8647 = vmatmul.mubr.f32.gmra.mxu0 %v4927_v52  ;;  %4597 = vadd.xlane.f32.xlu1 %v4596_v6  ;;  %v4568_v38 = vpop.permute.xlu1 %4567  ;;  %v11037_v16 = vsub.f32 %v10973_v26, %v11012_v43  ;;  %v12013_v26 = vld [vmem:[#allocation35_spill] sm:$0xff] }
 0x729   :  { %v4588_v45 = vmul.f32 %v4568_v38, %v12006_v49  ;;  %8677 = vmatprep.mubr.f32.mxu0 %v10893_v39  ;;  %8703 = vmatprep.mubr.f32.mxu1 %v4895_v42  ;;  %v4593_v37 = vsel %vm810_vm2, %v4585_v48, 0.0  ;;  %v12007_v42 = vld [vmem:[#allocation36_spill] sm:$0xff] }
 0x72a   :  { %4594 = vadd.xlane.f32.xlu0 %v4593_v37  ;;  %v4566_v41 = vpop.permute.xlu0 %4565  ;;  %8731 = vmatprep.subr.mxu1 %v10750_v8  ;;  %v11059_v51 = vand.u32 4294901760, %v11037_v16 }
 0x72b   :  { %8704 = vmatmul.mubr.f32.gmra.mxu1 %v4905_v18  ;;  %v4602_v39 = vsel %vm810_vm2, %v4588_v45, 0.0  ;;  %v4587_v5 = vmul.f32 %v4566_v41, %v12007_v42  ;;  %v12008_v18 = vld [vmem:[#allocation44_spill] sm:$0xff] }
 0x72c   :  { %8678 = vmatmul.mubr.f32.vlgmr.msra.gmra.mxu0 %v10886_v10  ;;  %8706 = vmatprep.mubr.f32.mxu1 %v4915_v7  ;;  %v4572_v54 = vpop.permute.xlu1 %4571  ;;  %12014 = vst [vmem:[#allocation45_spill] sm:$0xff] %v11059_v51 }
 0x72d   :  { %8680 = vmatprep.mubr.f32.mxu0 %v10914_v36  ;;  %8710 = vmatpush3.msra.mxu0 %v10785_v12  ;;  %v11018_v12 = vsub.f32 %v10953_v32, %v10999_v11  ;;  %v11024_v36 = vand.u32 4294901760, %v11002_v23  ;;  %v12010_v32 = vld [vmem:[#allocation30_spill] sm:$0xff] }
 0x72e   :  { %8732 = vmatpush3.msra.mxu1 %v10750_v8  ;;  %4603 = vadd.xlane.f32.xlu0 %v4602_v39  ;;  %v4570_v10 = vpop.permute.xlu0 %4569  ;;  %v4590_v7 = vmul.f32 %v4572_v54, %v12010_v32 }
 0x72f   :  { %v4589_v50 = vmul.f32 %v4570_v10, %v12008_v18  ;;  %8707 = vmatmul.mubr.f32.gmra.mxu1 %v4925_v62  ;;  %8711 = vmatprep.subr.mxu0 %v10802_v2  ;;  %12009 = vst [vmem:[#allocation28_spill] sm:$0xff] %v11024_v36  ;;  %v5843_v22 = vsub.f32 %v11002_v23, %v11024_v36  ;;  %v11046_v35 = vand.u32 4294901760, %v11018_v12 }
 0x730   :  { %8681 = vmatmul.mubr.f32.gmra.mxu0 %v10902_v57  ;;  %8733 = vmatprep.subr.mxu1 %v10761_v55  ;;  %v4599_v57 = vsel %vm810_vm2, %v4587_v5, 0.0  ;;  %v4608_v25 = vsel %vm810_vm2, %v4590_v7, 0.0 }
 0x731   :  { %8683 = vmatprep.mubr.f32.mxu0 %v10938_v46  ;;  %8712 = vmatpush3.msra.mxu0 %v10802_v2  ;;  %v4605_v8 = vsel %vm810_vm2, %v4589_v50, 0.0  ;;  %v12011_v2 = vld [vmem:[#allocation37_spill] sm:$0xff]  ;;  %12012 = vst [vmem:[#allocation43_spill] sm:$0xff] %v11046_v35 }
 0x732   :  { %8734 = vmatpush3.msra.mxu1 %v10761_v55  ;;  %8737 = vmatprep.mubr.f32.mxu1 %v10888_v3  ;;  %v4574_v62 = vpop.permute.xlu0 %4573  ;;  %v4576_v55 = vpop.permute.xlu1 %4575 }
 0x733   :  { %8735 = vmatprep.subr.mxu1 %v10772_v1  ;;  %4600 = vadd.xlane.f32.xlu0 %v4599_v57  ;;  %v4591_v46 = vmul.f32 %v4574_v62, %v12011_v2 }
 0x734   :  { %8736 = vmatpush3.msra.mxu1 %v10772_v1  ;;  %4606 = vadd.xlane.f32.xlu1 %v4605_v8  ;;  %v11052_v1 = vsub.f32 %v10969_v63, %v11030_v15  ;;  %v5850_v63 = vsub.f32 %v11018_v12, %v11046_v35 }
 0x735   :  { %8684 = vmatmul.mubr.f32.gmra.mxu0 %v10926_v28  ;;  %8713 = vmatprep.subr.mxu0 %v10807_v34  ;;  %v4611_v33 = vsel %vm810_vm2, %v4591_v46, 0.0  ;;  %v4592_v28 = vmul.f32 %v4576_v55, %v12013_v26 }
 0x736   :  { %8738 = vmatmul.mubr.f32.vlgmr.msra.gmra.mxu1 %v10882_v20  ;;  %8686 = vmatprep.mubr.f32.mxu0 %v10962_v29  ;;  %v5844_v29 = vand.u32 4294901760, %v5843_v22  ;;  %v11071_v9 = vand.u32 4294901760, %v11052_v1  ;;  %v5851_v44 = vand.u32 4294901760, %v5850_v63 }
 0x737   :  { %8714 = vmatpush3.msra.mxu0 %v10807_v34  ;;  %8740 = vmatprep.mubr.f32.mxu1 %v10904_v19  ;;  %v4614_v34 = vsel %vm810_vm2, %v4592_v28, 0.0 }
 0x738   :  { %4609 = vadd.xlane.f32.xlu0 %v4608_v25  ;;  %4612 = vadd.xlane.f32.xlu1 %v4611_v33  ;;  %12015 = vst [vmem:[#allocation32_spill] sm:$0xff] %v11071_v9 }
 0x739   :  { %8687 = vmatmul.mubr.f32.gmra.mxu0 %v10949_v13  ;;  %8715 = vmatprep.subr.mxu0 %v10812_v58  ;;  %v5857_v13 = vsub.f32 %v11037_v16, %v11059_v51 }
 0x73a   :  { %8741 = vmatmul.mubr.f32.gmra.mxu1 %v10895_v27  ;;  %8716 = vmatpush3.msra.mxu0 %v10812_v58  ;;  %v5864_v58 = vsub.f32 %v11052_v1, %v11071_v9 }
 0x73b   :  { %8717 = vmatprep.mubr.f32.mxu0 %v10888_v3  ;;  %8743 = vmatprep.mubr.f32.mxu1 %v10928_v56  ;;  %v5858_v3 = vand.u32 4294901760, %v5857_v13 }
 0x73c   :  { %4615 = vadd.xlane.f32.xlu0 %v4614_v34  ;;  %8749 = vmatprep.subr.mxu0 %v10989_v31 }
 0x73d   :  { %8718 = vmatmul.mubr.f32.vlgmr.msra.gmra.mxu0 %v10882_v20  ;;  %8769 = vmatprep.subr.mxu1 %v5844_v29  ;;  %v5865_v20 = vand.u32 4294901760, %v5864_v58 }
 0x73e   :  { %8744 = vmatmul.mubr.f32.gmra.mxu1 %v10916_v0  ;;  %8720 = vmatprep.mubr.f32.mxu0 %v10904_v19 }
 0x73f   :  { %8746 = vmatprep.mubr.f32.mxu1 %v10951_v60  ;;  %8750 = vmatpush3.msra.mxu0 %v10989_v31 }
 0x740   :  { %8770 = vmatpush3.msra.mxu1 %v5844_v29  ;;  %8751 = vmatprep.subr.mxu0 %v10999_v11 }
 0x741   :  { %8721 = vmatmul.mubr.f32.gmra.mxu0 %v10895_v27  ;;  %8771 = vmatprep.subr.mxu1 %v5851_v44 }
 0x742   :  { %8747 = vmatmul.mubr.f32.gmra.mxu1 %v10940_v61  ;;  %8723 = vmatprep.mubr.f32.mxu0 %v10928_v56 }
 0x743   :  { %8752 = vmatpush3.msra.mxu0 %v10999_v11  ;;  %8772 = vmatpush3.msra.mxu1 %v5851_v44 }
 0x744   :  { %8753 = vmatprep.subr.mxu0 %v11012_v43  ;;  %8773 = vmatprep.subr.mxu1 %v5858_v3 }
 0x745   :  { %8724 = vmatmul.mubr.f32.gmra.mxu0 %v10916_v0  ;;  %8774 = vmatpush3.msra.mxu1 %v5858_v3 }
 0x746   :  { %8726 = vmatprep.mubr.f32.mxu0 %v10951_v60  ;;  %8754 = vmatpush3.msra.mxu0 %v11012_v43 }
 0x747   :  { %8755 = vmatprep.subr.mxu0 %v11030_v15  ;;  %8775 = vmatprep.subr.mxu1 %v5865_v20 }
 0x748   :  { %8756 = vmatpush3.msra.mxu0 %v11030_v15  ;;  %8776 = vmatpush3.msra.mxu1 %v5865_v20 }
 0x749   :  { %8727 = vmatmul.mubr.f32.gmra.mxu0 %v10940_v61  ;;  %8789 = vmatprep.subr.mxu0 %v11002_v23 }
 0x74a   :  { %8809 = vmatprep.subr.mxu1 %v10989_v31 }
 0x7b1   :  { %v4598_v0 = vpop.xlane.xlu1 %4597 }
 0x7b2   :  { %v4618_v47 = vsel %vm96_vm13, %v4598_v0, -1e+30 }
 0x7b3   :  { %v4595_v27 = vpop.xlane.xlu0 %4594  ;;  %v4626_v8 = vsel %vm810_vm2, %v4618_v47, -inf }
 0x7b4   :  { %v4617_v5 = vsel %vm95_vm3, %v4595_v27, -1e+30 }
 0x7b5   :  { %v4625_v55 = vsel %vm810_vm2, %v4617_v5, -inf }
 0x7b7   :  { %v4604_v19 = vpop.xlane.xlu0 %4603 }
 0x7b8   :  { %v4620_v10 = vsel %vm98_vm14, %v4604_v19, -1e+30 }
 0x7b9   :  { %v4628_v33 = vsel %vm810_vm2, %v4620_v10, -inf }
 0x7bc   :  { %v4601_v56 = vpop.xlane.xlu0 %4600 }
 0x7bd   :  { %v4607_v52 = vpop.xlane.xlu1 %4606  ;;  %v4619_v50 = vsel %vm97_vm12, %v4601_v56, -1e+30 }
 0x7be   :  { %v4621_v61 = vsel %vm99_vm15, %v4607_v52, -1e+30  ;;  %v4627_v22 = vsel %vm810_vm2, %v4619_v50, -inf }
 0x7bf   :  { %v4629_v57 = vsel %vm810_vm2, %v4621_v61, -inf }
 0x7c0   :  { %v4630_v28 = vmax.f32 %v4625_v55, %v4629_v57 }
 0x7c1   :  { %v11100_v48 = vpop.xlane.xlu1 %4612  ;;  %v4610_v6 = vpop.xlane.xlu0 %4609 }
 0x7c2   :  { %v4623_v45 = vsel %vm101_vm1, %v11100_v48, -1e+30  ;;  %v4622_v41 = vsel %vm100_vm0, %v4610_v6, -1e+30 }
 0x7c3   :  { %v4631_v39 = vsel %vm810_vm2, %v4622_v41, -inf  ;;  %v4633_v62 = vsel %vm810_vm2, %v4623_v45, -inf }
 0x7c4   :  { %v4632_v7 = vmax.f32 %v4626_v8, %v4631_v39  ;;  %v4634_v25 = vmax.f32 %v4627_v22, %v4633_v62 }
 0x7c5   :  { %v4616_v32 = vpop.xlane.xlu0 %4615 }
 0x7c6   :  { %v4624_v46 = vsel %vm102_vm4, %v4616_v32, -1e+30  ;;  %v4637_v63 = vmax.f32 %v4630_v28, %v4632_v7 }
 0x7c7   :  { %v4635_v26 = vsel %vm810_vm2, %v4624_v46, -inf }
 0x7c8   :  { %v4636_v29 = vmax.f32 %v4628_v33, %v4635_v26 }
 0x7ca   :  { %v4638_v34 = vmax.f32 %v4634_v25, %v4636_v29 }
 0x7cc   :  { %v4639_v13 = vmax.f32 %v4637_v63, %v4638_v34 }
 0x7ce   :  { %v4640_v44 = vrot.slane %v4639_v13, 4 }
 0x7d0   :  { %v4641_v58 = vmax.f32 %v4639_v13, %v4640_v44 }
 0x7d2   :  { %v4642_v3 = vrot.slane %v4641_v58, 2 }
 0x7d3   :  { %v11132_v20 = vpop.f32.mrf.mxu1 }
 0x7d4   :  { %v4643_v47 = vmax.f32 %v4641_v58, %v4642_v3 }
 0x7d5   :  { %v11134_v61 = vpop.f32.mrf.mxu1 }
 0x7d6   :  { %v4644_v45 = vrot.slane %v4643_v47, 1 }
 0x7d7   :  { %v11136_v41 = vpop.f32.mrf.mxu1 }
 0x7d8   :  { %v4645_v39 = vmax.f32 %v4643_v47, %v4644_v45 }
 0x7d9   :  { %v11138_v5 = vpop.f32.mrf.mxu1 }
 0x7da   :  { %v4646_v10 = vsub.f32 %v4595_v27, %v4645_v39  ;;  %v4647_v50 = vsub.f32 %v4598_v0, %v4645_v39  ;;  %v4648_v8 = vsub.f32 %v4601_v56, %v4645_v39  ;;  %v4649_v57 = vsub.f32 %v4604_v19, %v4645_v39 }
 0x7db   :  { %v4650_v62 = vsub.f32 %v4607_v52, %v4645_v39  ;;  %v11140_v7 = vpop.f32.mrf.mxu1  ;;  %v4651_v46 = vsub.f32 %v4610_v6, %v4645_v39  ;;  %v4652_v56 = vsub.f32 %v11100_v48, %v4645_v39  ;;  %v4653_v25 = vsub.f32 %v4616_v32, %v4645_v39 }
 0x7dc   :  { %v4654_v55 = vsel %vm95_vm3, %v4646_v10, -1e+30  ;;  %v4655_v33 = vsel %vm96_vm13, %v4647_v50, -1e+30  ;;  %v4656_v22 = vsel %vm97_vm12, %v4648_v8, -1e+30  ;;  %v8639_v27 = vpop.f32.mrf.mxu0 }
 0x7dd   :  { %v4657_v19 = vsel %vm98_vm14, %v4649_v57, -1e+30  ;;  %v11154_v0 = vpop.f32.mrf.mxu1  ;;  %v4658_v52 = vsel %vm99_vm15, %v4650_v62, -1e+30  ;;  %v4662_v6 = vmul.f32 1.442695, %v4654_v55 }
 0x7de   :  { %v4859_v14 = vpop.f32.mrf.mxu0  ;;  %v4664_v42 = vmul.f32 1.442695, %v4655_v33  ;;  %v4666_v26 = vmul.f32 1.442695, %v4656_v22  ;;  %v4668_v28 = vmul.f32 1.442695, %v4657_v19 }
 0x7df   :  { %v11160_v18 = vpop.f32.mrf.mxu1  ;;  %v4659_v54 = vsel %vm100_vm0, %v4651_v46, -1e+30  ;;  %9014 = vpow2.f32 %v4662_v6  ;;  %v4670_v48 = vmul.f32 1.442695, %v4658_v52  ;;  %v4660_v38 = vsel %vm101_vm1, %v4652_v56, -1e+30 }
 0x7e0   :  { %v8642_v29 = vpop.f32.mrf.mxu0  ;;  %9016 = vpow2.f32 %v4664_v42  ;;  %v4672_v13 = vmul.f32 1.442695, %v4659_v54  ;;  %v4661_v37 = vsel %vm102_vm4, %v4653_v25, -1e+30  ;;  %v4674_v58 = vmul.f32 1.442695, %v4660_v38 }
 0x7e1   :  { %v11165_v63 = vpop.f32.mrf.mxu1  ;;  %9018 = vpow2.f32 %v4666_v26  ;;  %v4676_v45 = vmul.f32 1.442695, %v4661_v37  ;;  %v7384_v19 = vld [vmem:[%s11806_s6 + $0x20] ss:$0 sm:$0xff]  ;;  %vm4734_vm3 = vcmask 7168  }
 0x7e2   :  { %v4879_v34 = vpop.f32.mrf.mxu0  ;;  %9020 = vpow2.f32 %v4668_v28  ;;  %v4870_v54 = vadd.f32 %v8639_v27, %v7384_v19  ;;  %v4890_v17 = vadd.f32 %v8642_v29, %v7384_v19 }
 0x7e3   :  { %v11170_v44 = vpop.f32.mrf.mxu1  ;;  %9022 = vpow2.f32 %v4670_v48  ;;  %v4880_v24 = vadd.f32 %v7384_v19, %v4879_v34 }
 0x7e4   :  { %v8645_v32 = vpop.f32.mrf.mxu0  ;;  %9024 = vpow2.f32 %v4672_v13  ;;  %v5027_v27 = vadd.f32 %v11132_v20, %v4870_v54  ;;  %v5039_v54 = vadd.f32 %v11136_v41, %v4890_v17 }
 0x7e5   :  { %v11175_v3 = vpop.f32.mrf.mxu1  ;;  %9026 = vpow2.f32 %v4674_v58 }
 0x7e6   :  { %v4899_v47 = vpop.f32.mrf.mxu0  ;;  %9028 = vpow2.f32 %v4676_v45  ;;  %v4860_v45 = vadd.f32 %v7384_v19, %v4859_v14 }
 0x7e7   :  { %v11177_v49 = vpop.f32.mrf.mxu1  ;;  %v4900_v35 = vadd.f32 %v7384_v19, %v4899_v47 }
 0x7e8   :  { %v8648_v39 = vpop.f32.mrf.mxu0  ;;  %v5021_v14 = vadd.f32 %v11134_v61, %v4860_v45 }
 0x7e9   :  { %v11179_v10 = vpop.f32.mrf.mxu1  ;;  %v4930_v45 = vadd.f32 %v8648_v39, %v7384_v19  ;;  %v5045_v47 = vadd.f32 %v11154_v0, %v4900_v35 }
 0x7ea   :  { %v4919_v50 = vpop.f32.mrf.mxu0 }
 0x7eb   :  { %v11181_v8 = vpop.f32.mrf.mxu1  ;;  %v4920_v41 = vadd.f32 %v7384_v19, %v4919_v50 }
 0x7ec   :  { %v8679_v60 = vpop.f32.mrf.mxu0  ;;  %v11183_v2 = vpop.eup %9014 }
 0x7ed   :  { %v11185_v57 = vpop.f32.mrf.mxu1  ;;  %v11187_v62 = vpop.eup %9016  ;;  %v4678_v46 = vsel %vm810_vm2, %v11183_v2, 0.0  ;;  %v5057_v35 = vadd.f32 %v11165_v63, %v4920_v41 }
 0x7ee   :  { %v5142_v55 = vpop.f32.mrf.mxu0  ;;  %v11191_v33 = vpop.eup %9018  ;;  %v4679_v22 = vsel %vm810_vm2, %v11187_v62, 0.0 }
 0x7ef   :  { %v11198_v56 = vpop.f32.mrf.mxu1  ;;  %v11200_v52 = vpop.eup %9020  ;;  %v4680_v6 = vadd.f32 %v4679_v22, %v4678_v46  ;;  %v4681_v26 = vsel %vm810_vm2, %v11191_v33, 0.0  ;;  %v5143_v20 = vadd.f32 %v5142_v55, %v5021_v14 }
 0x7f0   :  { %v8682_v42 = vpop.f32.mrf.mxu0  ;;  %v11204_v28 = vpop.eup %9022  ;;  %v4683_v13 = vsel %vm810_vm2, %v11200_v52, 0.0 }
 0x7f1   :  { %v4682_v25 = vadd.f32 %v4681_v26, %v4680_v6  ;;  %v11206_v38 = vpop.f32.mrf.mxu1  ;;  %v11210_v37 = vpop.eup %9024  ;;  %v4685_v46 = vsel %vm810_vm2, %v11204_v28, 0.0  ;;  %v5269_v17 = vadd.f32 %v11175_v3, %v5143_v20 }
 0x7f2   :  { %v5156_v48 = vpop.f32.mrf.mxu0  ;;  %v11214_v53 = vpop.eup %9026  ;;  %v4687_v26 = vsel %vm810_vm2, %v11210_v37, 0.0 }
 0x7f3   :  { %v4684_v58 = vadd.f32 %v4683_v13, %v4682_v25  ;;  %v11219_v59 = vpop.eup %9028  ;;  %v5150_v25 = vadd.f32 %v8679_v60, %v5027_v27  ;;  %v4689_v4 = vsel %vm810_vm2, %v11214_v53, 0.0  ;;  %v5164_v27 = vadd.f32 %v8682_v42, %v5039_v54 }
 0x7f4   :  { %v4691_v51 = vsel %vm810_vm2, %v11219_v59, 0.0 }
 0x7f5   :  { %v8685_v22 = vpop.f32.mrf.mxu0  ;;  %v4686_v30 = vadd.f32 %v4685_v46, %v4684_v58  ;;  %v4910_v58 = vadd.f32 %v8645_v32, %v7384_v19  ;;  %v5277_v61 = vadd.f32 %v11170_v44, %v5150_v25 }
 0x7f6   :  { %v8739_v6 = vpop.f32.mrf.mxu1 }
 0x7f7   :  { %v5170_v21 = vpop.f32.mrf.mxu0  ;;  %v4688_v40 = vadd.f32 %v4687_v26, %v4686_v30  ;;  %v5033_v26 = vadd.f32 %v11138_v5, %v4880_v24  ;;  %v5051_v34 = vadd.f32 %v11140_v7, %v4910_v58  ;;  %v5293_v24 = vadd.f32 %v11177_v49, %v5164_v27 }
 0x7f8   :  { %v5524_v13 = vpop.f32.mrf.mxu1  ;;  %v5171_v5 = vadd.f32 %v5170_v21, %v5045_v47  ;;  %v5063_v7 = vadd.f32 %v11160_v18, %v4930_v45 }
 0x7f9   :  { %v8688_v29 = vpop.f32.mrf.mxu0  ;;  %v4690_v46 = vadd.f32 %v4689_v4, %v4688_v40  ;;  %v5157_v14 = vadd.f32 %v5156_v48, %v5033_v26  ;;  %v5178_v36 = vadd.f32 %v8685_v22, %v5051_v34 }
 0x7fa   :  { %v8742_v9 = vpop.f32.mrf.mxu1  ;;  %v5192_v48 = vadd.f32 %v8688_v29, %v5063_v7  ;;  %v5301_v27 = vadd.f32 %v11185_v57, %v5171_v5 }
 0x7fb   :  { %v5184_v30 = vpop.f32.mrf.mxu0  ;;  %v4692_v60 = vadd.f32 %v4691_v51, %v4690_v46  ;;  %v5285_v0 = vadd.f32 %v11179_v10, %v5157_v14 }
 0x7fc   :  { %v5536_v32 = vpop.f32.mrf.mxu1  ;;  %v5185_v20 = vadd.f32 %v5184_v30, %v5057_v35 }
 0x7fd   :  { %v8719_v40 = vpop.f32.mrf.mxu0  ;;  %v4693_v4 = vrot.slane %v4692_v60, 4 }
 0x7fe   :  { %v5414_v55 = vadd.f32 %v8719_v40, %v5277_v61  ;;  %v8745_v39 = vpop.f32.mrf.mxu1  ;;  %v5317_v57 = vadd.f32 %v11206_v38, %v5185_v20 }
 0x7ff   :  { %v5407_v51 = vpop.f32.mrf.mxu0  ;;  %v4694_v42 = vadd.f32 %v4693_v4, %v4692_v60 }
 0x800   :  { %v11232_v46 = vadd.f32 %v8739_v6, %v5414_v55  ;;  %v5408_v44 = vadd.f32 %v5407_v51, %v5269_v17  ;;  %v5309_v6 = vadd.f32 %v11181_v8, %v5178_v36  ;;  %v5548_v54 = vpop.f32.mrf.mxu1  ;;  %v5325_v8 = vadd.f32 %v11198_v56, %v5192_v48 }
 0x801   :  { %v8722_v25 = vpop.f32.mrf.mxu0  ;;  %v4695_v58 = vrot.slane %v4694_v42, 2 }
 0x802   :  { %v7386_v3 = vmul.f32 -1.442695, %v11232_v46  ;;  %v11237_v50 = vadd.f32 %v5524_v13, %v5408_v44  ;;  %v5426_v19 = vadd.f32 %v8722_v25, %v5293_v24  ;;  %v8748_v26 = vpop.f32.mrf.mxu1 }
 0x803   :  { %v5419_v22 = vpop.f32.mrf.mxu0  ;;  %v4696_v49 = vadd.f32 %v4695_v58, %v4694_v42 }
 0x804   :  { %9030 = vpow2.f32 %v7386_v3  ;;  %v7385_v21 = vmul.f32 -1.442695, %v11237_v50  ;;  %v11243_v18 = vadd.f32 %v8742_v9, %v5426_v19  ;;  %v5420_v60 = vadd.f32 %v5419_v22, %v5285_v0  ;;  %v5560_v51 = vpop.f32.mrf.mxu1 }
 0x805   :  { %v8725_v13 = vpop.f32.mrf.mxu0  ;;  %v4697_v29 = vrot.slane %v4696_v49, 1 }
 0x806   :  { %9032 = vpow2.f32 %v7385_v21  ;;  %v7388_v63 = vmul.f32 -1.442695, %v11243_v18  ;;  %v5438_v10 = vadd.f32 %v8725_v13, %v5309_v6  ;;  %v11247_v61 = vadd.f32 %v5536_v32, %v5420_v60 }
 0x807   :  { %v5431_v36 = vpop.f32.mrf.mxu0  ;;  %v4698_v45 = vadd.f32 %v4697_v29, %v4696_v49 }
 0x808   :  { %9034 = vpow2.f32 %v7388_v63  ;;  %v11250_v9 = vadd.f32 %v8745_v39, %v5438_v10  ;;  %v5432_v30 = vadd.f32 %v5431_v36, %v5301_v27  ;;  %v7387_v34 = vmul.f32 -1.442695, %v11247_v61 }
 0x809   :  { %v8728_v40 = vpop.f32.mrf.mxu0  ;;  %v4699_v4 = vmax.f32 %v4698_v45, 0.5 }
 0x80a   :  { %v7390_v55 = vmul.f32 -1.442695, %v11250_v9  ;;  %v11255_v17 = vadd.f32 %v5548_v54, %v5432_v30  ;;  %v5450_v32 = vadd.f32 %v8728_v40, %v5325_v8  ;;  %9036 = vpow2.f32 %v7387_v34 }
 0x80b   :  { %v5443_v41 = vpop.f32.mrf.mxu0  ;;  %9038 = vrcp.f32 %v4699_v4 }
 0x80c   :  { %v7389_v56 = vmul.f32 -1.442695, %v11255_v17  ;;  %v11258_v14 = vadd.f32 %v8748_v26, %v5450_v32  ;;  %v5444_v47 = vadd.f32 %v5443_v41, %v5317_v57  ;;  %9040 = vpow2.f32 %v7390_v55 }
 0x80e   :  { %9042 = vpow2.f32 %v7389_v56  ;;  %v7392_v42 = vmul.f32 -1.442695, %v11258_v14  ;;  %v11261_v38 = vadd.f32 %v5560_v51, %v5444_v47 }
 0x810   :  { %9044 = vpow2.f32 %v7392_v42  ;;  %v7391_v44 = vmul.f32 -1.442695, %v11261_v38 }
 0x811   :  { %v9031_v24 = vpop.eup %9030 }
 0x812   :  { %v5595_v5 = vadd.f32 1.0, %v9031_v24  ;;  %9046 = vpow2.f32 %v7391_v44 }
 0x813   :  { %v9033_v7 = vpop.eup %9032 }
 0x814   :  { %9048 = vrcp.f32 %v5595_v5  ;;  %v5594_v39 = vadd.f32 1.0, %v9033_v7 }
 0x815   :  { %v9035_v25 = vpop.eup %9034 }
 0x816   :  { %9050 = vrcp.f32 %v5594_v39  ;;  %v5597_v58 = vadd.f32 1.0, %v9035_v25 }
 0x817   :  { %v9037_v3 = vpop.eup %9036 }
 0x818   :  { %9052 = vrcp.f32 %v5597_v58  ;;  %v9039_v19 = vpop.eup %9038  ;;  %v5596_v48 = vadd.f32 1.0, %v9037_v3 }
 0x819   :  { %v9041_v35 = vpop.eup %9040  ;;  %v4709_v0 = vmul.f32 %v9039_v19, %v11219_v59  ;;  %v4708_v22 = vmul.f32 %v9039_v19, %v11214_v53  ;;  %v4707_v21 = vmul.f32 %v9039_v19, %v11210_v37  ;;  %v4706_v13 = vmul.f32 %v9039_v19, %v11204_v28 }
 0x81a   :  { %9054 = vrcp.f32 %v5596_v48  ;;  %v5599_v49 = vadd.f32 1.0, %v9041_v35  ;;  %v4705_v53 = vmul.f32 %v9039_v19, %v11200_v52  ;;  %v4704_v63 = vmul.f32 %v9039_v19, %v11191_v33 }
 0x81b   :  { %v9043_v6 = vpop.eup %9042  ;;  %v4731_v54 = vsel %vm810_vm2, %v4709_v0, 0.0  ;;  %v4728_v60 = vsel %vm810_vm2, %v4708_v22, 0.0  ;;  %v4725_v10 = vsel %vm810_vm2, %v4707_v21, 0.0  ;;  %v4722_v36 = vsel %vm810_vm2, %v4706_v13, 0.0 }
 0x81c   :  { %v5598_v20 = vadd.f32 1.0, %v9043_v6  ;;  %9056 = vrcp.f32 %v5599_v49  ;;  %4732 = vadd.xlane.f32.xlu1 %v4731_v54  ;;  %4729 = vadd.xlane.f32.xlu0 %v4728_v60  ;;  %v4719_v30 = vsel %vm810_vm2, %v4705_v53, 0.0  ;;  %v4716_v26 = vsel %vm810_vm2, %v4704_v63, 0.0 }
 0x81d   :  { %v9045_v27 = vpop.eup %9044  ;;  %v4703_v34 = vmul.f32 %v9039_v19, %v11187_v62  ;;  %v4702_v40 = vmul.f32 %v9039_v19, %v11183_v2 }
 0x81e   :  { %9058 = vrcp.f32 %v5598_v20  ;;  %v5601_v59 = vadd.f32 1.0, %v9045_v27 }
 0x81f   :  { %v9047_v29 = vpop.eup %9046  ;;  %v4713_v62 = vsel %vm810_vm2, %v4703_v34, 0.0  ;;  %v4710_v2 = vsel %vm810_vm2, %v4702_v40, 0.0 }
 0x820   :  { %9060 = vrcp.f32 %v5601_v59  ;;  %v5600_v37 = vadd.f32 1.0, %v9047_v29  ;;  %4726 = vadd.xlane.f32.xlu1 %v4725_v10  ;;  %4723 = vadd.xlane.f32.xlu0 %v4722_v36 }
 0x821   :  { %v9049_v8 = vpop.eup %9048 }
 0x822   :  { %v5619_v28 = vmul.f32 %v9049_v8, %v11232_v46  ;;  %9062 = vrcp.f32 %v5600_v37 }
 0x823   :  { %v9051_v45 = vpop.eup %9050 }
 0x824   :  { %v5646_v52 = vsel %vm810_vm2, %v5619_v28, 0  ;;  %v5618_v33 = vmul.f32 %v9051_v45, %v11237_v50  ;;  %4720 = vadd.xlane.f32.xlu1 %v4719_v30  ;;  %4717 = vadd.xlane.f32.xlu0 %v4716_v26 }
 0x825   :  { %v9053_v57 = vpop.eup %9052  ;;  %v11281_v4 = vand.u32 4294901760, %v5646_v52 }
 0x826   :  { %v5643_v46 = vsel %vm810_vm2, %v5618_v33, 0  ;;  %v5621_v55 = vmul.f32 %v9053_v57, %v11243_v18 }
 0x827   :  { %v11286_v32 = vsub.f32 %v5646_v52, %v11281_v4  ;;  %v11288_v41 = vand.u32 4294901760, %v5643_v46  ;;  %v9055_v56 = vpop.eup %9054 }
 0x828   :  { %v5652_v50 = vsel %vm810_vm2, %v5621_v55, 0  ;;  %v5620_v18 = vmul.f32 %v9055_v56, %v11247_v61  ;;  %4714 = vadd.xlane.f32.xlu1 %v4713_v62  ;;  %4711 = vadd.xlane.f32.xlu0 %v4710_v2  ;;  %v12025_v55 = vld [vmem:[#allocation28_spill] sm:$0xff] }
 0x829   :  { %v5747_v47 = vand.u32 4294901760, %v11286_v32  ;;  %v11295_v51 = vsub.f32 %v5643_v46, %v11288_v41  ;;  %v11297_v42 = vand.u32 4294901760, %v5652_v50  ;;  %v9057_v44 = vpop.eup %9056  ;;  %8777 = vmatprep.mubr.f32.mxu1 %v11288_v41 }
 0x82a   :  { %v5649_v7 = vsel %vm810_vm2, %v5620_v18, 0  ;;  %v5623_v39 = vmul.f32 %v9057_v44, %v11250_v9  ;;  %8778 = vmatmul.mubr.f32.vlgmr.msra.gmra.mxu1 %v11281_v4 }
 0x82b   :  { %v9059_v24 = vpop.eup %9058  ;;  %v11302_v5 = vsub.f32 %v5652_v50, %v11297_v42  ;;  %v11307_v25 = vand.u32 4294901760, %v5649_v7  ;;  %8810 = vmatpush3.msra.mxu1 %v10989_v31  ;;  %v5737_v61 = vand.u32 4294901760, %v11295_v51  ;;  %v5748_v19 = vsub.f32 %v11286_v32, %v5747_v47 }
 0x82c   :  { %v5622_v58 = vmul.f32 %v9059_v24, %v11255_v17  ;;  %v5658_v48 = vsel %vm810_vm2, %v5623_v39, 0  ;;  %8811 = vmatprep.subr.mxu1 %v10999_v11 }
 0x82d   :  { %v9061_v3 = vpop.eup %9060  ;;  %v5767_v9 = vand.u32 4294901760, %v11302_v5  ;;  %v11319_v35 = vsub.f32 %v5649_v7, %v11307_v25  ;;  %v11321_v0 = vand.u32 4294901760, %v5658_v48  ;;  %8812 = vmatpush3.msra.mxu1 %v10999_v11  ;;  %8780 = vmatprep.mubr.f32.mxu1 %v11307_v25  ;;  %v5738_v21 = vsub.f32 %v11295_v51, %v5737_v61 }
 0x82e   :  { %v5655_v17 = vsel %vm810_vm2, %v5622_v58, 0  ;;  %v5625_v22 = vmul.f32 %v9061_v3, %v11258_v14  ;;  %8813 = vmatprep.subr.mxu1 %v11012_v43  ;;  %8781 = vmatmul.mubr.f32.gmra.mxu1 %v11297_v42  ;;  %v5749_v13 = vand.u32 4294901760, %v5748_v19 }
 0x82f   :  { %v9063_v6 = vpop.eup %9062  ;;  %v11327_v49 = vand.u32 4294901760, %v5655_v17  ;;  %v11333_v20 = vsub.f32 %v5658_v48, %v11321_v0  ;;  %8814 = vmatpush3.msra.mxu1 %v11012_v43  ;;  %v5757_v60 = vand.u32 4294901760, %v11319_v35  ;;  %v5739_v29 = vand.u32 4294901760, %v5738_v21 }
 0x830   :  { %v5664_v54 = vsel %vm810_vm2, %v5625_v22, 0  ;;  %v5624_v14 = vmul.f32 %v9063_v6, %v11261_v38  ;;  %8815 = vmatprep.subr.mxu1 %v11030_v15  ;;  %v5768_v63 = vsub.f32 %v11302_v5, %v5767_v9 }
 0x831   :  { %v11340_v27 = vsub.f32 %v5655_v17, %v11327_v49  ;;  %v11342_v59 = vand.u32 4294901760, %v5664_v54  ;;  %8783 = vmatprep.mubr.f32.mxu1 %v11327_v49  ;;  %8816 = vmatpush3.msra.mxu1 %v11030_v15  ;;  %v5758_v38 = vsub.f32 %v11319_v35, %v5757_v60  ;;  %v5787_v37 = vand.u32 4294901760, %v11333_v20 }
 0x832   :  { %v5661_v53 = vsel %vm810_vm2, %v5624_v14, 0  ;;  %8757 = vmatprep.mubr.f32.mxu0 %v5739_v29  ;;  %8849 = vmatprep.subr.mxu1 %v10989_v31  ;;  %v5769_v26 = vand.u32 4294901760, %v5768_v63 }
 0x833   :  { %v11354_v10 = vsub.f32 %v5664_v54, %v11342_v59  ;;  %v11356_v36 = vand.u32 4294901760, %v5661_v53  ;;  %v5777_v8 = vand.u32 4294901760, %v11340_v27  ;;  %8758 = vmatmul.mubr.f32.vlgmr.msra.gmra.mxu0 %v5749_v13  ;;  %8784 = vmatmul.mubr.f32.gmra.mxu1 %v11321_v0  ;;  %v5759_v28 = vand.u32 4294901760, %v5758_v38 }
 0x834   :  { %8790 = vmatpush3.msra.mxu0 %v11002_v23  ;;  %v5788_v52 = vsub.f32 %v11333_v20, %v5787_v37 }
 0x835   :  { %v5796_v45 = vsub.f32 %v5661_v53, %v11356_v36  ;;  %8786 = vmatprep.mubr.f32.mxu1 %v11356_v36  ;;  %v5778_v30 = vsub.f32 %v11340_v27, %v5777_v8  ;;  %8791 = vmatprep.subr.mxu0 %v11018_v12  ;;  %v5807_v33 = vand.u32 4294901760, %v11354_v10 }
 0x836   :  { %8760 = vmatprep.mubr.f32.mxu0 %v5759_v28  ;;  %8792 = vmatpush3.msra.mxu0 %v11018_v12  ;;  %v5789_v57 = vand.u32 4294901760, %v5788_v52 }
 0x837   :  { %v5779_v34 = vand.u32 4294901760, %v5778_v30  ;;  %v5797_v40 = vand.u32 4294901760, %v5796_v45  ;;  %8793 = vmatprep.subr.mxu0 %v11037_v16  ;;  %8761 = vmatmul.mubr.f32.gmra.mxu0 %v5769_v26  ;;  %v5808_v46 = vsub.f32 %v11354_v10, %v5807_v33 }
 0x838   :  { %8787 = vmatmul.mubr.f32.gmra.mxu1 %v11342_v59  ;;  %8794 = vmatpush3.msra.mxu0 %v11037_v16 }
 0x839   :  { %v5798_v23 = vsub.f32 %v5796_v45, %v5797_v40  ;;  %8795 = vmatprep.subr.mxu0 %v11052_v1  ;;  %8817 = vmatprep.mubr.f32.mxu1 %v5737_v61  ;;  %v5809_v16 = vand.u32 4294901760, %v5808_v46 }
 0x83a   :  { %8796 = vmatpush3.msra.mxu0 %v11052_v1  ;;  %8763 = vmatprep.mubr.f32.mxu0 %v5779_v34 }
 0x83b   :  { %v5799_v12 = vand.u32 4294901760, %v5798_v23  ;;  %8829 = vmatprep.subr.mxu0 %v12025_v55  ;;  %8764 = vmatmul.mubr.f32.gmra.mxu0 %v5789_v57 }
 0x83c   :  { %8818 = vmatmul.mubr.f32.vlgmr.msra.gmra.mxu1 %v5747_v47 }
 0x83d   :  { %8766 = vmatprep.mubr.f32.mxu0 %v5799_v12  ;;  %8850 = vmatpush3.msra.mxu1 %v10989_v31  ;;  %v12026_v31 = vld [vmem:[#allocation43_spill] sm:$0xff] }
 0x83e   :  { %8820 = vmatprep.mubr.f32.mxu1 %v5757_v60  ;;  %8851 = vmatprep.subr.mxu1 %v10999_v11 }
 0x83f   :  { %8852 = vmatpush3.msra.mxu1 %v10999_v11  ;;  %8767 = vmatmul.mubr.f32.gmra.mxu0 %v5809_v16  ;;  %v12027_v11 = vld [vmem:[#allocation45_spill] sm:$0xff] }
 0x840   :  { %8853 = vmatprep.subr.mxu1 %v11012_v43  ;;  %8821 = vmatmul.mubr.f32.gmra.mxu1 %v5767_v9 }
 0x841   :  { %8854 = vmatpush3.msra.mxu1 %v11012_v43  ;;  %8797 = vmatprep.mubr.f32.mxu0 %v11295_v51  ;;  %v12028_v43 = vld [vmem:[#allocation32_spill] sm:$0xff] }
 0x842   :  { %8823 = vmatprep.mubr.f32.mxu1 %v5777_v8  ;;  %8855 = vmatprep.subr.mxu1 %v11030_v15 }
 0x843   :  { %8856 = vmatpush3.msra.mxu1 %v11030_v15  ;;  %8798 = vmatmul.mubr.f32.vlgmr.msra.gmra.mxu0 %v11286_v32 }
 0x844   :  { %8824 = vmatmul.mubr.f32.gmra.mxu1 %v5787_v37  ;;  %8830 = vmatpush3.msra.mxu0 %v12025_v55 }
 0x845   :  { %8800 = vmatprep.mubr.f32.mxu0 %v11319_v35  ;;  %8826 = vmatprep.mubr.f32.mxu1 %v5797_v40 }
 0x846   :  { %8831 = vmatprep.subr.mxu0 %v12026_v31 }
 0x847   :  { %8832 = vmatpush3.msra.mxu0 %v12026_v31 }
 0x848   :  { %8833 = vmatprep.subr.mxu0 %v12027_v11  ;;  %8801 = vmatmul.mubr.f32.gmra.mxu0 %v11302_v5 }
 0x849   :  { %8827 = vmatmul.mubr.f32.gmra.mxu1 %v5807_v33  ;;  %8834 = vmatpush3.msra.mxu0 %v12027_v11 }
 0x84a   :  { %8803 = vmatprep.mubr.f32.mxu0 %v11340_v27  ;;  %8835 = vmatprep.subr.mxu0 %v12028_v43 }
 0x84b   :  { %8857 = vmatprep.mubr.f32.mxu1 %v11288_v41  ;;  %8836 = vmatpush3.msra.mxu0 %v12028_v43 }
 0x84c   :  { %8804 = vmatmul.mubr.f32.gmra.mxu0 %v11333_v20 }
 0x84d   :  { %8858 = vmatmul.mubr.f32.vlgmr.msra.gmra.mxu1 %v11281_v4  ;;  %8806 = vmatprep.mubr.f32.mxu0 %v5796_v45 }
 0x84e   :  { %8860 = vmatprep.mubr.f32.mxu1 %v11307_v25 }
 0x850   :  { %8807 = vmatmul.mubr.f32.gmra.mxu0 %v11354_v10 }
 0x851   :  { %8861 = vmatmul.mubr.f32.gmra.mxu1 %v11297_v42  ;;  %8837 = vmatprep.mubr.f32.mxu0 %v11288_v41 }
 0x852   :  { %8863 = vmatprep.mubr.f32.mxu1 %v11327_v49 }
 0x854   :  { %8838 = vmatmul.mubr.f32.vlgmr.msra.gmra.mxu0 %v11281_v4 }
 0x855   :  { %8864 = vmatmul.mubr.f32.gmra.mxu1 %v11321_v0  ;;  %8840 = vmatprep.mubr.f32.mxu0 %v11307_v25 }
 0x856   :  { %8866 = vmatprep.mubr.f32.mxu1 %v11356_v36 }
 0x858   :  { %8841 = vmatmul.mubr.f32.gmra.mxu0 %v11297_v42 }
 0x859   :  { %8867 = vmatmul.mubr.f32.gmra.mxu1 %v11342_v59  ;;  %8843 = vmatprep.mubr.f32.mxu0 %v11327_v49 }
 0x85c   :  { %8844 = vmatmul.mubr.f32.gmra.mxu0 %v11321_v0 }
 0x85d   :  { %8846 = vmatprep.mubr.f32.mxu0 %v11356_v36 }
 0x860   :  { %8847 = vmatmul.mubr.f32.gmra.mxu0 %v11342_v59 }
 0x8a5   :  { %v11417_v15 = vpop.xlane.xlu1 %4732  ;;  %v11419_v1 = vpop.xlane.xlu0 %4729 }
 0x8a6   :  { %4742 = vst.msk [vmem:[%s11808_s8 + $0x38] sm:$0xff] %vm4734_vm3, %v11417_v15  ;;  %4741 = vst.msk [vmem:[%s11808_s8 + $0x30] sm:$0xff] %vm4734_vm3, %v11419_v1 }
 0x8a9   :  { %v11431_v4 = vpop.xlane.xlu1 %4726  ;;  %v11433_v32 = vpop.xlane.xlu0 %4723 }
 0x8aa   :  { %4740 = vst.msk [vmem:[%s11808_s8 + $0x28] sm:$0xff] %vm4734_vm3, %v11431_v4  ;;  %4739 = vst.msk [vmem:[%s11808_s8 + $0x20] sm:$0xff] %vm4734_vm3, %v11433_v32 }
 0x8ad   :  { %v11445_v41 = vpop.xlane.xlu1 %4720  ;;  %v11447_v56 = vpop.xlane.xlu0 %4717 }
 0x8ae   :  { %12029 = vst [vmem:[#allocation25_spill] sm:$0xff] %v11447_v56  ;;  %4738 = vst.msk [vmem:[%s11808_s8 + $0x18] sm:$0xff] %vm4734_vm3, %v11445_v41 }
 0x8af   :  { %4737 = vst.msk [vmem:[%s11808_s8 + $0x10] sm:$0xff] %vm4734_vm3, %v11447_v56 }
 0x8b1   :  { %v11459_v50 = vpop.xlane.xlu1 %4714  ;;  %v11461_v62 = vpop.xlane.xlu0 %4711 }
 0x8b2   :  { %12030 = vst [vmem:[#allocation36_spill] sm:$0xff] %v11459_v50  ;;  %12031 = vst [vmem:[#allocation44_spill] sm:$0xff] %v11461_v62 }
 0x8b3   :  { %4736 = vst.msk [vmem:[%s11808_s8 + $0x8] sm:$0xff] %vm4734_vm3, %v11459_v50  ;;  %4735 = vst.msk [vmem:[%s11808_s8] sm:$0xff] %vm4734_vm3, %v11461_v62 }
 0x8ea   :  { %v8779_v2 = vpop.f32.mrf.mxu1 }
 0x8ec   :  { %v11473_v47 = vpop.f32.mrf.mxu1 }
 0x8ee   :  { %v8782_v51 = vpop.f32.mrf.mxu1 }
 0x8f0   :  { %v5914_v42 = vpop.f32.mrf.mxu1 }
 0x8f3   :  { %v8759_v18 = vpop.f32.mrf.mxu0  ;;  %v8785_v44 = vpop.f32.mrf.mxu1 }
 0x8f4   :  { %v5909_v16 = vadd.f32 %v8779_v2, %v8759_v18 }
 0x8f5   :  { %v11475_v24 = vpop.f32.mrf.mxu0  ;;  %v5926_v5 = vpop.f32.mrf.mxu1 }
 0x8f6   :  { %v5903_v2 = vadd.f32 %v11473_v47, %v11475_v24 }
 0x8f7   :  { %v8762_v7 = vpop.f32.mrf.mxu0 }
 0x8f8   :  { %v8788_v39 = vpop.f32.mrf.mxu1  ;;  %v5921_v52 = vadd.f32 %v8782_v51, %v8762_v7 }
 0x8f9   :  { %v5761_v25 = vpop.f32.mrf.mxu0 }
 0x8fa   :  { %v5938_v58 = vpop.f32.mrf.mxu1  ;;  %v5915_v56 = vadd.f32 %v5914_v42, %v5761_v25 }
 0x8fb   :  { %v8765_v61 = vpop.f32.mrf.mxu0 }
 0x8fc   :  { %v8819_v3 = vpop.f32.mrf.mxu1  ;;  %v5933_v45 = vadd.f32 %v8785_v44, %v8765_v61 }
 0x8fd   :  { %v5781_v19 = vpop.f32.mrf.mxu0 }
 0x8fe   :  { %v11477_v48 = vpop.f32.mrf.mxu1  ;;  %v5927_v46 = vadd.f32 %v5926_v5, %v5781_v19 }
 0x8ff   :  { %v8768_v9 = vpop.f32.mrf.mxu0 }
 0x900   :  { %v8822_v35 = vpop.f32.mrf.mxu1  ;;  %v5945_v30 = vadd.f32 %v8788_v39, %v8768_v9 }
 0x901   :  { %v5801_v0 = vpop.f32.mrf.mxu0 }
 0x902   :  { %v6166_v17 = vpop.f32.mrf.mxu1  ;;  %v5939_v33 = vadd.f32 %v5938_v58, %v5801_v0 }
 0x903   :  { %v8799_v22 = vpop.f32.mrf.mxu0 }
 0x904   :  { %v8825_v6 = vpop.f32.mrf.mxu1 }
 0x905   :  { %v6024_v49 = vpop.f32.mrf.mxu0 }
 0x906   :  { %v6182_v21 = vpop.f32.mrf.mxu1 }
 0x908   :  { %v8802_v20 = vpop.f32.mrf.mxu0 }
 0x909   :  { %v8828_v54 = vpop.f32.mrf.mxu1  ;;  %v6046_v12 = vadd.f32 %v8802_v20, %v5921_v52  ;;  %v12040_v52 = vld [vmem:[#allocation26_spill] sm:$0xff] }
 0x90a   :  { %v6038_v14 = vpop.f32.mrf.mxu0 }
 0x90b   :  { %v6198_v60 = vpop.f32.mrf.mxu1  ;;  %v6175_v39 = vadd.f32 %v8822_v35, %v6046_v12  ;;  %v6039_v58 = vadd.f32 %v6038_v14, %v5915_v56  ;;  %v6025_v35 = vadd.f32 %v6024_v49, %v5903_v2  ;;  %v12047_v12 = vld [vmem:[#allocation15_spill] sm:$0xff]  ;;  %v12056_v2 = vld [vmem:[#allocation41_spill] sm:$0xff] }
 0x90c   :  { %v8805_v13 = vpop.f32.mrf.mxu0 }
 0x90d   :  { %v8859_v27 = vpop.f32.mrf.mxu1  ;;  %v6060_v34 = vadd.f32 %v8805_v13, %v5933_v45 }
 0x90e   :  { %v6052_v59 = vpop.f32.mrf.mxu0 }
 0x90f   :  { %v11479_v29 = vpop.f32.mrf.mxu1  ;;  %v6053_v11 = vadd.f32 %v6052_v59, %v5927_v46  ;;  %v6191_v43 = vadd.f32 %v8825_v6, %v6060_v34  ;;  %v12045_v46 = vld [vmem:[#allocation7_spill] sm:$0xff] }
 0x910   :  { %12032 = vst [vmem:[#allocation30_spill] sm:$0xff] %v11479_v29  ;;  %v8808_v53 = vpop.f32.mrf.mxu0  ;;  %v6032_v29 = vadd.f32 %v8799_v22, %v5909_v16  ;;  %v12049_v16 = vld [vmem:[#allocation18_spill] sm:$0xff] }
 0x911   :  { %v8862_v38 = vpop.f32.mrf.mxu1  ;;  %v6074_v40 = vadd.f32 %v8808_v53, %v5945_v30  ;;  %v6183_v13 = vadd.f32 %v6182_v21, %v6053_v11  ;;  %v12039_v30 = vld [vmem:[#allocation33_spill] sm:$0xff]  ;;  %v12051_v11 = vld [vmem:[#allocation20_spill] sm:$0xff] }
 0x912   :  { %v6066_v63 = vpop.f32.mrf.mxu0  ;;  %v6159_v18 = vadd.f32 %v8819_v3, %v6032_v29  ;;  %v6151_v3 = vadd.f32 %v11477_v48, %v6025_v35  ;;  %v12033_v29 = vld [vmem:[#allocation36_spill] sm:$0xff] }
 0x913   :  { %v6418_v37 = vpop.f32.mrf.mxu1  ;;  %v6067_v55 = vadd.f32 %v6066_v63, %v5939_v33  ;;  %v6207_v62 = vadd.f32 %v8828_v54, %v6074_v40  ;;  %v12041_v33 = vld [vmem:[#allocation24_spill] sm:$0xff] }
 0x914   :  { %v8839_v10 = vpop.f32.mrf.mxu0  ;;  %v6503_v34 = vmul.f32 %v11445_v41, %v12041_v33 }
 0x915   :  { %v8865_v8 = vpop.f32.mrf.mxu1  ;;  %v6199_v7 = vadd.f32 %v6198_v60, %v6067_v55  ;;  %v6296_v54 = vadd.f32 %v8839_v10, %v6159_v18  ;;  %v6167_v60 = vadd.f32 %v6166_v17, %v6039_v58  ;;  %v12036_v10 = vld [vmem:[#allocation38_spill] sm:$0xff]  ;;  %v12048_v55 = vld [vmem:[#allocation17_spill] sm:$0xff] }
 0x916   :  { %v6289_v36 = vpop.f32.mrf.mxu0 }
 0x917   :  { %v6430_v23 = vpop.f32.mrf.mxu1  ;;  %v6413_v24 = vadd.f32 %v8859_v27, %v6296_v54  ;;  %v6290_v14 = vadd.f32 %v6289_v36, %v6151_v3  ;;  %v12035_v27 = vld [vmem:[#allocation25_spill] sm:$0xff]  ;;  %v12059_v54 = vld [vmem:[#allocation40_spill] sm:$0xff] }
 0x918   :  { %v8842_v28 = vpop.f32.mrf.mxu0 }
 0x919   :  { %v8868_v50 = vpop.f32.mrf.mxu1  ;;  %v6308_v0 = vadd.f32 %v8842_v28, %v6175_v39  ;;  %v6453_v53 = vmul.f32 %v6413_v24, %v12033_v29  ;;  %v12038_v28 = vld [vmem:[#allocation31_spill] sm:$0xff] }
 0x91a   :  { %v6301_v26 = vpop.f32.mrf.mxu0  ;;  %v6506_v45 = vmul.f32 %v11419_v1, %v12038_v28 }
 0x91b   :  { %v6442_v6 = vpop.f32.mrf.mxu1 }
 0x91c   :  { %v8845_v57 = vpop.f32.mrf.mxu0 }
 0x91d   :  { %v6320_v61 = vadd.f32 %v8845_v57, %v6191_v43  ;;  %v12044_v57 = vld [vmem:[#allocation22_spill] sm:$0xff]  ;;  %v12052_v43 = vld [vmem:[#allocation21_spill] sm:$0xff] }
 0x91e   :  { %v6313_v31 = vpop.f32.mrf.mxu0 }
 0x91f   :  { %v6437_v20 = vadd.f32 %v8865_v8, %v6320_v61  ;;  %v6314_v42 = vadd.f32 %v6313_v31, %v6183_v13  ;;  %v6507_v8 = vmul.f32 %v11417_v15, %v12036_v10  ;;  %v12050_v31 = vld [vmem:[#allocation19_spill] sm:$0xff] }
 0x920   :  { %v8848_v44 = vpop.f32.mrf.mxu0 }
 0x921   :  { %v6332_v51 = vadd.f32 %v8848_v44, %v6207_v62  ;;  %v6425_v62 = vadd.f32 %v8862_v38, %v6308_v0  ;;  %v6431_v21 = vadd.f32 %v6430_v23, %v6314_v42  ;;  %v6457_v47 = vmul.f32 %v6437_v20, %v11431_v4  ;;  %v12034_v38 = vld [vmem:[#allocation30_spill] sm:$0xff]  ;;  %v12043_v23 = vld [vmem:[#allocation23_spill] sm:$0xff] }
 0x922   :  { %v6325_v9 = vpop.f32.mrf.mxu0  ;;  %v6407_v63 = vadd.f32 %v12034_v38, %v6290_v14 }
 0x923   :  { %v6449_v5 = vadd.f32 %v8868_v50, %v6332_v51  ;;  %v6326_v19 = vadd.f32 %v6325_v9, %v6199_v7  ;;  %v6302_v50 = vadd.f32 %v6301_v26, %v6167_v60  ;;  %v6455_v49 = vmul.f32 %v6425_v62, %v11445_v41  ;;  %v12046_v41 = vld [vmem:[#allocation16_spill] sm:$0xff]  ;;  %v12053_v7 = vld [vmem:[#allocation42_spill] sm:$0xff]  ;;  %v12054_v9 = vld [vmem:[#allocation27_spill] sm:$0xff] }
 0x924   :  { %v6456_v17 = vmul.f32 %v6431_v21, %v11433_v32  ;;  %v6505_v26 = vmul.f32 %v11431_v4, %v12039_v30  ;;  %v6501_v4 = vmul.f32 %v12033_v29, %v12043_v23 }
 0x925   :  { %v6443_v25 = vadd.f32 %v6442_v6, %v6326_v19  ;;  %v6459_v22 = vmul.f32 %v6449_v5, %v11417_v15  ;;  %v6419_v59 = vadd.f32 %v6418_v37, %v6302_v50  ;;  %v12037_v37 = vld [vmem:[#allocation44_spill] sm:$0xff]  ;;  %v6504_v15 = vmul.f32 %v11433_v32, %v12040_v52  ;;  %v12055_v5 = vld [vmem:[#allocation39_spill] sm:$0xff] }
 0x926   :  { %v6452_v36 = vmul.f32 %v6407_v63, %v12037_v37  ;;  %v6500_v32 = vmul.f32 %v12037_v37, %v12044_v57  ;;  %v12057_v6 = vld [vmem:[#allocation47_spill] sm:$0xff] }
 0x927   :  { %6482 = vrot.lane.b32.xlu1 %v6459_v22, %s9095_s4  ;;  %v6458_v56 = vmul.f32 %v6443_v25, %v11419_v1  ;;  %v6454_v48 = vmul.f32 %v6419_v59, %v12035_v27  ;;  %v12042_v1 = vld [vmem:[#allocation46_spill] sm:$0xff] }
 0x928   :  { %v6502_v40 = vmul.f32 %v12035_v27, %v12042_v1  ;;  %v12058_v25 = vld [vmem:[#allocation34_spill] sm:$0xff] }
 0x929   :  { %6480 = vrot.lane.b32.xlu0 %v6458_v56, %s9095_s4  ;;  %v12060_v56 = vld [vmem:[#allocation29_spill] sm:$0xff] }
 0x92b   :  { %6478 = vrot.lane.b32.xlu1 %v6457_v47, %s9095_s4 }
 0x92d   :  { %6474 = vrot.lane.b32.xlu0 %v6455_v49, %s9095_s4 }
 0x92f   :  { %6476 = vrot.lane.b32.xlu1 %v6456_v17, %s9095_s4 }
 0x931   :  { %6470 = vrot.lane.b32.xlu0 %v6453_v53, %s9095_s4 }
 0x933   :  { %6472 = vrot.lane.b32.xlu1 %v6454_v48, %s9095_s4 }
 0x935   :  { %6530 = vrot.lane.b32.xlu0 %v6507_v8, %s9094_s13 }
 0x937   :  { %6468 = vrot.lane.b32.xlu1 %v6452_v36, %s9095_s4  ;;  %s9068_s4 = scalar_lea.vmem %s7306_s10, 512 }
 0x938   :  { %p9069_p0 = scmp.ne.s32.totalorder %s7306_s10, %s9068_s4  ;;  %p9074_p2 = scmp.lt.s32.totalorder %s9068_s4, %s9068_s4 }
 0x939   :  { %6528 = vrot.lane.b32.xlu0 %v6506_v45, %s9094_s13 }
 0x93a   :  { %p9075_p3 = por %p9074_p2, %p9073_p1 }
 0x93c   :  { %p9076_p4 = pnand %p9075_p3, %p9069_p0 }
 0x93d   :  { %6526 = vrot.lane.b32.xlu0 %v6505_v26, %s9094_s13 }
 0x941   :  { %6524 = vrot.lane.b32.xlu0 %v6504_v15, %s9094_s13 }
 0x945   :  { %6522 = vrot.lane.b32.xlu0 %v6503_v34, %s9094_s13 }
 0x949   :  { %6520 = vrot.lane.b32.xlu0 %v6502_v40, %s9094_s13 }
 0x94d   :  { %6518 = vrot.lane.b32.xlu0 %v6501_v4, %s9094_s13 }
 0x951   :  { %6516 = vrot.lane.b32.xlu0 %v6500_v32, %s9094_s13 }
 0x96f   :  { %6580 = vxpose.xlu0.b32.start [1/8] (short) (narrow) %v12045_v46, 32 }
 0x973   :  { %6581 = vxpose.xlu0.b32.cont [2/8] (short) (narrow) %v12046_v41, 32 }
 0x977   :  { %6582 = vxpose.xlu0.b32.cont [3/8] (short) (narrow) %v12047_v12, 32 }
 0x97b   :  { %6583 = vxpose.xlu0.b32.cont [4/8] (short) (narrow) %v12048_v55, 32 }
 0x97f   :  { %6584 = vxpose.xlu0.b32.cont [5/8] (short) (narrow) %v12049_v16, 32 }
 0x983   :  { %6585 = vxpose.xlu0.b32.cont [6/8] (short) (narrow) %v12050_v31, 32 }
 0x987   :  { %6586 = vxpose.xlu0.b32.cont [7/8] (short) (narrow) %v12051_v11, 32 }
 0x98b   :  { %6587 = vxpose.xlu0.b32.end [8/8] (short) (narrow) %v12052_v43, 32 }
 0x999   :  { %v6483_v44 = vpop.permute.xlu1 %6482 }
 0x99a   :  { %v6499_v18 = vmul.f32 %v6483_v44, %v12056_v2 }
 0x99b   :  { %v6481_v39 = vpop.permute.xlu0 %6480 }
 0x99c   :  { %v6498_v20 = vmul.f32 %v6481_v39, %v12057_v6 }
 0x99d   :  { %v6479_v61 = vpop.permute.xlu1 %6478 }
 0x99e   :  { %v6497_v0 = vmul.f32 %v6479_v61, %v12054_v9 }
 0x99f   :  { %v6475_v51 = vpop.permute.xlu0 %6474 }
 0x9a0   :  { %v6495_v58 = vmul.f32 %v6475_v51, %v12053_v7 }
 0x9a1   :  { %v6477_v13 = vpop.permute.xlu1 %6476 }
 0x9a2   :  { %6554 = vrot.lane.b32.xlu1 %v6495_v58, %s9094_s13  ;;  %v6496_v19 = vmul.f32 %v6477_v13, %v12055_v5 }
 0x9a3   :  { %v6471_v35 = vpop.permute.xlu0 %6470 }
 0x9a4   :  { %v6493_v62 = vmul.f32 %v6471_v35, %v12059_v54 }
 0x9a5   :  { %v6473_v42 = vpop.permute.xlu1 %6472 }
 0x9a6   :  { %6558 = vrot.lane.b32.xlu1 %v6497_v0, %s9094_s13  ;;  %v6494_v22 = vmul.f32 %v6473_v42, %v12058_v25 }
 0x9a7   :  { %v6531_v21 = vpop.permute.xlu0 %6530 }
 0x9a9   :  { %v6469_v60 = vpop.permute.xlu1 %6468 }
 0x9aa   :  { %6556 = vrot.lane.b32.xlu1 %v6496_v19, %s9094_s13  ;;  %v6492_v50 = vmul.f32 %v6469_v60, %v12060_v56 }
 0x9ab   :  { %v6529_v47 = vpop.permute.xlu0 %6528 }
 0x9ae   :  { %6562 = vrot.lane.b32.xlu1 %v6499_v18, %s9094_s13 }
 0x9af   :  { %v6527_v24 = vpop.permute.xlu0 %6526 }
 0x9b2   :  { %6560 = vrot.lane.b32.xlu1 %v6498_v20, %s9094_s13 }
 0x9b3   :  { %v6525_v3 = vpop.permute.xlu0 %6524 }
 0x9b6   :  { %6552 = vrot.lane.b32.xlu1 %v6494_v22, %s9094_s13 }
 0x9b7   :  { %v6523_v49 = vpop.permute.xlu0 %6522 }
 0x9ba   :  { %6550 = vrot.lane.b32.xlu1 %v6493_v62, %s9094_s13 }
 0x9bb   :  { %v6521_v14 = vpop.permute.xlu0 %6520 }
 0x9be   :  { %6548 = vrot.lane.b32.xlu1 %v6492_v50, %s9094_s13 }
 0x9bf   :  { %v11549_v59 = vpop.permute.xlu0 %6518 }
 0x9c3   :  { %v11551_v17 = vpop.permute.xlu0 %6516 }
 0x9eb   :  { %v6596_v29 = vpop.trf.xlu0 }
 0x9ec   :  { %v6614_v53 = vsel %vm6612_vm9, %v6596_v29, 0 }
 0x9ed   :  { %v11554_v38 = vand.u32 4294901760, %v6614_v53 }
 0x9ef   :  { %v11557_v63 = vsub.f32 %v6614_v53, %v11554_v38  ;;  %8907 = vmatprep.mubr.f32.mxu1 %v11554_v38  ;;  %v6597_v37 = vpop.trf.xlu0 }
 0x9f0   :  { %v6617_v26 = vsel %vm6612_vm9, %v6597_v37, 0 }
 0x9f1   :  { %v6700_v27 = vand.u32 4294901760, %v11557_v63  ;;  %v11571_v40 = vand.u32 4294901760, %v6617_v26 }
 0x9f3   :  { %v6701_v48 = vsub.f32 %v11557_v63, %v6700_v27  ;;  %v6598_v28 = vpop.trf.xlu0  ;;  %v11591_v11 = vsub.f32 %v6617_v26, %v11571_v40 }
 0x9f4   :  { %v6620_v32 = vsel %vm6612_vm9, %v6598_v28, 0 }
 0x9f5   :  { %v6702_v10 = vand.u32 4294901760, %v6701_v48  ;;  %v11593_v43 = vand.u32 4294901760, %v6620_v32  ;;  %v6710_v5 = vand.u32 4294901760, %v11591_v11 }
 0x9f7   :  { %8885 = vmatprep.mubr.f32.mxu0 %v6702_v10  ;;  %v6599_v23 = vpop.trf.xlu0  ;;  %v11621_v2 = vsub.f32 %v6620_v32, %v11593_v43  ;;  %v6711_v56 = vsub.f32 %v11591_v11, %v6710_v5 }
 0x9f8   :  { %v6623_v16 = vsel %vm6612_vm9, %v6599_v23, 0 }
 0x9f9   :  { %v11603_v51 = vand.u32 4294901760, %v6623_v16  ;;  %v6720_v50 = vand.u32 4294901760, %v11621_v2  ;;  %v6712_v10 = vand.u32 4294901760, %v6711_v56 }
 0x9fb   :  { %v11634_v25 = vsub.f32 %v6623_v16, %v11603_v51  ;;  %v6721_v37 = vsub.f32 %v11621_v2, %v6720_v50 }
 0xa14   :  { %v6555_v8 = vpop.permute.xlu1 %6554 }
 0xa15   :  { %v6575_v34 = vsel %vm810_vm2, %v6523_v49, %v6555_v8 }
 0xa16   :  { %v11578_v46 = vand.u32 4294901760, %v6575_v34 }
 0xa18   :  { %v6559_v36 = vpop.permute.xlu1 %6558  ;;  %v11606_v7 = vsub.f32 %v6575_v34, %v11578_v46 }
 0xa19   :  { %v6577_v30 = vsel %vm810_vm2, %v6527_v24, %v6559_v36 }
 0xa1a   :  { %v11567_v15 = vand.u32 4294901760, %v6577_v30  ;;  %v11645_v60 = vand.u32 4294901760, %v11606_v7 }
 0xa1c   :  { %v6557_v45 = vpop.permute.xlu1 %6556  ;;  %v11581_v41 = vsub.f32 %v6577_v30, %v11567_v15  ;;  %v6786_v48 = vsub.f32 %v11606_v7, %v11645_v60 }
 0xa1d   :  { %v6576_v52 = vsel %vm810_vm2, %v6525_v3, %v6557_v45 }
 0xa1e   :  { %v11573_v4 = vand.u32 4294901760, %v6576_v52  ;;  %v11615_v13 = vand.u32 4294901760, %v11581_v41 }
 0xa20   :  { %v6563_v33 = vpop.permute.xlu1 %6562  ;;  %v11596_v44 = vsub.f32 %v6576_v52, %v11573_v4  ;;  %v6772_v62 = vsub.f32 %v11581_v41, %v11615_v13  ;;  %v6787_v52 = vand.u32 4294901760, %v6786_v48 }
 0xa21   :  { %v6579_v1 = vsel %vm810_vm2, %v6531_v21, %v6563_v33  ;;  %v6722_v33 = vand.u32 4294901760, %v6721_v37 }
 0xa22   :  { %v11575_v57 = vand.u32 4294901760, %v6579_v1  ;;  %v11630_v42 = vand.u32 4294901760, %v11596_v44  ;;  %v6773_v53 = vand.u32 4294901760, %v6772_v62 }
 0xa24   :  { %v11584_v12 = vsub.f32 %v6579_v1, %v11575_v57  ;;  %v6561_v55 = vpop.permute.xlu1 %6560  ;;  %8869 = vmatprep.subr.mxu0 %v11575_v57  ;;  %v6779_v3 = vsub.f32 %v11596_v44, %v11630_v42 }
 0xa25   :  { %v6578_v31 = vsel %vm810_vm2, %v6529_v47, %v6561_v55  ;;  %8870 = vmatpush3.msra.mxu0 %v11575_v57 }
 0xa26   :  { %v11598_v39 = vand.u32 4294901760, %v6578_v31  ;;  %v11601_v61 = vand.u32 4294901760, %v11584_v12  ;;  %v6780_v28 = vand.u32 4294901760, %v6779_v3 }
 0xa28   :  { %v11609_v58 = vsub.f32 %v6578_v31, %v11598_v39  ;;  %v6553_v9 = vpop.permute.xlu1 %6552  ;;  %8871 = vmatprep.subr.mxu0 %v11598_v39  ;;  %v6758_v0 = vsub.f32 %v11584_v12, %v11601_v61 }
 0xa29   :  { %v6574_v19 = vsel %vm810_vm2, %v6521_v14, %v6553_v9  ;;  %8872 = vmatpush3.msra.mxu0 %v11598_v39  ;;  %v6730_v14 = vand.u32 4294901760, %v11634_v25 }
 0xa2a   :  { %v11623_v18 = vand.u32 4294901760, %v6574_v19  ;;  %8873 = vmatprep.subr.mxu0 %v11567_v15  ;;  %v6759_v6 = vand.u32 4294901760, %v6758_v0  ;;  %v11627_v20 = vand.u32 4294901760, %v11609_v58 }
 0xa2b   :  { %8874 = vmatpush3.msra.mxu0 %v11567_v15 }
 0xa2c   :  { %v11637_v22 = vsub.f32 %v6574_v19, %v11623_v18  ;;  %v6551_v35 = vpop.permute.xlu1 %6550  ;;  %8875 = vmatprep.subr.mxu0 %v11573_v4  ;;  %8891 = vmatprep.subr.mxu1 %v6759_v6  ;;  %v6765_v54 = vsub.f32 %v11609_v58, %v11627_v20 }
 0xa2d   :  { %v6573_v21 = vsel %vm810_vm2, %v11549_v59, %v6551_v35  ;;  %8876 = vmatpush3.msra.mxu0 %v11573_v4  ;;  %8892 = vmatpush3.msra.mxu1 %v6759_v6 }
 0xa2e   :  { %v11654_v47 = vand.u32 4294901760, %v6573_v21  ;;  %8877 = vmatprep.subr.mxu0 %v11578_v46  ;;  %v6766_v24 = vand.u32 4294901760, %v6765_v54  ;;  %v11660_v49 = vand.u32 4294901760, %v11637_v22 }
 0xa2f   :  { %8878 = vmatpush3.msra.mxu0 %v11578_v46 }
 0xa30   :  { %v11665_v59 = vsub.f32 %v6573_v21, %v11654_v47  ;;  %v6549_v29 = vpop.permute.xlu1 %6548  ;;  %8879 = vmatprep.subr.mxu0 %v11623_v18  ;;  %8893 = vmatprep.subr.mxu1 %v6766_v24  ;;  %v6793_v45 = vsub.f32 %v11637_v22, %v11660_v49 }
 0xa31   :  { %v6572_v8 = vsel %vm810_vm2, %v11551_v17, %v6549_v29  ;;  %8880 = vmatpush3.msra.mxu0 %v11623_v18  ;;  %8894 = vmatpush3.msra.mxu1 %v6766_v24  ;;  %v6731_v17 = vsub.f32 %v11634_v25, %v6730_v14  ;;  %vm7295_vm2 = vcmask 359424   ;;  %v9064_v24 = vld [vmem:[%s11801_s1 + $0x8] sm:$0xff]  ;;  %v9065_v29 = vld [vmem:[%s11801_s1] sm:$0xff] }
 0xa32   :  { %v11676_v36 = vand.u32 4294901760, %v6572_v8  ;;  %8881 = vmatprep.subr.mxu0 %v11654_v47  ;;  %8895 = vmatprep.subr.mxu1 %v6773_v53  ;;  %v11682_v30 = vand.u32 4294901760, %v11665_v59  ;;  %v6794_v1 = vand.u32 4294901760, %v6793_v45 }
 0xa33   :  { %8882 = vmatpush3.msra.mxu0 %v11654_v47  ;;  %8896 = vmatpush3.msra.mxu1 %v6773_v53  ;;  %v6732_v32 = vand.u32 4294901760, %v6731_v17 }
 0xa34   :  { %v6805_v26 = vsub.f32 %v6572_v8, %v11676_v36  ;;  %8883 = vmatprep.subr.mxu0 %v11676_v36  ;;  %8897 = vmatprep.subr.mxu1 %v6780_v28  ;;  %v6800_v34 = vsub.f32 %v11665_v59, %v11682_v30  ;;  %v9066_v8 = vld [vmem:[%s11801_s1 + $0x18] sm:$0xff] }
 0xa35   :  { %8884 = vmatpush3.msra.mxu0 %v11676_v36  ;;  %8898 = vmatpush3.msra.mxu1 %v6780_v28  ;;  %v9067_v28 = vld [vmem:[%s11801_s1 + $0x10] sm:$0xff] }
 0xa36   :  { %8886 = vmatmul.mubr.f32.vlgmr.msra.gmra.mxu0 %v6712_v10  ;;  %8899 = vmatprep.subr.mxu1 %v6787_v52  ;;  %v11693_v23 = vand.u32 4294901760, %v6805_v26  ;;  %v6801_v16 = vand.u32 4294901760, %v6800_v34 }
 0xa37   :  { %8913 = vmatprep.subr.mxu0 %v11584_v12  ;;  %8900 = vmatpush3.msra.mxu1 %v6787_v52 }
 0xa38   :  { %8914 = vmatpush3.msra.mxu0 %v11584_v12  ;;  %8901 = vmatprep.subr.mxu1 %v6794_v1  ;;  %v6807_v55 = vsub.f32 %v6805_v26, %v11693_v23 }
 0xa39   :  { %8915 = vmatprep.subr.mxu0 %v11609_v58  ;;  %8888 = vmatprep.mubr.f32.mxu0 %v6722_v33 }
 0xa3a   :  { %8902 = vmatpush3.msra.mxu1 %v6794_v1  ;;  %8916 = vmatpush3.msra.mxu0 %v11609_v58  ;;  %v6808_v31 = vand.u32 4294901760, %v6807_v55 }
 0xa3b   :  { %8889 = vmatmul.mubr.f32.gmra.mxu0 %v6732_v32  ;;  %8903 = vmatprep.subr.mxu1 %v6801_v16 }
 0xa3c   :  { %8917 = vmatprep.subr.mxu0 %v11581_v41  ;;  %8904 = vmatpush3.msra.mxu1 %v6801_v16 }
 0xa3d   :  { %8918 = vmatpush3.msra.mxu0 %v11581_v41  ;;  %8929 = vmatprep.mubr.f32.mxu0 %v11557_v63 }
 0xa3e   :  { %8905 = vmatprep.subr.mxu1 %v6808_v31  ;;  %8919 = vmatprep.subr.mxu0 %v11596_v44 }
 0xa3f   :  { %8906 = vmatpush3.msra.mxu1 %v6808_v31  ;;  %8920 = vmatpush3.msra.mxu0 %v11596_v44 }
 0xa40   :  { %8908 = vmatmul.mubr.f32.vlgmr.msra.gmra.mxu1 %v11571_v40  ;;  %8921 = vmatprep.subr.mxu0 %v11606_v7 }
 0xa41   :  { %8935 = vmatprep.subr.mxu1 %v11575_v57  ;;  %8910 = vmatprep.mubr.f32.mxu1 %v11593_v43 }
 0xa42   :  { %8922 = vmatpush3.msra.mxu0 %v11606_v7  ;;  %8936 = vmatpush3.msra.mxu1 %v11575_v57 }
 0xa43   :  { %8923 = vmatprep.subr.mxu0 %v11637_v22  ;;  %8937 = vmatprep.subr.mxu1 %v11598_v39 }
 0xa44   :  { %8924 = vmatpush3.msra.mxu0 %v11637_v22  ;;  %8938 = vmatpush3.msra.mxu1 %v11598_v39 }
 0xa45   :  { %8911 = vmatmul.mubr.f32.gmra.mxu1 %v11603_v51  ;;  %8925 = vmatprep.subr.mxu0 %v11665_v59 }
 0xa46   :  { %8939 = vmatprep.subr.mxu1 %v11567_v15  ;;  %8926 = vmatpush3.msra.mxu0 %v11665_v59 }
 0xa47   :  { %8940 = vmatpush3.msra.mxu1 %v11567_v15  ;;  %8951 = vmatprep.mubr.f32.mxu1 %v6700_v27 }
 0xa48   :  { %8927 = vmatprep.subr.mxu0 %v6805_v26  ;;  %8941 = vmatprep.subr.mxu1 %v11573_v4 }
 0xa49   :  { %8928 = vmatpush3.msra.mxu0 %v6805_v26  ;;  %8942 = vmatpush3.msra.mxu1 %v11573_v4 }
 0xa4a   :  { %8930 = vmatmul.mubr.f32.vlgmr.msra.gmra.mxu0 %v11591_v11  ;;  %8943 = vmatprep.subr.mxu1 %v11578_v46 }
 0xa4b   :  { %8957 = vmatprep.subr.mxu0 %v11601_v61  ;;  %8932 = vmatprep.mubr.f32.mxu0 %v11621_v2 }
 0xa4c   :  { %8944 = vmatpush3.msra.mxu1 %v11578_v46  ;;  %8958 = vmatpush3.msra.mxu0 %v11601_v61 }
 0xa4d   :  { %8945 = vmatprep.subr.mxu1 %v11623_v18  ;;  %8959 = vmatprep.subr.mxu0 %v11627_v20 }
 0xa4e   :  { %8946 = vmatpush3.msra.mxu1 %v11623_v18  ;;  %8960 = vmatpush3.msra.mxu0 %v11627_v20 }
 0xa4f   :  { %8933 = vmatmul.mubr.f32.gmra.mxu0 %v11634_v25  ;;  %8947 = vmatprep.subr.mxu1 %v11654_v47 }
 0xa50   :  { %8961 = vmatprep.subr.mxu0 %v11615_v13  ;;  %8948 = vmatpush3.msra.mxu1 %v11654_v47 }
 0xa51   :  { %8962 = vmatpush3.msra.mxu0 %v11615_v13  ;;  %8973 = vmatprep.mubr.f32.mxu0 %v11554_v38 }
 0xa52   :  { %8949 = vmatprep.subr.mxu1 %v11676_v36  ;;  %8963 = vmatprep.subr.mxu0 %v11630_v42 }
 0xa53   :  { %8950 = vmatpush3.msra.mxu1 %v11676_v36  ;;  %8964 = vmatpush3.msra.mxu0 %v11630_v42 }
 0xa54   :  { %8952 = vmatmul.mubr.f32.vlgmr.msra.gmra.mxu1 %v6710_v5  ;;  %8965 = vmatprep.subr.mxu0 %v11645_v60 }
 0xa55   :  { %8979 = vmatprep.subr.mxu1 %v11575_v57  ;;  %8954 = vmatprep.mubr.f32.mxu1 %v6720_v50 }
 0xa56   :  { %8966 = vmatpush3.msra.mxu0 %v11645_v60  ;;  %8980 = vmatpush3.msra.mxu1 %v11575_v57 }
 0xa57   :  { %8967 = vmatprep.subr.mxu0 %v11660_v49  ;;  %8981 = vmatprep.subr.mxu1 %v11598_v39 }
 0xa58   :  { %8968 = vmatpush3.msra.mxu0 %v11660_v49  ;;  %8982 = vmatpush3.msra.mxu1 %v11598_v39 }
 0xa59   :  { %8955 = vmatmul.mubr.f32.gmra.mxu1 %v6730_v14  ;;  %8969 = vmatprep.subr.mxu0 %v11682_v30 }
 0xa5a   :  { %8983 = vmatprep.subr.mxu1 %v11567_v15  ;;  %8970 = vmatpush3.msra.mxu0 %v11682_v30 }
 0xa5b   :  { %8984 = vmatpush3.msra.mxu1 %v11567_v15  ;;  %8995 = vmatprep.mubr.f32.mxu1 %v11554_v38 }
 0xa5c   :  { %8971 = vmatprep.subr.mxu0 %v11693_v23  ;;  %8985 = vmatprep.subr.mxu1 %v11573_v4 }
 0xa5d   :  { %8972 = vmatpush3.msra.mxu0 %v11693_v23  ;;  %8986 = vmatpush3.msra.mxu1 %v11573_v4 }
 0xa5e   :  { %8974 = vmatmul.mubr.f32.vlgmr.msra.gmra.mxu0 %v11571_v40  ;;  %8987 = vmatprep.subr.mxu1 %v11578_v46 }
 0xa5f   :  { %8976 = vmatprep.mubr.f32.mxu0 %v11593_v43  ;;  %8988 = vmatpush3.msra.mxu1 %v11578_v46 }
 0xa60   :  { %8989 = vmatprep.subr.mxu1 %v11623_v18 }
 0xa61   :  { %8990 = vmatpush3.msra.mxu1 %v11623_v18 }
 0xa62   :  { %8977 = vmatmul.mubr.f32.gmra.mxu0 %v11603_v51  ;;  %8991 = vmatprep.subr.mxu1 %v11654_v47 }
 0xa63   :  { %8992 = vmatpush3.msra.mxu1 %v11654_v47 }
 0xa64   :  { %8993 = vmatprep.subr.mxu1 %v11676_v36 }
 0xa65   :  { %8994 = vmatpush3.msra.mxu1 %v11676_v36 }
 0xa66   :  { %8996 = vmatmul.mubr.f32.vlgmr.msra.gmra.mxu1 %v11571_v40 }
 0xa67   :  { %8998 = vmatprep.mubr.f32.mxu1 %v11593_v43 }
 0xa6a   :  { %8999 = vmatmul.mubr.f32.gmra.mxu1 %v11603_v51 }
 0xaf6   :  { %v8887_v38 = vpop.f32.mrf.mxu0 }
 0xaf8   :  { %v6704_v63 = vpop.f32.mrf.mxu0 }
 0xafb   :  { %v8890_v27 = vpop.f32.mrf.mxu0 }
 0xafd   :  { %v6724_v4 = vpop.f32.mrf.mxu0 }
 0xb00   :  { %v8909_v15 = vpop.f32.mrf.mxu1 }
 0xb01   :  { %v6852_v40 = vadd.f32 %v8909_v15, %v8887_v38 }
 0xb02   :  { %v6845_v57 = vpop.f32.mrf.mxu1 }
 0xb03   :  { %v6846_v0 = vadd.f32 %v6845_v57, %v6704_v63 }
 0xb05   :  { %v8912_v41 = vpop.f32.mrf.mxu1 }
 0xb06   :  { %v6864_v13 = vadd.f32 %v8912_v41, %v8890_v27 }
 0xb07   :  { %v6857_v11 = vpop.f32.mrf.mxu1 }
 0xb08   :  { %v6858_v6 = vadd.f32 %v6857_v11, %v6724_v4 }
 0xb0a   :  { %v8931_v46 = vpop.f32.mrf.mxu0 }
 0xb0b   :  { %v6959_v51 = vadd.f32 %v8931_v46, %v6852_v40 }
 0xb0c   :  { %v6951_v12 = vpop.f32.mrf.mxu0 }
 0xb0d   :  { %v6952_v5 = vadd.f32 %v6951_v12, %v6846_v0 }
 0xb0f   :  { %v8934_v44 = vpop.f32.mrf.mxu0 }
 0xb10   :  { %v6973_v20 = vadd.f32 %v8934_v44, %v6864_v13 }
 0xb11   :  { %v6965_v61 = vpop.f32.mrf.mxu0 }
 0xb12   :  { %v6966_v35 = vadd.f32 %v6965_v61, %v6858_v6 }
 0xb14   :  { %v8953_v39 = vpop.f32.mrf.mxu1 }
 0xb15   :  { %v7062_v19 = vadd.f32 %v8953_v39, %v6959_v51 }
 0xb16   :  { %v7053_v7 = vpop.f32.mrf.mxu1 }
 0xb17   :  { %v7054_v42 = vadd.f32 %v7053_v7, %v6952_v5 }
 0xb19   :  { %v8956_v9 = vpop.f32.mrf.mxu1 }
 0xb1a   :  { %v7078_v54 = vadd.f32 %v8956_v9, %v6973_v20 }
 0xb1b   :  { %v7069_v2 = vpop.f32.mrf.mxu1 }
 0xb1c   :  { %v7070_v21 = vadd.f32 %v7069_v2, %v6966_v35 }
 0xb1e   :  { %v8975_v58 = vpop.f32.mrf.mxu0 }
 0xb1f   :  { %v7179_v25 = vadd.f32 %v8975_v58, %v7062_v19 }
 0xb20   :  { %v7172_v43 = vpop.f32.mrf.mxu0 }
 0xb21   :  { %v7173_v62 = vadd.f32 %v7172_v43, %v7054_v42 }
 0xb22   :  { %v8978_v18 = vpop.f32.mrf.mxu0 }
 0xb23   :  { %v7191_v47 = vadd.f32 %v8978_v18, %v7078_v54 }
 0xb24   :  { %v7184_v56 = vpop.f32.mrf.mxu0 }
 0xb25   :  { %v7185_v59 = vadd.f32 %v7184_v56, %v7070_v21 }
 0xb26   :  { %v8997_v22 = vpop.f32.mrf.mxu1 }
 0xb27   :  { %v7276_v60 = vadd.f32 %v8997_v22, %v7179_v25 }
 0xb28   :  { %v7269_v50 = vpop.f32.mrf.mxu1 }
 0xb29   :  { %v7292_v3 = vadd.f32 %v9064_v24, %v7276_v60  ;;  %v7270_v49 = vadd.f32 %v7269_v50, %v7173_v62 }
 0xb2a   :  { %v9000_v14 = vpop.f32.mrf.mxu1 }
 0xb2b   :  { %7297 = vst.msk [vmem:[#allocation2 + $0x8] sm:$0xff] %vm7295_vm2, %v7292_v3  ;;  %v7291_v53 = vadd.f32 %v9065_v29, %v7270_v49  ;;  %v7288_v48 = vadd.f32 %v9000_v14, %v7191_v47 }
 0xb2c   :  { %v7281_v10 = vpop.f32.mrf.mxu1 }
 0xb2d   :  { %7296 = vst.msk [vmem:[#allocation2] sm:$0xff] %vm7295_vm2, %v7291_v53  ;;  %v7294_v37 = vadd.f32 %v9066_v8, %v7288_v48  ;;  %v7282_v36 = vadd.f32 %v7281_v10, %v7185_v59 }
 0xb2f   :  { %7299 = vst.msk [vmem:[#allocation2 + $0x18] sm:$0xff] %vm7295_vm2, %v7294_v37  ;;  %v7293_v45 = vadd.f32 %v9067_v28, %v7282_v36 }
 0xb31   :  { %7298 = vst.msk [vmem:[#allocation2 + $0x10] sm:$0xff] %vm7295_vm2, %v7293_v45 }
 0xb32   :  { %9079 = shalt.err (!%p9076_p4)
}
 0xb33   :  { %s9097_s14 = smov 128   ;;  %s9098_s15 = smov 8  }
 0xb34   :  { %7311 = dma.vmem_to_hbm [thread:$0]  %s7306_s10, 512, %s11807_s7, [#allocation3], %s9097_s14, %s9097_s14, %s9098_s15  }
 0xb35   :  { %9088 = dma.done.wait [#allocation3], 512  }
 0xb36   :  { %9089 = vsyncadd [#allocation3], 4294966784 }
 0xb37   :  { %7319 = vsyncpa [#allocation3], 1 }

</bundles_post_ra>
